<compile_context>
chip_gen: v6e
topology: v6e:2x2x1
jax: 0.10.0
libtpu: 0.0.40
codegen_flags: <defaults>
</compile_context>

<pallas_src>
import numpy as np

import jax
import jax.numpy as jnp
from jax import lax
from jax.experimental import pallas as pl
from jax.experimental.pallas import tpu as pltpu

BN_EPS = 1e-5
_TAPS = [(dh, dw) for dh in (-1, 0, 1) for dw in (-1, 0, 1)]


# ----------------------------------------------------------------------------
# Host-precomputed exact 0/1 constants (only for the tiny layers + pool selectors), bf16.
# ----------------------------------------------------------------------------
def _pixel_coords(B, H, W):
    r = np.arange(B * H * W)
    return (r % (H * W)) // W, r % W


def _shift_mats(B, H, W):
    """(9, P, P) 0/1 with (x @ RM[t])[:, r] = x[:, r + k_t] inside the image, 0 outside."""
    P = B * H * W
    h, w = _pixel_coords(B, H, W)
    r = np.arange(P)
    rm = np.zeros((9, P, P), np.float32)
    for t, (dh, dw) in enumerate(_TAPS):
        ok = (h + dh >= 0) & (h + dh < H) & (w + dw >= 0) & (w + dw < W)
        rm[t, (r + dh * W + dw)[ok], r[ok]] = 1.0
    return rm


def _pool_gather(B, H, W):
    """(4, P, P//4) 0/1 selecting the four elements of every 2x2 window (offsets 0,1,W,W+1)."""
    Ho, Wo = H // 2, W // 2
    t = np.zeros((4, B * H * W, B * Ho * Wo), np.float32)
    for b in range(B):
        for ho in range(Ho):
            for wo in range(Wo):
                base = b * H * W + 2 * ho * W + 2 * wo
                out = b * Ho * Wo + ho * Wo + wo
                for j, off in enumerate((0, 1, W, W + 1)):
                    t[j, base + off, out] = 1.0
    return t


_CONST_CACHE = {}


def _constants(B):
    # All 0/1 constants stored bf16 (exact for 0/1) -> ~160 KB total HBM traffic.
    if B not in _CONST_CACHE:
        bf = jnp.bfloat16
        _CONST_CACHE[B] = dict(
            t1=jnp.asarray(_pool_gather(B, 16, 16)[0], bf),   # (512, 128) top-left selector
            t2=jnp.asarray(_pool_gather(B, 8, 8)[0], bf),     # (128, 32)
            r3=jnp.asarray(_shift_mats(B, 4, 4), bf),         # (9, 32, 32)
            t3=jnp.asarray(_pool_gather(B, 4, 4), bf),        # (4, 32, 8)
            r4=jnp.asarray(_shift_mats(B, 2, 2), bf),         # (9, 8, 8)
            t4=jnp.asarray(_pool_gather(B, 2, 2), bf),        # (4, 8, 2)
        )
    return _CONST_CACHE[B]


# ----------------------------------------------------------------------------
# In-kernel helpers.  Activation layout: (channels, P = B*H*W), pixels on lanes.
# ----------------------------------------------------------------------------
def _lane_roll(x, k):
    """out[:, r] = x[:, (r + k) % P] -- static lane rotation via slice + concatenate."""
    P = x.shape[1]
    j = k % P
    if j == 0:
        return x
    return jnp.concatenate([x[:, j:], x[:, :j]], axis=1)


def _bn_relu(acc, g_ref, b_ref):
    """Training-mode BatchNorm2d (biased batch variance, one-pass stats) + ReLU in one FMA."""
    inv_n = 1.0 / acc.shape[1]
    mean = jnp.sum(acc, axis=1, keepdims=True) * inv_n
    msq = jnp.sum(acc * acc, axis=1, keepdims=True) * inv_n
    var = msq - mean * mean
    scale = g_ref[...] * lax.rsqrt(var + BN_EPS)                 # rsqrt -> EUP (free slot)
    shift = b_ref[...] - mean * scale
    return jnp.maximum(acc * scale + shift, 0.0)


def _conv_roll(x, w_ref, H, W):
    """3x3 'same' conv on (cin, P) via lane rotations + iota boundary masks (layers 1-2).

    Per-tap accumulation (no sublane concat); cin is 1 or 2 here, so each tap is a
    broadcast FMA on the VPU.  Wrap-around columns of the rotation are always masked."""
    cin, P = x.shape
    cout = w_ref.shape[0]
    wfull = w_ref[...]                                           # (cout, 9*cin)
    col = lax.broadcasted_iota(jnp.int32, (cin, P), 1)
    w_idx = jnp.bitwise_and(col, W - 1)                          # W, H*W are powers of two
    hw_idx = jnp.bitwise_and(col, H * W - 1)                     # flat (h, w) within the image
    left, right = w_idx >= 1, w_idx <= W - 2
    up, down = hw_idx >= W, hw_idx <= H * W - W - 1
    acc = jnp.zeros((cout, P), jnp.float32)
    for t, (dh, dw) in enumerate(_TAPS):
        piece = _lane_roll(x, dh * W + dw)
        conds = (([up] if dh == -1 else []) + ([down] if dh == 1 else [])
                 + ([left] if dw == -1 else []) + ([right] if dw == 1 else []))
        if conds:
            m = conds[0]
            for extra in conds[1:]:
                m = jnp.logical_and(m, extra)
            piece = jnp.where(m, piece, 0.0)                     # 'same' zero padding
        for c in range(cin):
            acc = acc + wfull[:, t * cin + c:t * cin + c + 1] * piece[c:c + 1, :]
    return acc


def _pool_roll(y, t0_ref, W):
    """MaxPool2d(2): two lane rotations + max, then ONE exact 0/1 top-left selection matmul."""
    m = jnp.maximum(y, _lane_roll(y, 1))
    m = jnp.maximum(m, _lane_roll(m, W))
    return jnp.dot(m, t0_ref[...].astype(jnp.float32), preferred_element_type=jnp.float32)


def _conv_mat(x, w_ref, rm_ref):
    """3x3 'same' conv for the tiny layers (P < 128 lanes): exact 0/1 shift matmuls, per-tap."""
    cin, P = x.shape
    cout = w_ref.shape[0]
    wfull = w_ref[...]                                           # (cout, 9*cin)
    acc = jnp.zeros((cout, P), jnp.float32)
    for t in range(9):
        piece = jnp.dot(x, rm_ref[t].astype(jnp.float32), preferred_element_type=jnp.float32)
        acc = acc + jnp.dot(wfull[:, t * cin:(t + 1) * cin], piece,
                            preferred_element_type=jnp.float32)
    return acc


def _pool_mat(y, t_ref):
    """MaxPool2d(2) for the tiny layers: four 0/1 gather matmuls + elementwise max."""
    p = jnp.dot(y, t_ref[0].astype(jnp.float32), preferred_element_type=jnp.float32)
    for j in range(1, 4):
        p = jnp.maximum(p, jnp.dot(y, t_ref[j].astype(jnp.float32),
                                   preferred_element_type=jnp.float32))
    return p


# ----------------------------------------------------------------------------
# Fused kernel: 4 x (conv3x3 + BN(train) + ReLU + maxpool2) + Linear, all in VMEM.
# ----------------------------------------------------------------------------
def _encoder_kernel(x_ref,
                    w1_ref, g1_ref, b1_ref, t1_ref,
                    w2_ref, g2_ref, b2_ref, t2_ref,
                    w3_ref, g3_ref, b3_ref, r3_ref, t3_ref,
                    w4_ref, g4_ref, b4_ref, r4_ref, t4_ref,
                    fcw_ref, fcb_ref, o_ref):
    # Block 1: 16x16, 1 -> 2 channels   (P = B*256)
    x = _pool_roll(_bn_relu(_conv_roll(x_ref[...], w1_ref, 16, 16), g1_ref, b1_ref), t1_ref, 16)
    # Block 2: 8x8, 2 -> 4               (P = B*64)
    x = _pool_roll(_bn_relu(_conv_roll(x, w2_ref, 8, 8), g2_ref, b2_ref), t2_ref, 8)
    # Block 3: 4x4, 4 -> 8               (P = B*16, below one lane vreg -> matrix path)
    x = _pool_mat(_bn_relu(_conv_mat(x, w3_ref, r3_ref), g3_ref, b3_ref), t3_ref)
    # Block 4: 2x2, 8 -> 16              (P = B*4)
    x = _pool_mat(_bn_relu(_conv_mat(x, w4_ref, r4_ref), g4_ref, b4_ref), t4_ref)
    # Linear(16 -> 10), computed transposed: (10, 16) @ (16, B) + (10, 1).
    o_ref[...] = (jnp.dot(fcw_ref[...], x, preferred_element_type=jnp.float32)
                  + fcb_ref[...])


# ----------------------------------------------------------------------------
# Forward-pass wrapper: one gridless pallas_call for the whole network.
# ----------------------------------------------------------------------------
def mnist_encoder_forward(params, x_nchw):
    B, cin0, H, W = x_nchw.shape
    assert (cin0, H, W) == (1, 16, 16), "expected (B, 1, 16, 16) input"
    c = _constants(B)
    x_flat = x_nchw.astype(jnp.float32).reshape(1, B * H * W)     # raw pixels, lanes = (b, h, w)

    def conv_args(blk):
        ci, co = blk["w"].shape[2], blk["w"].shape[3]
        return (blk["w"].reshape(9 * ci, co).T,                   # (cout, 9*cin), cols = (tap, cin)
                blk["gamma"].reshape(co, 1),
                blk["beta"].reshape(co, 1))

    blk1, blk2, blk3, blk4 = params["blocks"]
    w1, g1, be1 = conv_args(blk1)
    w2, g2, be2 = conv_args(blk2)
    w3, g3, be3 = conv_args(blk3)
    w4, g4, be4 = conv_args(blk4)

    out_t = pl.pallas_call(
        _encoder_kernel,
        out_shape=jax.ShapeDtypeStruct((10, B), jnp.float32),
        compiler_params=pltpu.CompilerParams(vmem_limit_bytes=4 * 1024 * 1024),
    )(x_flat,
      w1, g1, be1, c["t1"],
      w2, g2, be2, c["t2"],
      w3, g3, be3, c["r3"], c["t3"],
      w4, g4, be4, c["r4"], c["t4"],
      params["fc_w"].T, params["fc_b"].reshape(-1, 1))
    return out_t.T                                                # (B, 10)


# ----------------------------------------------------------------------------
# Deterministic parameter init (shapes from the PyTorch __init__).
# ----------------------------------------------------------------------------
def init_params(key):
    channels = [2 ** i for i in range(5)]                         # [1, 2, 4, 8, 16]
    blocks = []
    for i in range(4):
        cin, cout = channels[i], channels[i + 1]
        key, k1, k2, k3, k4 = jax.random.split(key, 5)
        blocks.append(dict(
            w=jax.random.normal(k1, (3, 3, cin, cout), jnp.float32) / jnp.sqrt(9.0 * cin),
            b=0.1 * jax.random.normal(k2, (cout,), jnp.float32),   # conv bias (reference only;
            gamma=1.0 + 0.1 * jax.random.normal(k3, (cout,), jnp.float32),  # cancelled by BN mean)
            beta=0.1 * jax.random.normal(k4, (cout,), jnp.float32)))
    key, k1, k2 = jax.random.split(key, 3)
    fc_w = jax.random.normal(k1, (16, 10), jnp.float32) / 4.0
    fc_b = 0.1 * jax.random.normal(k2, (10,), jnp.float32)
    return dict(blocks=blocks, fc_w=fc_w, fc_b=fc_b)


# ----------------------------------------------------------------------------
# Pure-JAX reference (same math as the PyTorch module in training mode).
# ----------------------------------------------------------------------------
def reference_forward(params, x_nchw):
    x = jnp.transpose(x_nchw, (0, 2, 3, 1)).astype(jnp.float32)
    for blk in params["blocks"]:
        y = lax.conv_general_dilated(
            x, blk["w"], window_strides=(1, 1), padding="SAME",
            dimension_numbers=("NHWC", "HWIO", "NHWC"),
            precision=lax.Precision.HIGHEST)
        y = y + blk["b"].reshape(1, 1, 1, -1)
        mean = jnp.mean(y, axis=(0, 1, 2), keepdims=True)
        var = jnp.mean((y - mean) ** 2, axis=(0, 1, 2), keepdims=True)
        y = ((y - mean) * (blk["gamma"].reshape(1, 1, 1, -1) * lax.rsqrt(var + BN_EPS))
             + blk["beta"].reshape(1, 1, 1, -1))
        y = jnp.maximum(y, 0.0)
        x = lax.reduce_window(y, -jnp.inf, lax.max, (1, 2, 2, 1), (1, 2, 2, 1), "VALID")
    feats = x.reshape(x.shape[0], -1)                              # (B, 16)
    return jnp.dot(feats, params["fc_w"], precision=lax.Precision.HIGHEST) + params["fc_b"]


if __name__ == "__main__":
    key = jax.random.PRNGKey(0)
    key, xk, pk = jax.random.split(key, 3)
    # 1 input channel, 16x16 spatial so that four MaxPool2d(2) stages reach 1x1 (fc expects 16).
    x = jax.random.normal(xk, (2, 1, 16, 16), jnp.float32)         # NCHW like PyTorch
    params = init_params(pk)

    out = jax.block_until_ready(mnist_encoder_forward(params, x))  # (2, 10)
    ref = jax.block_until_ready(reference_forward(params, x))

    if out.shape != (2, 10):
        raise AssertionError(f"unexpected output shape {out.shape}")
    if not jnp.allclose(out, ref, atol=2e-3, rtol=2e-3):
        err = float(jnp.max(jnp.abs(out - ref)))
        raise AssertionError(f"Pallas kernel output does not match reference (max abs err {err})")

    print("KERNEL_OK")
</pallas_src>

<mosaic_0001>
module attributes {stable_mosaic.version = 11 : i64} {
  func.func @_encoder_kernel(%arg0: memref<1x512xf32, #tpu.memory_space<vmem>>, %arg1: memref<2x9xf32, #tpu.memory_space<vmem>>, %arg2: memref<2x1xf32, #tpu.memory_space<vmem>>, %arg3: memref<2x1xf32, #tpu.memory_space<vmem>>, %arg4: memref<512x128xbf16, #tpu.memory_space<vmem>>, %arg5: memref<4x18xf32, #tpu.memory_space<vmem>>, %arg6: memref<4x1xf32, #tpu.memory_space<vmem>>, %arg7: memref<4x1xf32, #tpu.memory_space<vmem>>, %arg8: memref<128x32xbf16, #tpu.memory_space<vmem>>, %arg9: memref<8x36xf32, #tpu.memory_space<vmem>>, %arg10: memref<8x1xf32, #tpu.memory_space<vmem>>, %arg11: memref<8x1xf32, #tpu.memory_space<vmem>>, %arg12: memref<9x32x32xbf16, #tpu.memory_space<vmem>>, %arg13: memref<4x32x8xbf16, #tpu.memory_space<vmem>>, %arg14: memref<16x72xf32, #tpu.memory_space<vmem>>, %arg15: memref<16x1xf32, #tpu.memory_space<vmem>>, %arg16: memref<16x1xf32, #tpu.memory_space<vmem>>, %arg17: memref<9x8x8xbf16, #tpu.memory_space<vmem>>, %arg18: memref<4x8x2xbf16, #tpu.memory_space<vmem>>, %arg19: memref<10x16xf32, #tpu.memory_space<vmem>>, %arg20: memref<10x1xf32, #tpu.memory_space<vmem>>, %arg21: memref<10x2xf32, #tpu.memory_space<vmem>>) attributes {dimension_semantics = [], scalar_prefetch = 0 : i64, scratch_operands = 0 : i64, tpu.core_type = #tpu.core_type<tc>} {
    %c0 = arith.constant 0 : index
    %c0_0 = arith.constant 0 : index
    %0 = vector.load %arg0[%c0, %c0_0] : memref<1x512xf32, #tpu.memory_space<vmem>>, vector<1x512xf32>
    %c0_1 = arith.constant 0 : index
    %c0_2 = arith.constant 0 : index
    %1 = vector.load %arg1[%c0_1, %c0_2] : memref<2x9xf32, #tpu.memory_space<vmem>>, vector<2x9xf32>
    %2 = tpu.iota {dimensions = array<i32: 1>} : vector<1x512xi32>
    %c15_i32 = arith.constant 15 : i32
    %3 = vector.broadcast %c15_i32 : i32 to vector<1x512xi32>
    %4 = arith.andi %2, %3 : vector<1x512xi32>
    %c255_i32 = arith.constant 255 : i32
    %5 = vector.broadcast %c255_i32 : i32 to vector<1x512xi32>
    %6 = arith.andi %2, %5 : vector<1x512xi32>
    %c1_i32 = arith.constant 1 : i32
    %7 = vector.broadcast %c1_i32 : i32 to vector<1x512xi32>
    %8 = arith.cmpi sge, %4, %7 : vector<1x512xi32>
    %c14_i32 = arith.constant 14 : i32
    %9 = vector.broadcast %c14_i32 : i32 to vector<1x512xi32>
    %10 = arith.cmpi sle, %4, %9 : vector<1x512xi32>
    %c16_i32 = arith.constant 16 : i32
    %11 = vector.broadcast %c16_i32 : i32 to vector<1x512xi32>
    %12 = arith.cmpi sge, %6, %11 : vector<1x512xi32>
    %c239_i32 = arith.constant 239 : i32
    %13 = vector.broadcast %c239_i32 : i32 to vector<1x512xi32>
    %14 = arith.cmpi sle, %6, %13 : vector<1x512xi32>
    %cst = arith.constant 0.000000e+00 : f32
    %15 = vector.broadcast %cst : f32 to vector<2x512xf32>
    %16 = vector.extract_strided_slice %0 {offsets = [0, 495], sizes = [1, 17], strides = [1, 1]} : vector<1x512xf32> to vector<1x17xf32>
    %17 = vector.extract_strided_slice %0 {offsets = [0, 0], sizes = [1, 495], strides = [1, 1]} : vector<1x512xf32> to vector<1x495xf32>
    %18 = tpu.concatenate %16, %17 in 1 : vector<1x17xf32>, vector<1x495xf32> -> vector<1x512xf32>
    %19 = arith.andi %12, %8 : vector<1x512xi1>
    %cst_3 = arith.constant 0.000000e+00 : f32
    %20 = vector.broadcast %cst_3 : f32 to vector<1x512xf32>
    %21 = arith.select %19, %18, %20 : vector<1x512xi1>, vector<1x512xf32>
    %22 = vector.extract_strided_slice %1 {offsets = [0, 0], sizes = [2, 1], strides = [1, 1]} : vector<2x9xf32> to vector<2x1xf32>
    %23 = vector.broadcast %22 : vector<2x1xf32> to vector<2x512xf32>
    %24 = vector.broadcast %21 : vector<1x512xf32> to vector<2x512xf32>
    %25 = arith.mulf %23, %24 : vector<2x512xf32>
    %26 = arith.addf %15, %25 : vector<2x512xf32>
    %27 = vector.extract_strided_slice %0 {offsets = [0, 496], sizes = [1, 16], strides = [1, 1]} : vector<1x512xf32> to vector<1x16xf32>
    %28 = vector.extract_strided_slice %0 {offsets = [0, 0], sizes = [1, 496], strides = [1, 1]} : vector<1x512xf32> to vector<1x496xf32>
    %29 = tpu.concatenate %27, %28 in 1 : vector<1x16xf32>, vector<1x496xf32> -> vector<1x512xf32>
    %cst_4 = arith.constant 0.000000e+00 : f32
    %30 = vector.broadcast %cst_4 : f32 to vector<1x512xf32>
    %31 = arith.select %12, %29, %30 : vector<1x512xi1>, vector<1x512xf32>
    %32 = vector.extract_strided_slice %1 {offsets = [0, 1], sizes = [2, 1], strides = [1, 1]} : vector<2x9xf32> to vector<2x1xf32>
    %33 = vector.broadcast %32 : vector<2x1xf32> to vector<2x512xf32>
    %34 = vector.broadcast %31 : vector<1x512xf32> to vector<2x512xf32>
    %35 = arith.mulf %33, %34 : vector<2x512xf32>
    %36 = arith.addf %26, %35 : vector<2x512xf32>
    %37 = vector.extract_strided_slice %0 {offsets = [0, 497], sizes = [1, 15], strides = [1, 1]} : vector<1x512xf32> to vector<1x15xf32>
    %38 = vector.extract_strided_slice %0 {offsets = [0, 0], sizes = [1, 497], strides = [1, 1]} : vector<1x512xf32> to vector<1x497xf32>
    %39 = tpu.concatenate %37, %38 in 1 : vector<1x15xf32>, vector<1x497xf32> -> vector<1x512xf32>
    %40 = arith.andi %12, %10 : vector<1x512xi1>
    %cst_5 = arith.constant 0.000000e+00 : f32
    %41 = vector.broadcast %cst_5 : f32 to vector<1x512xf32>
    %42 = arith.select %40, %39, %41 : vector<1x512xi1>, vector<1x512xf32>
    %43 = vector.extract_strided_slice %1 {offsets = [0, 2], sizes = [2, 1], strides = [1, 1]} : vector<2x9xf32> to vector<2x1xf32>
    %44 = vector.broadcast %43 : vector<2x1xf32> to vector<2x512xf32>
    %45 = vector.broadcast %42 : vector<1x512xf32> to vector<2x512xf32>
    %46 = arith.mulf %44, %45 : vector<2x512xf32>
    %47 = arith.addf %36, %46 : vector<2x512xf32>
    %48 = vector.extract_strided_slice %0 {offsets = [0, 511], sizes = [1, 1], strides = [1, 1]} : vector<1x512xf32> to vector<1x1xf32>
    %49 = vector.extract_strided_slice %0 {offsets = [0, 0], sizes = [1, 511], strides = [1, 1]} : vector<1x512xf32> to vector<1x511xf32>
    %50 = tpu.concatenate %48, %49 in 1 : vector<1x1xf32>, vector<1x511xf32> -> vector<1x512xf32>
    %cst_6 = arith.constant 0.000000e+00 : f32
    %51 = vector.broadcast %cst_6 : f32 to vector<1x512xf32>
    %52 = arith.select %8, %50, %51 : vector<1x512xi1>, vector<1x512xf32>
    %53 = vector.extract_strided_slice %1 {offsets = [0, 3], sizes = [2, 1], strides = [1, 1]} : vector<2x9xf32> to vector<2x1xf32>
    %54 = vector.broadcast %53 : vector<2x1xf32> to vector<2x512xf32>
    %55 = vector.broadcast %52 : vector<1x512xf32> to vector<2x512xf32>
    %56 = arith.mulf %54, %55 : vector<2x512xf32>
    %57 = arith.addf %47, %56 : vector<2x512xf32>
    %58 = vector.extract_strided_slice %1 {offsets = [0, 4], sizes = [2, 1], strides = [1, 1]} : vector<2x9xf32> to vector<2x1xf32>
    %59 = vector.broadcast %58 : vector<2x1xf32> to vector<2x512xf32>
    %60 = vector.broadcast %0 : vector<1x512xf32> to vector<2x512xf32>
    %61 = arith.mulf %59, %60 : vector<2x512xf32>
    %62 = arith.addf %57, %61 : vector<2x512xf32>
    %63 = vector.extract_strided_slice %0 {offsets = [0, 1], sizes = [1, 511], strides = [1, 1]} : vector<1x512xf32> to vector<1x511xf32>
    %64 = vector.extract_strided_slice %0 {offsets = [0, 0], sizes = [1, 1], strides = [1, 1]} : vector<1x512xf32> to vector<1x1xf32>
    %65 = tpu.concatenate %63, %64 in 1 : vector<1x511xf32>, vector<1x1xf32> -> vector<1x512xf32>
    %cst_7 = arith.constant 0.000000e+00 : f32
    %66 = vector.broadcast %cst_7 : f32 to vector<1x512xf32>
    %67 = arith.select %10, %65, %66 : vector<1x512xi1>, vector<1x512xf32>
    %68 = vector.extract_strided_slice %1 {offsets = [0, 5], sizes = [2, 1], strides = [1, 1]} : vector<2x9xf32> to vector<2x1xf32>
    %69 = vector.broadcast %68 : vector<2x1xf32> to vector<2x512xf32>
    %70 = vector.broadcast %67 : vector<1x512xf32> to vector<2x512xf32>
    %71 = arith.mulf %69, %70 : vector<2x512xf32>
    %72 = arith.addf %62, %71 : vector<2x512xf32>
    %73 = vector.extract_strided_slice %0 {offsets = [0, 15], sizes = [1, 497], strides = [1, 1]} : vector<1x512xf32> to vector<1x497xf32>
    %74 = vector.extract_strided_slice %0 {offsets = [0, 0], sizes = [1, 15], strides = [1, 1]} : vector<1x512xf32> to vector<1x15xf32>
    %75 = tpu.concatenate %73, %74 in 1 : vector<1x497xf32>, vector<1x15xf32> -> vector<1x512xf32>
    %76 = arith.andi %14, %8 : vector<1x512xi1>
    %cst_8 = arith.constant 0.000000e+00 : f32
    %77 = vector.broadcast %cst_8 : f32 to vector<1x512xf32>
    %78 = arith.select %76, %75, %77 : vector<1x512xi1>, vector<1x512xf32>
    %79 = vector.extract_strided_slice %1 {offsets = [0, 6], sizes = [2, 1], strides = [1, 1]} : vector<2x9xf32> to vector<2x1xf32>
    %80 = vector.broadcast %79 : vector<2x1xf32> to vector<2x512xf32>
    %81 = vector.broadcast %78 : vector<1x512xf32> to vector<2x512xf32>
    %82 = arith.mulf %80, %81 : vector<2x512xf32>
    %83 = arith.addf %72, %82 : vector<2x512xf32>
    %84 = vector.extract_strided_slice %0 {offsets = [0, 16], sizes = [1, 496], strides = [1, 1]} : vector<1x512xf32> to vector<1x496xf32>
    %85 = vector.extract_strided_slice %0 {offsets = [0, 0], sizes = [1, 16], strides = [1, 1]} : vector<1x512xf32> to vector<1x16xf32>
    %86 = tpu.concatenate %84, %85 in 1 : vector<1x496xf32>, vector<1x16xf32> -> vector<1x512xf32>
    %cst_9 = arith.constant 0.000000e+00 : f32
    %87 = vector.broadcast %cst_9 : f32 to vector<1x512xf32>
    %88 = arith.select %14, %86, %87 : vector<1x512xi1>, vector<1x512xf32>
    %89 = vector.extract_strided_slice %1 {offsets = [0, 7], sizes = [2, 1], strides = [1, 1]} : vector<2x9xf32> to vector<2x1xf32>
    %90 = vector.broadcast %89 : vector<2x1xf32> to vector<2x512xf32>
    %91 = vector.broadcast %88 : vector<1x512xf32> to vector<2x512xf32>
    %92 = arith.mulf %90, %91 : vector<2x512xf32>
    %93 = arith.addf %83, %92 : vector<2x512xf32>
    %94 = vector.extract_strided_slice %0 {offsets = [0, 17], sizes = [1, 495], strides = [1, 1]} : vector<1x512xf32> to vector<1x495xf32>
    %95 = vector.extract_strided_slice %0 {offsets = [0, 0], sizes = [1, 17], strides = [1, 1]} : vector<1x512xf32> to vector<1x17xf32>
    %96 = tpu.concatenate %94, %95 in 1 : vector<1x495xf32>, vector<1x17xf32> -> vector<1x512xf32>
    %97 = arith.andi %14, %10 : vector<1x512xi1>
    %cst_10 = arith.constant 0.000000e+00 : f32
    %98 = vector.broadcast %cst_10 : f32 to vector<1x512xf32>
    %99 = arith.select %97, %96, %98 : vector<1x512xi1>, vector<1x512xf32>
    %100 = vector.extract_strided_slice %1 {offsets = [0, 8], sizes = [2, 1], strides = [1, 1]} : vector<2x9xf32> to vector<2x1xf32>
    %101 = vector.broadcast %100 : vector<2x1xf32> to vector<2x512xf32>
    %102 = vector.broadcast %99 : vector<1x512xf32> to vector<2x512xf32>
    %103 = arith.mulf %101, %102 : vector<2x512xf32>
    %104 = arith.addf %93, %103 : vector<2x512xf32>
    %cst_11 = arith.constant dense<0.000000e+00> : vector<2xf32>
    %105 = vector.multi_reduction <add>, %104, %cst_11 [1] : vector<2x512xf32> to vector<2xf32>
    %106 = vector.shape_cast %105 : vector<2xf32> to vector<2x1xf32>
    %cst_12 = arith.constant 0.001953125 : f32
    %107 = vector.broadcast %cst_12 : f32 to vector<2x1xf32>
    %108 = arith.mulf %106, %107 : vector<2x1xf32>
    %109 = arith.mulf %104, %104 : vector<2x512xf32>
    %cst_13 = arith.constant dense<0.000000e+00> : vector<2xf32>
    %110 = vector.multi_reduction <add>, %109, %cst_13 [1] : vector<2x512xf32> to vector<2xf32>
    %111 = vector.shape_cast %110 : vector<2xf32> to vector<2x1xf32>
    %cst_14 = arith.constant 0.001953125 : f32
    %112 = vector.broadcast %cst_14 : f32 to vector<2x1xf32>
    %113 = arith.mulf %111, %112 : vector<2x1xf32>
    %114 = arith.mulf %108, %108 : vector<2x1xf32>
    %115 = arith.subf %113, %114 : vector<2x1xf32>
    %c0_15 = arith.constant 0 : index
    %c0_16 = arith.constant 0 : index
    %116 = vector.load %arg2[%c0_15, %c0_16] : memref<2x1xf32, #tpu.memory_space<vmem>>, vector<2x1xf32>
    %cst_17 = arith.constant 9.99999974E-6 : f32
    %117 = vector.broadcast %cst_17 : f32 to vector<2x1xf32>
    %118 = arith.addf %115, %117 : vector<2x1xf32>
    %119 = math.rsqrt %118 : vector<2x1xf32>
    %120 = arith.mulf %116, %119 : vector<2x1xf32>
    %c0_18 = arith.constant 0 : index
    %c0_19 = arith.constant 0 : index
    %121 = vector.load %arg3[%c0_18, %c0_19] : memref<2x1xf32, #tpu.memory_space<vmem>>, vector<2x1xf32>
    %122 = arith.mulf %108, %120 : vector<2x1xf32>
    %123 = arith.subf %121, %122 : vector<2x1xf32>
    %124 = vector.broadcast %120 : vector<2x1xf32> to vector<2x512xf32>
    %125 = arith.mulf %104, %124 : vector<2x512xf32>
    %126 = vector.broadcast %123 : vector<2x1xf32> to vector<2x512xf32>
    %127 = arith.addf %125, %126 : vector<2x512xf32>
    %cst_20 = arith.constant 0.000000e+00 : f32
    %128 = vector.broadcast %cst_20 : f32 to vector<2x512xf32>
    %129 = arith.maximumf %127, %128 : vector<2x512xf32>
    %130 = vector.extract_strided_slice %129 {offsets = [0, 1], sizes = [2, 511], strides = [1, 1]} : vector<2x512xf32> to vector<2x511xf32>
    %131 = vector.extract_strided_slice %129 {offsets = [0, 0], sizes = [2, 1], strides = [1, 1]} : vector<2x512xf32> to vector<2x1xf32>
    %132 = tpu.concatenate %130, %131 in 1 : vector<2x511xf32>, vector<2x1xf32> -> vector<2x512xf32>
    %133 = arith.maximumf %129, %132 : vector<2x512xf32>
    %134 = vector.extract_strided_slice %133 {offsets = [0, 16], sizes = [2, 496], strides = [1, 1]} : vector<2x512xf32> to vector<2x496xf32>
    %135 = vector.extract_strided_slice %133 {offsets = [0, 0], sizes = [2, 16], strides = [1, 1]} : vector<2x512xf32> to vector<2x16xf32>
    %136 = tpu.concatenate %134, %135 in 1 : vector<2x496xf32>, vector<2x16xf32> -> vector<2x512xf32>
    %137 = arith.maximumf %133, %136 : vector<2x512xf32>
    %c0_21 = arith.constant 0 : index
    %c0_22 = arith.constant 0 : index
    %138 = vector.load %arg4[%c0_21, %c0_22] : memref<512x128xbf16, #tpu.memory_space<vmem>>, vector<512x128xbf16>
    %139 = arith.extf %138 : vector<512x128xbf16> to vector<512x128xf32>
    %cst_23 = arith.constant dense<0.000000e+00> : vector<2x128xf32>
    %140 = tpu.matmul %137, %139, %cst_23 {dimension_numbers = #tpu.dot_dimension_numbers<[1], [0], [0], [1], [0, 0, 1, 1], [], []>} : vector<2x512xf32>, vector<512x128xf32>, vector<2x128xf32> -> vector<2x128xf32>
    %c0_24 = arith.constant 0 : index
    %c0_25 = arith.constant 0 : index
    %141 = vector.load %arg5[%c0_24, %c0_25] : memref<4x18xf32, #tpu.memory_space<vmem>>, vector<4x18xf32>
    %142 = tpu.iota {dimensions = array<i32: 1>} : vector<2x128xi32>
    %c7_i32 = arith.constant 7 : i32
    %143 = vector.broadcast %c7_i32 : i32 to vector<2x128xi32>
    %144 = arith.andi %142, %143 : vector<2x128xi32>
    %c63_i32 = arith.constant 63 : i32
    %145 = vector.broadcast %c63_i32 : i32 to vector<2x128xi32>
    %146 = arith.andi %142, %145 : vector<2x128xi32>
    %c1_i32_26 = arith.constant 1 : i32
    %147 = vector.broadcast %c1_i32_26 : i32 to vector<2x128xi32>
    %148 = arith.cmpi sge, %144, %147 : vector<2x128xi32>
    %c6_i32 = arith.constant 6 : i32
    %149 = vector.broadcast %c6_i32 : i32 to vector<2x128xi32>
    %150 = arith.cmpi sle, %144, %149 : vector<2x128xi32>
    %c8_i32 = arith.constant 8 : i32
    %151 = vector.broadcast %c8_i32 : i32 to vector<2x128xi32>
    %152 = arith.cmpi sge, %146, %151 : vector<2x128xi32>
    %c55_i32 = arith.constant 55 : i32
    %153 = vector.broadcast %c55_i32 : i32 to vector<2x128xi32>
    %154 = arith.cmpi sle, %146, %153 : vector<2x128xi32>
    %cst_27 = arith.constant 0.000000e+00 : f32
    %155 = vector.broadcast %cst_27 : f32 to vector<4x128xf32>
    %156 = vector.extract_strided_slice %140 {offsets = [0, 119], sizes = [2, 9], strides = [1, 1]} : vector<2x128xf32> to vector<2x9xf32>
    %157 = vector.extract_strided_slice %140 {offsets = [0, 0], sizes = [2, 119], strides = [1, 1]} : vector<2x128xf32> to vector<2x119xf32>
    %158 = tpu.concatenate %156, %157 in 1 : vector<2x9xf32>, vector<2x119xf32> -> vector<2x128xf32>
    %159 = arith.andi %152, %148 : vector<2x128xi1>
    %cst_28 = arith.constant 0.000000e+00 : f32
    %160 = vector.broadcast %cst_28 : f32 to vector<2x128xf32>
    %161 = arith.select %159, %158, %160 : vector<2x128xi1>, vector<2x128xf32>
    %162 = vector.extract_strided_slice %141 {offsets = [0, 0], sizes = [4, 1], strides = [1, 1]} : vector<4x18xf32> to vector<4x1xf32>
    %163 = vector.extract_strided_slice %161 {offsets = [0, 0], sizes = [1, 128], strides = [1, 1]} : vector<2x128xf32> to vector<1x128xf32>
    %164 = vector.broadcast %162 : vector<4x1xf32> to vector<4x128xf32>
    %165 = vector.broadcast %163 : vector<1x128xf32> to vector<4x128xf32>
    %166 = arith.mulf %164, %165 : vector<4x128xf32>
    %167 = arith.addf %155, %166 : vector<4x128xf32>
    %168 = vector.extract_strided_slice %141 {offsets = [0, 1], sizes = [4, 1], strides = [1, 1]} : vector<4x18xf32> to vector<4x1xf32>
    %169 = vector.extract_strided_slice %161 {offsets = [1, 0], sizes = [1, 128], strides = [1, 1]} : vector<2x128xf32> to vector<1x128xf32>
    %170 = vector.broadcast %168 : vector<4x1xf32> to vector<4x128xf32>
    %171 = vector.broadcast %169 : vector<1x128xf32> to vector<4x128xf32>
    %172 = arith.mulf %170, %171 : vector<4x128xf32>
    %173 = arith.addf %167, %172 : vector<4x128xf32>
    %174 = vector.extract_strided_slice %140 {offsets = [0, 120], sizes = [2, 8], strides = [1, 1]} : vector<2x128xf32> to vector<2x8xf32>
    %175 = vector.extract_strided_slice %140 {offsets = [0, 0], sizes = [2, 120], strides = [1, 1]} : vector<2x128xf32> to vector<2x120xf32>
    %176 = tpu.concatenate %174, %175 in 1 : vector<2x8xf32>, vector<2x120xf32> -> vector<2x128xf32>
    %cst_29 = arith.constant 0.000000e+00 : f32
    %177 = vector.broadcast %cst_29 : f32 to vector<2x128xf32>
    %178 = arith.select %152, %176, %177 : vector<2x128xi1>, vector<2x128xf32>
    %179 = vector.extract_strided_slice %141 {offsets = [0, 2], sizes = [4, 1], strides = [1, 1]} : vector<4x18xf32> to vector<4x1xf32>
    %180 = vector.extract_strided_slice %178 {offsets = [0, 0], sizes = [1, 128], strides = [1, 1]} : vector<2x128xf32> to vector<1x128xf32>
    %181 = vector.broadcast %179 : vector<4x1xf32> to vector<4x128xf32>
    %182 = vector.broadcast %180 : vector<1x128xf32> to vector<4x128xf32>
    %183 = arith.mulf %181, %182 : vector<4x128xf32>
    %184 = arith.addf %173, %183 : vector<4x128xf32>
    %185 = vector.extract_strided_slice %141 {offsets = [0, 3], sizes = [4, 1], strides = [1, 1]} : vector<4x18xf32> to vector<4x1xf32>
    %186 = vector.extract_strided_slice %178 {offsets = [1, 0], sizes = [1, 128], strides = [1, 1]} : vector<2x128xf32> to vector<1x128xf32>
    %187 = vector.broadcast %185 : vector<4x1xf32> to vector<4x128xf32>
    %188 = vector.broadcast %186 : vector<1x128xf32> to vector<4x128xf32>
    %189 = arith.mulf %187, %188 : vector<4x128xf32>
    %190 = arith.addf %184, %189 : vector<4x128xf32>
    %191 = vector.extract_strided_slice %140 {offsets = [0, 121], sizes = [2, 7], strides = [1, 1]} : vector<2x128xf32> to vector<2x7xf32>
    %192 = vector.extract_strided_slice %140 {offsets = [0, 0], sizes = [2, 121], strides = [1, 1]} : vector<2x128xf32> to vector<2x121xf32>
    %193 = tpu.concatenate %191, %192 in 1 : vector<2x7xf32>, vector<2x121xf32> -> vector<2x128xf32>
    %194 = arith.andi %152, %150 : vector<2x128xi1>
    %cst_30 = arith.constant 0.000000e+00 : f32
    %195 = vector.broadcast %cst_30 : f32 to vector<2x128xf32>
    %196 = arith.select %194, %193, %195 : vector<2x128xi1>, vector<2x128xf32>
    %197 = vector.extract_strided_slice %141 {offsets = [0, 4], sizes = [4, 1], strides = [1, 1]} : vector<4x18xf32> to vector<4x1xf32>
    %198 = vector.extract_strided_slice %196 {offsets = [0, 0], sizes = [1, 128], strides = [1, 1]} : vector<2x128xf32> to vector<1x128xf32>
    %199 = vector.broadcast %197 : vector<4x1xf32> to vector<4x128xf32>
    %200 = vector.broadcast %198 : vector<1x128xf32> to vector<4x128xf32>
    %201 = arith.mulf %199, %200 : vector<4x128xf32>
    %202 = arith.addf %190, %201 : vector<4x128xf32>
    %203 = vector.extract_strided_slice %141 {offsets = [0, 5], sizes = [4, 1], strides = [1, 1]} : vector<4x18xf32> to vector<4x1xf32>
    %204 = vector.extract_strided_slice %196 {offsets = [1, 0], sizes = [1, 128], strides = [1, 1]} : vector<2x128xf32> to vector<1x128xf32>
    %205 = vector.broadcast %203 : vector<4x1xf32> to vector<4x128xf32>
    %206 = vector.broadcast %204 : vector<1x128xf32> to vector<4x128xf32>
    %207 = arith.mulf %205, %206 : vector<4x128xf32>
    %208 = arith.addf %202, %207 : vector<4x128xf32>
    %209 = vector.extract_strided_slice %140 {offsets = [0, 127], sizes = [2, 1], strides = [1, 1]} : vector<2x128xf32> to vector<2x1xf32>
    %210 = vector.extract_strided_slice %140 {offsets = [0, 0], sizes = [2, 127], strides = [1, 1]} : vector<2x128xf32> to vector<2x127xf32>
    %211 = tpu.concatenate %209, %210 in 1 : vector<2x1xf32>, vector<2x127xf32> -> vector<2x128xf32>
    %cst_31 = arith.constant 0.000000e+00 : f32
    %212 = vector.broadcast %cst_31 : f32 to vector<2x128xf32>
    %213 = arith.select %148, %211, %212 : vector<2x128xi1>, vector<2x128xf32>
    %214 = vector.extract_strided_slice %141 {offsets = [0, 6], sizes = [4, 1], strides = [1, 1]} : vector<4x18xf32> to vector<4x1xf32>
    %215 = vector.extract_strided_slice %213 {offsets = [0, 0], sizes = [1, 128], strides = [1, 1]} : vector<2x128xf32> to vector<1x128xf32>
    %216 = vector.broadcast %214 : vector<4x1xf32> to vector<4x128xf32>
    %217 = vector.broadcast %215 : vector<1x128xf32> to vector<4x128xf32>
    %218 = arith.mulf %216, %217 : vector<4x128xf32>
    %219 = arith.addf %208, %218 : vector<4x128xf32>
    %220 = vector.extract_strided_slice %141 {offsets = [0, 7], sizes = [4, 1], strides = [1, 1]} : vector<4x18xf32> to vector<4x1xf32>
    %221 = vector.extract_strided_slice %213 {offsets = [1, 0], sizes = [1, 128], strides = [1, 1]} : vector<2x128xf32> to vector<1x128xf32>
    %222 = vector.broadcast %220 : vector<4x1xf32> to vector<4x128xf32>
    %223 = vector.broadcast %221 : vector<1x128xf32> to vector<4x128xf32>
    %224 = arith.mulf %222, %223 : vector<4x128xf32>
    %225 = arith.addf %219, %224 : vector<4x128xf32>
    %226 = vector.extract_strided_slice %141 {offsets = [0, 8], sizes = [4, 1], strides = [1, 1]} : vector<4x18xf32> to vector<4x1xf32>
    %227 = vector.extract_strided_slice %140 {offsets = [0, 0], sizes = [1, 128], strides = [1, 1]} : vector<2x128xf32> to vector<1x128xf32>
    %228 = vector.broadcast %226 : vector<4x1xf32> to vector<4x128xf32>
    %229 = vector.broadcast %227 : vector<1x128xf32> to vector<4x128xf32>
    %230 = arith.mulf %228, %229 : vector<4x128xf32>
    %231 = arith.addf %225, %230 : vector<4x128xf32>
    %232 = vector.extract_strided_slice %141 {offsets = [0, 9], sizes = [4, 1], strides = [1, 1]} : vector<4x18xf32> to vector<4x1xf32>
    %233 = vector.extract_strided_slice %140 {offsets = [1, 0], sizes = [1, 128], strides = [1, 1]} : vector<2x128xf32> to vector<1x128xf32>
    %234 = vector.broadcast %232 : vector<4x1xf32> to vector<4x128xf32>
    %235 = vector.broadcast %233 : vector<1x128xf32> to vector<4x128xf32>
    %236 = arith.mulf %234, %235 : vector<4x128xf32>
    %237 = arith.addf %231, %236 : vector<4x128xf32>
    %238 = vector.extract_strided_slice %140 {offsets = [0, 1], sizes = [2, 127], strides = [1, 1]} : vector<2x128xf32> to vector<2x127xf32>
    %239 = vector.extract_strided_slice %140 {offsets = [0, 0], sizes = [2, 1], strides = [1, 1]} : vector<2x128xf32> to vector<2x1xf32>
    %240 = tpu.concatenate %238, %239 in 1 : vector<2x127xf32>, vector<2x1xf32> -> vector<2x128xf32>
    %cst_32 = arith.constant 0.000000e+00 : f32
    %241 = vector.broadcast %cst_32 : f32 to vector<2x128xf32>
    %242 = arith.select %150, %240, %241 : vector<2x128xi1>, vector<2x128xf32>
    %243 = vector.extract_strided_slice %141 {offsets = [0, 10], sizes = [4, 1], strides = [1, 1]} : vector<4x18xf32> to vector<4x1xf32>
    %244 = vector.extract_strided_slice %242 {offsets = [0, 0], sizes = [1, 128], strides = [1, 1]} : vector<2x128xf32> to vector<1x128xf32>
    %245 = vector.broadcast %243 : vector<4x1xf32> to vector<4x128xf32>
    %246 = vector.broadcast %244 : vector<1x128xf32> to vector<4x128xf32>
    %247 = arith.mulf %245, %246 : vector<4x128xf32>
    %248 = arith.addf %237, %247 : vector<4x128xf32>
    %249 = vector.extract_strided_slice %141 {offsets = [0, 11], sizes = [4, 1], strides = [1, 1]} : vector<4x18xf32> to vector<4x1xf32>
    %250 = vector.extract_strided_slice %242 {offsets = [1, 0], sizes = [1, 128], strides = [1, 1]} : vector<2x128xf32> to vector<1x128xf32>
    %251 = vector.broadcast %249 : vector<4x1xf32> to vector<4x128xf32>
    %252 = vector.broadcast %250 : vector<1x128xf32> to vector<4x128xf32>
    %253 = arith.mulf %251, %252 : vector<4x128xf32>
    %254 = arith.addf %248, %253 : vector<4x128xf32>
    %255 = vector.extract_strided_slice %140 {offsets = [0, 7], sizes = [2, 121], strides = [1, 1]} : vector<2x128xf32> to vector<2x121xf32>
    %256 = vector.extract_strided_slice %140 {offsets = [0, 0], sizes = [2, 7], strides = [1, 1]} : vector<2x128xf32> to vector<2x7xf32>
    %257 = tpu.concatenate %255, %256 in 1 : vector<2x121xf32>, vector<2x7xf32> -> vector<2x128xf32>
    %258 = arith.andi %154, %148 : vector<2x128xi1>
    %cst_33 = arith.constant 0.000000e+00 : f32
    %259 = vector.broadcast %cst_33 : f32 to vector<2x128xf32>
    %260 = arith.select %258, %257, %259 : vector<2x128xi1>, vector<2x128xf32>
    %261 = vector.extract_strided_slice %141 {offsets = [0, 12], sizes = [4, 1], strides = [1, 1]} : vector<4x18xf32> to vector<4x1xf32>
    %262 = vector.extract_strided_slice %260 {offsets = [0, 0], sizes = [1, 128], strides = [1, 1]} : vector<2x128xf32> to vector<1x128xf32>
    %263 = vector.broadcast %261 : vector<4x1xf32> to vector<4x128xf32>
    %264 = vector.broadcast %262 : vector<1x128xf32> to vector<4x128xf32>
    %265 = arith.mulf %263, %264 : vector<4x128xf32>
    %266 = arith.addf %254, %265 : vector<4x128xf32>
    %267 = vector.extract_strided_slice %141 {offsets = [0, 13], sizes = [4, 1], strides = [1, 1]} : vector<4x18xf32> to vector<4x1xf32>
    %268 = vector.extract_strided_slice %260 {offsets = [1, 0], sizes = [1, 128], strides = [1, 1]} : vector<2x128xf32> to vector<1x128xf32>
    %269 = vector.broadcast %267 : vector<4x1xf32> to vector<4x128xf32>
    %270 = vector.broadcast %268 : vector<1x128xf32> to vector<4x128xf32>
    %271 = arith.mulf %269, %270 : vector<4x128xf32>
    %272 = arith.addf %266, %271 : vector<4x128xf32>
    %273 = vector.extract_strided_slice %140 {offsets = [0, 8], sizes = [2, 120], strides = [1, 1]} : vector<2x128xf32> to vector<2x120xf32>
    %274 = vector.extract_strided_slice %140 {offsets = [0, 0], sizes = [2, 8], strides = [1, 1]} : vector<2x128xf32> to vector<2x8xf32>
    %275 = tpu.concatenate %273, %274 in 1 : vector<2x120xf32>, vector<2x8xf32> -> vector<2x128xf32>
    %cst_34 = arith.constant 0.000000e+00 : f32
    %276 = vector.broadcast %cst_34 : f32 to vector<2x128xf32>
    %277 = arith.select %154, %275, %276 : vector<2x128xi1>, vector<2x128xf32>
    %278 = vector.extract_strided_slice %141 {offsets = [0, 14], sizes = [4, 1], strides = [1, 1]} : vector<4x18xf32> to vector<4x1xf32>
    %279 = vector.extract_strided_slice %277 {offsets = [0, 0], sizes = [1, 128], strides = [1, 1]} : vector<2x128xf32> to vector<1x128xf32>
    %280 = vector.broadcast %278 : vector<4x1xf32> to vector<4x128xf32>
    %281 = vector.broadcast %279 : vector<1x128xf32> to vector<4x128xf32>
    %282 = arith.mulf %280, %281 : vector<4x128xf32>
    %283 = arith.addf %272, %282 : vector<4x128xf32>
    %284 = vector.extract_strided_slice %141 {offsets = [0, 15], sizes = [4, 1], strides = [1, 1]} : vector<4x18xf32> to vector<4x1xf32>
    %285 = vector.extract_strided_slice %277 {offsets = [1, 0], sizes = [1, 128], strides = [1, 1]} : vector<2x128xf32> to vector<1x128xf32>
    %286 = vector.broadcast %284 : vector<4x1xf32> to vector<4x128xf32>
    %287 = vector.broadcast %285 : vector<1x128xf32> to vector<4x128xf32>
    %288 = arith.mulf %286, %287 : vector<4x128xf32>
    %289 = arith.addf %283, %288 : vector<4x128xf32>
    %290 = vector.extract_strided_slice %140 {offsets = [0, 9], sizes = [2, 119], strides = [1, 1]} : vector<2x128xf32> to vector<2x119xf32>
    %291 = vector.extract_strided_slice %140 {offsets = [0, 0], sizes = [2, 9], strides = [1, 1]} : vector<2x128xf32> to vector<2x9xf32>
    %292 = tpu.concatenate %290, %291 in 1 : vector<2x119xf32>, vector<2x9xf32> -> vector<2x128xf32>
    %293 = arith.andi %154, %150 : vector<2x128xi1>
    %cst_35 = arith.constant 0.000000e+00 : f32
    %294 = vector.broadcast %cst_35 : f32 to vector<2x128xf32>
    %295 = arith.select %293, %292, %294 : vector<2x128xi1>, vector<2x128xf32>
    %296 = vector.extract_strided_slice %141 {offsets = [0, 16], sizes = [4, 1], strides = [1, 1]} : vector<4x18xf32> to vector<4x1xf32>
    %297 = vector.extract_strided_slice %295 {offsets = [0, 0], sizes = [1, 128], strides = [1, 1]} : vector<2x128xf32> to vector<1x128xf32>
    %298 = vector.broadcast %296 : vector<4x1xf32> to vector<4x128xf32>
    %299 = vector.broadcast %297 : vector<1x128xf32> to vector<4x128xf32>
    %300 = arith.mulf %298, %299 : vector<4x128xf32>
    %301 = arith.addf %289, %300 : vector<4x128xf32>
    %302 = vector.extract_strided_slice %141 {offsets = [0, 17], sizes = [4, 1], strides = [1, 1]} : vector<4x18xf32> to vector<4x1xf32>
    %303 = vector.extract_strided_slice %295 {offsets = [1, 0], sizes = [1, 128], strides = [1, 1]} : vector<2x128xf32> to vector<1x128xf32>
    %304 = vector.broadcast %302 : vector<4x1xf32> to vector<4x128xf32>
    %305 = vector.broadcast %303 : vector<1x128xf32> to vector<4x128xf32>
    %306 = arith.mulf %304, %305 : vector<4x128xf32>
    %307 = arith.addf %301, %306 : vector<4x128xf32>
    %cst_36 = arith.constant dense<0.000000e+00> : vector<4xf32>
    %308 = vector.multi_reduction <add>, %307, %cst_36 [1] : vector<4x128xf32> to vector<4xf32>
    %309 = vector.shape_cast %308 : vector<4xf32> to vector<4x1xf32>
    %cst_37 = arith.constant 7.812500e-03 : f32
    %310 = vector.broadcast %cst_37 : f32 to vector<4x1xf32>
    %311 = arith.mulf %309, %310 : vector<4x1xf32>
    %312 = arith.mulf %307, %307 : vector<4x128xf32>
    %cst_38 = arith.constant dense<0.000000e+00> : vector<4xf32>
    %313 = vector.multi_reduction <add>, %312, %cst_38 [1] : vector<4x128xf32> to vector<4xf32>
    %314 = vector.shape_cast %313 : vector<4xf32> to vector<4x1xf32>
    %cst_39 = arith.constant 7.812500e-03 : f32
    %315 = vector.broadcast %cst_39 : f32 to vector<4x1xf32>
    %316 = arith.mulf %314, %315 : vector<4x1xf32>
    %317 = arith.mulf %311, %311 : vector<4x1xf32>
    %318 = arith.subf %316, %317 : vector<4x1xf32>
    %c0_40 = arith.constant 0 : index
    %c0_41 = arith.constant 0 : index
    %319 = vector.load %arg6[%c0_40, %c0_41] : memref<4x1xf32, #tpu.memory_space<vmem>>, vector<4x1xf32>
    %cst_42 = arith.constant 9.99999974E-6 : f32
    %320 = vector.broadcast %cst_42 : f32 to vector<4x1xf32>
    %321 = arith.addf %318, %320 : vector<4x1xf32>
    %322 = math.rsqrt %321 : vector<4x1xf32>
    %323 = arith.mulf %319, %322 : vector<4x1xf32>
    %c0_43 = arith.constant 0 : index
    %c0_44 = arith.constant 0 : index
    %324 = vector.load %arg7[%c0_43, %c0_44] : memref<4x1xf32, #tpu.memory_space<vmem>>, vector<4x1xf32>
    %325 = arith.mulf %311, %323 : vector<4x1xf32>
    %326 = arith.subf %324, %325 : vector<4x1xf32>
    %327 = vector.broadcast %323 : vector<4x1xf32> to vector<4x128xf32>
    %328 = arith.mulf %307, %327 : vector<4x128xf32>
    %329 = vector.broadcast %326 : vector<4x1xf32> to vector<4x128xf32>
    %330 = arith.addf %328, %329 : vector<4x128xf32>
    %cst_45 = arith.constant 0.000000e+00 : f32
    %331 = vector.broadcast %cst_45 : f32 to vector<4x128xf32>
    %332 = arith.maximumf %330, %331 : vector<4x128xf32>
    %333 = vector.extract_strided_slice %332 {offsets = [0, 1], sizes = [4, 127], strides = [1, 1]} : vector<4x128xf32> to vector<4x127xf32>
    %334 = vector.extract_strided_slice %332 {offsets = [0, 0], sizes = [4, 1], strides = [1, 1]} : vector<4x128xf32> to vector<4x1xf32>
    %335 = tpu.concatenate %333, %334 in 1 : vector<4x127xf32>, vector<4x1xf32> -> vector<4x128xf32>
    %336 = arith.maximumf %332, %335 : vector<4x128xf32>
    %337 = vector.extract_strided_slice %336 {offsets = [0, 8], sizes = [4, 120], strides = [1, 1]} : vector<4x128xf32> to vector<4x120xf32>
    %338 = vector.extract_strided_slice %336 {offsets = [0, 0], sizes = [4, 8], strides = [1, 1]} : vector<4x128xf32> to vector<4x8xf32>
    %339 = tpu.concatenate %337, %338 in 1 : vector<4x120xf32>, vector<4x8xf32> -> vector<4x128xf32>
    %340 = arith.maximumf %336, %339 : vector<4x128xf32>
    %c0_46 = arith.constant 0 : index
    %c0_47 = arith.constant 0 : index
    %341 = vector.load %arg8[%c0_46, %c0_47] : memref<128x32xbf16, #tpu.memory_space<vmem>>, vector<128x32xbf16>
    %342 = arith.extf %341 : vector<128x32xbf16> to vector<128x32xf32>
    %cst_48 = arith.constant dense<0.000000e+00> : vector<4x32xf32>
    %343 = tpu.matmul %340, %342, %cst_48 {dimension_numbers = #tpu.dot_dimension_numbers<[1], [0], [0], [1], [0, 0, 1, 1], [], []>} : vector<4x128xf32>, vector<128x32xf32>, vector<4x32xf32> -> vector<4x32xf32>
    %c0_49 = arith.constant 0 : index
    %c0_50 = arith.constant 0 : index
    %344 = vector.load %arg9[%c0_49, %c0_50] : memref<8x36xf32, #tpu.memory_space<vmem>>, vector<8x36xf32>
    %cst_51 = arith.constant 0.000000e+00 : f32
    %345 = vector.broadcast %cst_51 : f32 to vector<8x32xf32>
    %c0_52 = arith.constant 0 : index
    %c0_53 = arith.constant 0 : index
    %c0_54 = arith.constant 0 : index
    %346 = vector.load %arg12[%c0_52, %c0_53, %c0_54] : memref<9x32x32xbf16, #tpu.memory_space<vmem>>, vector<1x32x32xbf16>
    %347 = vector.shape_cast %346 : vector<1x32x32xbf16> to vector<32x32xbf16>
    %348 = arith.extf %347 : vector<32x32xbf16> to vector<32x32xf32>
    %cst_55 = arith.constant dense<0.000000e+00> : vector<4x32xf32>
    %349 = tpu.matmul %343, %348, %cst_55 {dimension_numbers = #tpu.dot_dimension_numbers<[1], [0], [0], [1], [0, 0, 1, 1], [], []>} : vector<4x32xf32>, vector<32x32xf32>, vector<4x32xf32> -> vector<4x32xf32>
    %350 = vector.extract_strided_slice %344 {offsets = [0, 0], sizes = [8, 4], strides = [1, 1]} : vector<8x36xf32> to vector<8x4xf32>
    %cst_56 = arith.constant dense<0.000000e+00> : vector<8x32xf32>
    %351 = tpu.matmul %350, %349, %cst_56 {dimension_numbers = #tpu.dot_dimension_numbers<[1], [0], [0], [1], [0, 0, 1, 1], [], []>} : vector<8x4xf32>, vector<4x32xf32>, vector<8x32xf32> -> vector<8x32xf32>
    %352 = arith.addf %345, %351 : vector<8x32xf32>
    %c1 = arith.constant 1 : index
    %c0_57 = arith.constant 0 : index
    %c0_58 = arith.constant 0 : index
    %353 = vector.load %arg12[%c1, %c0_57, %c0_58] : memref<9x32x32xbf16, #tpu.memory_space<vmem>>, vector<1x32x32xbf16>
    %354 = vector.shape_cast %353 : vector<1x32x32xbf16> to vector<32x32xbf16>
    %355 = arith.extf %354 : vector<32x32xbf16> to vector<32x32xf32>
    %cst_59 = arith.constant dense<0.000000e+00> : vector<4x32xf32>
    %356 = tpu.matmul %343, %355, %cst_59 {dimension_numbers = #tpu.dot_dimension_numbers<[1], [0], [0], [1], [0, 0, 1, 1], [], []>} : vector<4x32xf32>, vector<32x32xf32>, vector<4x32xf32> -> vector<4x32xf32>
    %357 = vector.extract_strided_slice %344 {offsets = [0, 4], sizes = [8, 4], strides = [1, 1]} : vector<8x36xf32> to vector<8x4xf32>
    %cst_60 = arith.constant dense<0.000000e+00> : vector<8x32xf32>
    %358 = tpu.matmul %357, %356, %cst_60 {dimension_numbers = #tpu.dot_dimension_numbers<[1], [0], [0], [1], [0, 0, 1, 1], [], []>} : vector<8x4xf32>, vector<4x32xf32>, vector<8x32xf32> -> vector<8x32xf32>
    %359 = arith.addf %352, %358 : vector<8x32xf32>
    %c2 = arith.constant 2 : index
    %c0_61 = arith.constant 0 : index
    %c0_62 = arith.constant 0 : index
    %360 = vector.load %arg12[%c2, %c0_61, %c0_62] : memref<9x32x32xbf16, #tpu.memory_space<vmem>>, vector<1x32x32xbf16>
    %361 = vector.shape_cast %360 : vector<1x32x32xbf16> to vector<32x32xbf16>
    %362 = arith.extf %361 : vector<32x32xbf16> to vector<32x32xf32>
    %cst_63 = arith.constant dense<0.000000e+00> : vector<4x32xf32>
    %363 = tpu.matmul %343, %362, %cst_63 {dimension_numbers = #tpu.dot_dimension_numbers<[1], [0], [0], [1], [0, 0, 1, 1], [], []>} : vector<4x32xf32>, vector<32x32xf32>, vector<4x32xf32> -> vector<4x32xf32>
    %364 = vector.extract_strided_slice %344 {offsets = [0, 8], sizes = [8, 4], strides = [1, 1]} : vector<8x36xf32> to vector<8x4xf32>
    %cst_64 = arith.constant dense<0.000000e+00> : vector<8x32xf32>
    %365 = tpu.matmul %364, %363, %cst_64 {dimension_numbers = #tpu.dot_dimension_numbers<[1], [0], [0], [1], [0, 0, 1, 1], [], []>} : vector<8x4xf32>, vector<4x32xf32>, vector<8x32xf32> -> vector<8x32xf32>
    %366 = arith.addf %359, %365 : vector<8x32xf32>
    %c3 = arith.constant 3 : index
    %c0_65 = arith.constant 0 : index
    %c0_66 = arith.constant 0 : index
    %367 = vector.load %arg12[%c3, %c0_65, %c0_66] : memref<9x32x32xbf16, #tpu.memory_space<vmem>>, vector<1x32x32xbf16>
    %368 = vector.shape_cast %367 : vector<1x32x32xbf16> to vector<32x32xbf16>
    %369 = arith.extf %368 : vector<32x32xbf16> to vector<32x32xf32>
    %cst_67 = arith.constant dense<0.000000e+00> : vector<4x32xf32>
    %370 = tpu.matmul %343, %369, %cst_67 {dimension_numbers = #tpu.dot_dimension_numbers<[1], [0], [0], [1], [0, 0, 1, 1], [], []>} : vector<4x32xf32>, vector<32x32xf32>, vector<4x32xf32> -> vector<4x32xf32>
    %371 = vector.extract_strided_slice %344 {offsets = [0, 12], sizes = [8, 4], strides = [1, 1]} : vector<8x36xf32> to vector<8x4xf32>
    %cst_68 = arith.constant dense<0.000000e+00> : vector<8x32xf32>
    %372 = tpu.matmul %371, %370, %cst_68 {dimension_numbers = #tpu.dot_dimension_numbers<[1], [0], [0], [1], [0, 0, 1, 1], [], []>} : vector<8x4xf32>, vector<4x32xf32>, vector<8x32xf32> -> vector<8x32xf32>
    %373 = arith.addf %366, %372 : vector<8x32xf32>
    %c4 = arith.constant 4 : index
    %c0_69 = arith.constant 0 : index
    %c0_70 = arith.constant 0 : index
    %374 = vector.load %arg12[%c4, %c0_69, %c0_70] : memref<9x32x32xbf16, #tpu.memory_space<vmem>>, vector<1x32x32xbf16>
    %375 = vector.shape_cast %374 : vector<1x32x32xbf16> to vector<32x32xbf16>
    %376 = arith.extf %375 : vector<32x32xbf16> to vector<32x32xf32>
    %cst_71 = arith.constant dense<0.000000e+00> : vector<4x32xf32>
    %377 = tpu.matmul %343, %376, %cst_71 {dimension_numbers = #tpu.dot_dimension_numbers<[1], [0], [0], [1], [0, 0, 1, 1], [], []>} : vector<4x32xf32>, vector<32x32xf32>, vector<4x32xf32> -> vector<4x32xf32>
    %378 = vector.extract_strided_slice %344 {offsets = [0, 16], sizes = [8, 4], strides = [1, 1]} : vector<8x36xf32> to vector<8x4xf32>
    %cst_72 = arith.constant dense<0.000000e+00> : vector<8x32xf32>
    %379 = tpu.matmul %378, %377, %cst_72 {dimension_numbers = #tpu.dot_dimension_numbers<[1], [0], [0], [1], [0, 0, 1, 1], [], []>} : vector<8x4xf32>, vector<4x32xf32>, vector<8x32xf32> -> vector<8x32xf32>
    %380 = arith.addf %373, %379 : vector<8x32xf32>
    %c5 = arith.constant 5 : index
    %c0_73 = arith.constant 0 : index
    %c0_74 = arith.constant 0 : index
    %381 = vector.load %arg12[%c5, %c0_73, %c0_74] : memref<9x32x32xbf16, #tpu.memory_space<vmem>>, vector<1x32x32xbf16>
    %382 = vector.shape_cast %381 : vector<1x32x32xbf16> to vector<32x32xbf16>
    %383 = arith.extf %382 : vector<32x32xbf16> to vector<32x32xf32>
    %cst_75 = arith.constant dense<0.000000e+00> : vector<4x32xf32>
    %384 = tpu.matmul %343, %383, %cst_75 {dimension_numbers = #tpu.dot_dimension_numbers<[1], [0], [0], [1], [0, 0, 1, 1], [], []>} : vector<4x32xf32>, vector<32x32xf32>, vector<4x32xf32> -> vector<4x32xf32>
    %385 = vector.extract_strided_slice %344 {offsets = [0, 20], sizes = [8, 4], strides = [1, 1]} : vector<8x36xf32> to vector<8x4xf32>
    %cst_76 = arith.constant dense<0.000000e+00> : vector<8x32xf32>
    %386 = tpu.matmul %385, %384, %cst_76 {dimension_numbers = #tpu.dot_dimension_numbers<[1], [0], [0], [1], [0, 0, 1, 1], [], []>} : vector<8x4xf32>, vector<4x32xf32>, vector<8x32xf32> -> vector<8x32xf32>
    %387 = arith.addf %380, %386 : vector<8x32xf32>
    %c6 = arith.constant 6 : index
    %c0_77 = arith.constant 0 : index
    %c0_78 = arith.constant 0 : index
    %388 = vector.load %arg12[%c6, %c0_77, %c0_78] : memref<9x32x32xbf16, #tpu.memory_space<vmem>>, vector<1x32x32xbf16>
    %389 = vector.shape_cast %388 : vector<1x32x32xbf16> to vector<32x32xbf16>
    %390 = arith.extf %389 : vector<32x32xbf16> to vector<32x32xf32>
    %cst_79 = arith.constant dense<0.000000e+00> : vector<4x32xf32>
    %391 = tpu.matmul %343, %390, %cst_79 {dimension_numbers = #tpu.dot_dimension_numbers<[1], [0], [0], [1], [0, 0, 1, 1], [], []>} : vector<4x32xf32>, vector<32x32xf32>, vector<4x32xf32> -> vector<4x32xf32>
    %392 = vector.extract_strided_slice %344 {offsets = [0, 24], sizes = [8, 4], strides = [1, 1]} : vector<8x36xf32> to vector<8x4xf32>
    %cst_80 = arith.constant dense<0.000000e+00> : vector<8x32xf32>
    %393 = tpu.matmul %392, %391, %cst_80 {dimension_numbers = #tpu.dot_dimension_numbers<[1], [0], [0], [1], [0, 0, 1, 1], [], []>} : vector<8x4xf32>, vector<4x32xf32>, vector<8x32xf32> -> vector<8x32xf32>
    %394 = arith.addf %387, %393 : vector<8x32xf32>
    %c7 = arith.constant 7 : index
    %c0_81 = arith.constant 0 : index
    %c0_82 = arith.constant 0 : index
    %395 = vector.load %arg12[%c7, %c0_81, %c0_82] : memref<9x32x32xbf16, #tpu.memory_space<vmem>>, vector<1x32x32xbf16>
    %396 = vector.shape_cast %395 : vector<1x32x32xbf16> to vector<32x32xbf16>
    %397 = arith.extf %396 : vector<32x32xbf16> to vector<32x32xf32>
    %cst_83 = arith.constant dense<0.000000e+00> : vector<4x32xf32>
    %398 = tpu.matmul %343, %397, %cst_83 {dimension_numbers = #tpu.dot_dimension_numbers<[1], [0], [0], [1], [0, 0, 1, 1], [], []>} : vector<4x32xf32>, vector<32x32xf32>, vector<4x32xf32> -> vector<4x32xf32>
    %399 = vector.extract_strided_slice %344 {offsets = [0, 28], sizes = [8, 4], strides = [1, 1]} : vector<8x36xf32> to vector<8x4xf32>
    %cst_84 = arith.constant dense<0.000000e+00> : vector<8x32xf32>
    %400 = tpu.matmul %399, %398, %cst_84 {dimension_numbers = #tpu.dot_dimension_numbers<[1], [0], [0], [1], [0, 0, 1, 1], [], []>} : vector<8x4xf32>, vector<4x32xf32>, vector<8x32xf32> -> vector<8x32xf32>
    %401 = arith.addf %394, %400 : vector<8x32xf32>
    %c8 = arith.constant 8 : index
    %c0_85 = arith.constant 0 : index
    %c0_86 = arith.constant 0 : index
    %402 = vector.load %arg12[%c8, %c0_85, %c0_86] : memref<9x32x32xbf16, #tpu.memory_space<vmem>>, vector<1x32x32xbf16>
    %403 = vector.shape_cast %402 : vector<1x32x32xbf16> to vector<32x32xbf16>
    %404 = arith.extf %403 : vector<32x32xbf16> to vector<32x32xf32>
    %cst_87 = arith.constant dense<0.000000e+00> : vector<4x32xf32>
    %405 = tpu.matmul %343, %404, %cst_87 {dimension_numbers = #tpu.dot_dimension_numbers<[1], [0], [0], [1], [0, 0, 1, 1], [], []>} : vector<4x32xf32>, vector<32x32xf32>, vector<4x32xf32> -> vector<4x32xf32>
    %406 = vector.extract_strided_slice %344 {offsets = [0, 32], sizes = [8, 4], strides = [1, 1]} : vector<8x36xf32> to vector<8x4xf32>
    %cst_88 = arith.constant dense<0.000000e+00> : vector<8x32xf32>
    %407 = tpu.matmul %406, %405, %cst_88 {dimension_numbers = #tpu.dot_dimension_numbers<[1], [0], [0], [1], [0, 0, 1, 1], [], []>} : vector<8x4xf32>, vector<4x32xf32>, vector<8x32xf32> -> vector<8x32xf32>
    %408 = arith.addf %401, %407 : vector<8x32xf32>
    %cst_89 = arith.constant dense<0.000000e+00> : vector<8xf32>
    %409 = vector.multi_reduction <add>, %408, %cst_89 [1] : vector<8x32xf32> to vector<8xf32>
    %410 = vector.shape_cast %409 : vector<8xf32> to vector<8x1xf32>
    %cst_90 = arith.constant 3.125000e-02 : f32
    %411 = vector.broadcast %cst_90 : f32 to vector<8x1xf32>
    %412 = arith.mulf %410, %411 : vector<8x1xf32>
    %413 = arith.mulf %408, %408 : vector<8x32xf32>
    %cst_91 = arith.constant dense<0.000000e+00> : vector<8xf32>
    %414 = vector.multi_reduction <add>, %413, %cst_91 [1] : vector<8x32xf32> to vector<8xf32>
    %415 = vector.shape_cast %414 : vector<8xf32> to vector<8x1xf32>
    %cst_92 = arith.constant 3.125000e-02 : f32
    %416 = vector.broadcast %cst_92 : f32 to vector<8x1xf32>
    %417 = arith.mulf %415, %416 : vector<8x1xf32>
    %418 = arith.mulf %412, %412 : vector<8x1xf32>
    %419 = arith.subf %417, %418 : vector<8x1xf32>
    %c0_93 = arith.constant 0 : index
    %c0_94 = arith.constant 0 : index
    %420 = vector.load %arg10[%c0_93, %c0_94] : memref<8x1xf32, #tpu.memory_space<vmem>>, vector<8x1xf32>
    %cst_95 = arith.constant 9.99999974E-6 : f32
    %421 = vector.broadcast %cst_95 : f32 to vector<8x1xf32>
    %422 = arith.addf %419, %421 : vector<8x1xf32>
    %423 = math.rsqrt %422 : vector<8x1xf32>
    %424 = arith.mulf %420, %423 : vector<8x1xf32>
    %c0_96 = arith.constant 0 : index
    %c0_97 = arith.constant 0 : index
    %425 = vector.load %arg11[%c0_96, %c0_97] : memref<8x1xf32, #tpu.memory_space<vmem>>, vector<8x1xf32>
    %426 = arith.mulf %412, %424 : vector<8x1xf32>
    %427 = arith.subf %425, %426 : vector<8x1xf32>
    %428 = vector.broadcast %424 : vector<8x1xf32> to vector<8x32xf32>
    %429 = arith.mulf %408, %428 : vector<8x32xf32>
    %430 = vector.broadcast %427 : vector<8x1xf32> to vector<8x32xf32>
    %431 = arith.addf %429, %430 : vector<8x32xf32>
    %cst_98 = arith.constant 0.000000e+00 : f32
    %432 = vector.broadcast %cst_98 : f32 to vector<8x32xf32>
    %433 = arith.maximumf %431, %432 : vector<8x32xf32>
    %c0_99 = arith.constant 0 : index
    %c0_100 = arith.constant 0 : index
    %c0_101 = arith.constant 0 : index
    %434 = vector.load %arg13[%c0_99, %c0_100, %c0_101] : memref<4x32x8xbf16, #tpu.memory_space<vmem>>, vector<1x32x8xbf16>
    %435 = vector.shape_cast %434 : vector<1x32x8xbf16> to vector<32x8xbf16>
    %436 = arith.extf %435 : vector<32x8xbf16> to vector<32x8xf32>
    %cst_102 = arith.constant dense<0.000000e+00> : vector<8x8xf32>
    %437 = tpu.matmul %433, %436, %cst_102 {dimension_numbers = #tpu.dot_dimension_numbers<[1], [0], [0], [1], [0, 0, 1, 1], [], []>} : vector<8x32xf32>, vector<32x8xf32>, vector<8x8xf32> -> vector<8x8xf32>
    %c1_103 = arith.constant 1 : index
    %c0_104 = arith.constant 0 : index
    %c0_105 = arith.constant 0 : index
    %438 = vector.load %arg13[%c1_103, %c0_104, %c0_105] : memref<4x32x8xbf16, #tpu.memory_space<vmem>>, vector<1x32x8xbf16>
    %439 = vector.shape_cast %438 : vector<1x32x8xbf16> to vector<32x8xbf16>
    %440 = arith.extf %439 : vector<32x8xbf16> to vector<32x8xf32>
    %cst_106 = arith.constant dense<0.000000e+00> : vector<8x8xf32>
    %441 = tpu.matmul %433, %440, %cst_106 {dimension_numbers = #tpu.dot_dimension_numbers<[1], [0], [0], [1], [0, 0, 1, 1], [], []>} : vector<8x32xf32>, vector<32x8xf32>, vector<8x8xf32> -> vector<8x8xf32>
    %442 = arith.maximumf %437, %441 : vector<8x8xf32>
    %c2_107 = arith.constant 2 : index
    %c0_108 = arith.constant 0 : index
    %c0_109 = arith.constant 0 : index
    %443 = vector.load %arg13[%c2_107, %c0_108, %c0_109] : memref<4x32x8xbf16, #tpu.memory_space<vmem>>, vector<1x32x8xbf16>
    %444 = vector.shape_cast %443 : vector<1x32x8xbf16> to vector<32x8xbf16>
    %445 = arith.extf %444 : vector<32x8xbf16> to vector<32x8xf32>
    %cst_110 = arith.constant dense<0.000000e+00> : vector<8x8xf32>
    %446 = tpu.matmul %433, %445, %cst_110 {dimension_numbers = #tpu.dot_dimension_numbers<[1], [0], [0], [1], [0, 0, 1, 1], [], []>} : vector<8x32xf32>, vector<32x8xf32>, vector<8x8xf32> -> vector<8x8xf32>
    %447 = arith.maximumf %442, %446 : vector<8x8xf32>
    %c3_111 = arith.constant 3 : index
    %c0_112 = arith.constant 0 : index
    %c0_113 = arith.constant 0 : index
    %448 = vector.load %arg13[%c3_111, %c0_112, %c0_113] : memref<4x32x8xbf16, #tpu.memory_space<vmem>>, vector<1x32x8xbf16>
    %449 = vector.shape_cast %448 : vector<1x32x8xbf16> to vector<32x8xbf16>
    %450 = arith.extf %449 : vector<32x8xbf16> to vector<32x8xf32>
    %cst_114 = arith.constant dense<0.000000e+00> : vector<8x8xf32>
    %451 = tpu.matmul %433, %450, %cst_114 {dimension_numbers = #tpu.dot_dimension_numbers<[1], [0], [0], [1], [0, 0, 1, 1], [], []>} : vector<8x32xf32>, vector<32x8xf32>, vector<8x8xf32> -> vector<8x8xf32>
    %452 = arith.maximumf %447, %451 : vector<8x8xf32>
    %c0_115 = arith.constant 0 : index
    %c0_116 = arith.constant 0 : index
    %453 = vector.load %arg14[%c0_115, %c0_116] : memref<16x72xf32, #tpu.memory_space<vmem>>, vector<16x72xf32>
    %cst_117 = arith.constant 0.000000e+00 : f32
    %454 = vector.broadcast %cst_117 : f32 to vector<16x8xf32>
    %c0_118 = arith.constant 0 : index
    %c0_119 = arith.constant 0 : index
    %c0_120 = arith.constant 0 : index
    %455 = vector.load %arg17[%c0_118, %c0_119, %c0_120] : memref<9x8x8xbf16, #tpu.memory_space<vmem>>, vector<1x8x8xbf16>
    %456 = vector.shape_cast %455 : vector<1x8x8xbf16> to vector<8x8xbf16>
    %457 = arith.extf %456 : vector<8x8xbf16> to vector<8x8xf32>
    %cst_121 = arith.constant dense<0.000000e+00> : vector<8x8xf32>
    %458 = tpu.matmul %452, %457, %cst_121 {dimension_numbers = #tpu.dot_dimension_numbers<[1], [0], [0], [1], [0, 0, 1, 1], [], []>} : vector<8x8xf32>, vector<8x8xf32>, vector<8x8xf32> -> vector<8x8xf32>
    %459 = vector.extract_strided_slice %453 {offsets = [0, 0], sizes = [16, 8], strides = [1, 1]} : vector<16x72xf32> to vector<16x8xf32>
    %cst_122 = arith.constant dense<0.000000e+00> : vector<16x8xf32>
    %460 = tpu.matmul %459, %458, %cst_122 {dimension_numbers = #tpu.dot_dimension_numbers<[1], [0], [0], [1], [0, 0, 1, 1], [], []>} : vector<16x8xf32>, vector<8x8xf32>, vector<16x8xf32> -> vector<16x8xf32>
    %461 = arith.addf %454, %460 : vector<16x8xf32>
    %c1_123 = arith.constant 1 : index
    %c0_124 = arith.constant 0 : index
    %c0_125 = arith.constant 0 : index
    %462 = vector.load %arg17[%c1_123, %c0_124, %c0_125] : memref<9x8x8xbf16, #tpu.memory_space<vmem>>, vector<1x8x8xbf16>
    %463 = vector.shape_cast %462 : vector<1x8x8xbf16> to vector<8x8xbf16>
    %464 = arith.extf %463 : vector<8x8xbf16> to vector<8x8xf32>
    %cst_126 = arith.constant dense<0.000000e+00> : vector<8x8xf32>
    %465 = tpu.matmul %452, %464, %cst_126 {dimension_numbers = #tpu.dot_dimension_numbers<[1], [0], [0], [1], [0, 0, 1, 1], [], []>} : vector<8x8xf32>, vector<8x8xf32>, vector<8x8xf32> -> vector<8x8xf32>
    %466 = vector.extract_strided_slice %453 {offsets = [0, 8], sizes = [16, 8], strides = [1, 1]} : vector<16x72xf32> to vector<16x8xf32>
    %cst_127 = arith.constant dense<0.000000e+00> : vector<16x8xf32>
    %467 = tpu.matmul %466, %465, %cst_127 {dimension_numbers = #tpu.dot_dimension_numbers<[1], [0], [0], [1], [0, 0, 1, 1], [], []>} : vector<16x8xf32>, vector<8x8xf32>, vector<16x8xf32> -> vector<16x8xf32>
    %468 = arith.addf %461, %467 : vector<16x8xf32>
    %c2_128 = arith.constant 2 : index
    %c0_129 = arith.constant 0 : index
    %c0_130 = arith.constant 0 : index
    %469 = vector.load %arg17[%c2_128, %c0_129, %c0_130] : memref<9x8x8xbf16, #tpu.memory_space<vmem>>, vector<1x8x8xbf16>
    %470 = vector.shape_cast %469 : vector<1x8x8xbf16> to vector<8x8xbf16>
    %471 = arith.extf %470 : vector<8x8xbf16> to vector<8x8xf32>
    %cst_131 = arith.constant dense<0.000000e+00> : vector<8x8xf32>
    %472 = tpu.matmul %452, %471, %cst_131 {dimension_numbers = #tpu.dot_dimension_numbers<[1], [0], [0], [1], [0, 0, 1, 1], [], []>} : vector<8x8xf32>, vector<8x8xf32>, vector<8x8xf32> -> vector<8x8xf32>
    %473 = vector.extract_strided_slice %453 {offsets = [0, 16], sizes = [16, 8], strides = [1, 1]} : vector<16x72xf32> to vector<16x8xf32>
    %cst_132 = arith.constant dense<0.000000e+00> : vector<16x8xf32>
    %474 = tpu.matmul %473, %472, %cst_132 {dimension_numbers = #tpu.dot_dimension_numbers<[1], [0], [0], [1], [0, 0, 1, 1], [], []>} : vector<16x8xf32>, vector<8x8xf32>, vector<16x8xf32> -> vector<16x8xf32>
    %475 = arith.addf %468, %474 : vector<16x8xf32>
    %c3_133 = arith.constant 3 : index
    %c0_134 = arith.constant 0 : index
    %c0_135 = arith.constant 0 : index
    %476 = vector.load %arg17[%c3_133, %c0_134, %c0_135] : memref<9x8x8xbf16, #tpu.memory_space<vmem>>, vector<1x8x8xbf16>
    %477 = vector.shape_cast %476 : vector<1x8x8xbf16> to vector<8x8xbf16>
    %478 = arith.extf %477 : vector<8x8xbf16> to vector<8x8xf32>
    %cst_136 = arith.constant dense<0.000000e+00> : vector<8x8xf32>
    %479 = tpu.matmul %452, %478, %cst_136 {dimension_numbers = #tpu.dot_dimension_numbers<[1], [0], [0], [1], [0, 0, 1, 1], [], []>} : vector<8x8xf32>, vector<8x8xf32>, vector<8x8xf32> -> vector<8x8xf32>
    %480 = vector.extract_strided_slice %453 {offsets = [0, 24], sizes = [16, 8], strides = [1, 1]} : vector<16x72xf32> to vector<16x8xf32>
    %cst_137 = arith.constant dense<0.000000e+00> : vector<16x8xf32>
    %481 = tpu.matmul %480, %479, %cst_137 {dimension_numbers = #tpu.dot_dimension_numbers<[1], [0], [0], [1], [0, 0, 1, 1], [], []>} : vector<16x8xf32>, vector<8x8xf32>, vector<16x8xf32> -> vector<16x8xf32>
    %482 = arith.addf %475, %481 : vector<16x8xf32>
    %c4_138 = arith.constant 4 : index
    %c0_139 = arith.constant 0 : index
    %c0_140 = arith.constant 0 : index
    %483 = vector.load %arg17[%c4_138, %c0_139, %c0_140] : memref<9x8x8xbf16, #tpu.memory_space<vmem>>, vector<1x8x8xbf16>
    %484 = vector.shape_cast %483 : vector<1x8x8xbf16> to vector<8x8xbf16>
    %485 = arith.extf %484 : vector<8x8xbf16> to vector<8x8xf32>
    %cst_141 = arith.constant dense<0.000000e+00> : vector<8x8xf32>
    %486 = tpu.matmul %452, %485, %cst_141 {dimension_numbers = #tpu.dot_dimension_numbers<[1], [0], [0], [1], [0, 0, 1, 1], [], []>} : vector<8x8xf32>, vector<8x8xf32>, vector<8x8xf32> -> vector<8x8xf32>
    %487 = vector.extract_strided_slice %453 {offsets = [0, 32], sizes = [16, 8], strides = [1, 1]} : vector<16x72xf32> to vector<16x8xf32>
    %cst_142 = arith.constant dense<0.000000e+00> : vector<16x8xf32>
    %488 = tpu.matmul %487, %486, %cst_142 {dimension_numbers = #tpu.dot_dimension_numbers<[1], [0], [0], [1], [0, 0, 1, 1], [], []>} : vector<16x8xf32>, vector<8x8xf32>, vector<16x8xf32> -> vector<16x8xf32>
    %489 = arith.addf %482, %488 : vector<16x8xf32>
    %c5_143 = arith.constant 5 : index
    %c0_144 = arith.constant 0 : index
    %c0_145 = arith.constant 0 : index
    %490 = vector.load %arg17[%c5_143, %c0_144, %c0_145] : memref<9x8x8xbf16, #tpu.memory_space<vmem>>, vector<1x8x8xbf16>
    %491 = vector.shape_cast %490 : vector<1x8x8xbf16> to vector<8x8xbf16>
    %492 = arith.extf %491 : vector<8x8xbf16> to vector<8x8xf32>
    %cst_146 = arith.constant dense<0.000000e+00> : vector<8x8xf32>
    %493 = tpu.matmul %452, %492, %cst_146 {dimension_numbers = #tpu.dot_dimension_numbers<[1], [0], [0], [1], [0, 0, 1, 1], [], []>} : vector<8x8xf32>, vector<8x8xf32>, vector<8x8xf32> -> vector<8x8xf32>
    %494 = vector.extract_strided_slice %453 {offsets = [0, 40], sizes = [16, 8], strides = [1, 1]} : vector<16x72xf32> to vector<16x8xf32>
    %cst_147 = arith.constant dense<0.000000e+00> : vector<16x8xf32>
    %495 = tpu.matmul %494, %493, %cst_147 {dimension_numbers = #tpu.dot_dimension_numbers<[1], [0], [0], [1], [0, 0, 1, 1], [], []>} : vector<16x8xf32>, vector<8x8xf32>, vector<16x8xf32> -> vector<16x8xf32>
    %496 = arith.addf %489, %495 : vector<16x8xf32>
    %c6_148 = arith.constant 6 : index
    %c0_149 = arith.constant 0 : index
    %c0_150 = arith.constant 0 : index
    %497 = vector.load %arg17[%c6_148, %c0_149, %c0_150] : memref<9x8x8xbf16, #tpu.memory_space<vmem>>, vector<1x8x8xbf16>
    %498 = vector.shape_cast %497 : vector<1x8x8xbf16> to vector<8x8xbf16>
    %499 = arith.extf %498 : vector<8x8xbf16> to vector<8x8xf32>
    %cst_151 = arith.constant dense<0.000000e+00> : vector<8x8xf32>
    %500 = tpu.matmul %452, %499, %cst_151 {dimension_numbers = #tpu.dot_dimension_numbers<[1], [0], [0], [1], [0, 0, 1, 1], [], []>} : vector<8x8xf32>, vector<8x8xf32>, vector<8x8xf32> -> vector<8x8xf32>
    %501 = vector.extract_strided_slice %453 {offsets = [0, 48], sizes = [16, 8], strides = [1, 1]} : vector<16x72xf32> to vector<16x8xf32>
    %cst_152 = arith.constant dense<0.000000e+00> : vector<16x8xf32>
    %502 = tpu.matmul %501, %500, %cst_152 {dimension_numbers = #tpu.dot_dimension_numbers<[1], [0], [0], [1], [0, 0, 1, 1], [], []>} : vector<16x8xf32>, vector<8x8xf32>, vector<16x8xf32> -> vector<16x8xf32>
    %503 = arith.addf %496, %502 : vector<16x8xf32>
    %c7_153 = arith.constant 7 : index
    %c0_154 = arith.constant 0 : index
    %c0_155 = arith.constant 0 : index
    %504 = vector.load %arg17[%c7_153, %c0_154, %c0_155] : memref<9x8x8xbf16, #tpu.memory_space<vmem>>, vector<1x8x8xbf16>
    %505 = vector.shape_cast %504 : vector<1x8x8xbf16> to vector<8x8xbf16>
    %506 = arith.extf %505 : vector<8x8xbf16> to vector<8x8xf32>
    %cst_156 = arith.constant dense<0.000000e+00> : vector<8x8xf32>
    %507 = tpu.matmul %452, %506, %cst_156 {dimension_numbers = #tpu.dot_dimension_numbers<[1], [0], [0], [1], [0, 0, 1, 1], [], []>} : vector<8x8xf32>, vector<8x8xf32>, vector<8x8xf32> -> vector<8x8xf32>
    %508 = vector.extract_strided_slice %453 {offsets = [0, 56], sizes = [16, 8], strides = [1, 1]} : vector<16x72xf32> to vector<16x8xf32>
    %cst_157 = arith.constant dense<0.000000e+00> : vector<16x8xf32>
    %509 = tpu.matmul %508, %507, %cst_157 {dimension_numbers = #tpu.dot_dimension_numbers<[1], [0], [0], [1], [0, 0, 1, 1], [], []>} : vector<16x8xf32>, vector<8x8xf32>, vector<16x8xf32> -> vector<16x8xf32>
    %510 = arith.addf %503, %509 : vector<16x8xf32>
    %c8_158 = arith.constant 8 : index
    %c0_159 = arith.constant 0 : index
    %c0_160 = arith.constant 0 : index
    %511 = vector.load %arg17[%c8_158, %c0_159, %c0_160] : memref<9x8x8xbf16, #tpu.memory_space<vmem>>, vector<1x8x8xbf16>
    %512 = vector.shape_cast %511 : vector<1x8x8xbf16> to vector<8x8xbf16>
    %513 = arith.extf %512 : vector<8x8xbf16> to vector<8x8xf32>
    %cst_161 = arith.constant dense<0.000000e+00> : vector<8x8xf32>
    %514 = tpu.matmul %452, %513, %cst_161 {dimension_numbers = #tpu.dot_dimension_numbers<[1], [0], [0], [1], [0, 0, 1, 1], [], []>} : vector<8x8xf32>, vector<8x8xf32>, vector<8x8xf32> -> vector<8x8xf32>
    %515 = vector.extract_strided_slice %453 {offsets = [0, 64], sizes = [16, 8], strides = [1, 1]} : vector<16x72xf32> to vector<16x8xf32>
    %cst_162 = arith.constant dense<0.000000e+00> : vector<16x8xf32>
    %516 = tpu.matmul %515, %514, %cst_162 {dimension_numbers = #tpu.dot_dimension_numbers<[1], [0], [0], [1], [0, 0, 1, 1], [], []>} : vector<16x8xf32>, vector<8x8xf32>, vector<16x8xf32> -> vector<16x8xf32>
    %517 = arith.addf %510, %516 : vector<16x8xf32>
    %cst_163 = arith.constant dense<0.000000e+00> : vector<16xf32>
    %518 = vector.multi_reduction <add>, %517, %cst_163 [1] : vector<16x8xf32> to vector<16xf32>
    %519 = vector.shape_cast %518 : vector<16xf32> to vector<16x1xf32>
    %cst_164 = arith.constant 1.250000e-01 : f32
    %520 = vector.broadcast %cst_164 : f32 to vector<16x1xf32>
    %521 = arith.mulf %519, %520 : vector<16x1xf32>
    %522 = arith.mulf %517, %517 : vector<16x8xf32>
    %cst_165 = arith.constant dense<0.000000e+00> : vector<16xf32>
    %523 = vector.multi_reduction <add>, %522, %cst_165 [1] : vector<16x8xf32> to vector<16xf32>
    %524 = vector.shape_cast %523 : vector<16xf32> to vector<16x1xf32>
    %cst_166 = arith.constant 1.250000e-01 : f32
    %525 = vector.broadcast %cst_166 : f32 to vector<16x1xf32>
    %526 = arith.mulf %524, %525 : vector<16x1xf32>
    %527 = arith.mulf %521, %521 : vector<16x1xf32>
    %528 = arith.subf %526, %527 : vector<16x1xf32>
    %c0_167 = arith.constant 0 : index
    %c0_168 = arith.constant 0 : index
    %529 = vector.load %arg15[%c0_167, %c0_168] : memref<16x1xf32, #tpu.memory_space<vmem>>, vector<16x1xf32>
    %cst_169 = arith.constant 9.99999974E-6 : f32
    %530 = vector.broadcast %cst_169 : f32 to vector<16x1xf32>
    %531 = arith.addf %528, %530 : vector<16x1xf32>
    %532 = math.rsqrt %531 : vector<16x1xf32>
    %533 = arith.mulf %529, %532 : vector<16x1xf32>
    %c0_170 = arith.constant 0 : index
    %c0_171 = arith.constant 0 : index
    %534 = vector.load %arg16[%c0_170, %c0_171] : memref<16x1xf32, #tpu.memory_space<vmem>>, vector<16x1xf32>
    %535 = arith.mulf %521, %533 : vector<16x1xf32>
    %536 = arith.subf %534, %535 : vector<16x1xf32>
    %537 = vector.broadcast %533 : vector<16x1xf32> to vector<16x8xf32>
    %538 = arith.mulf %517, %537 : vector<16x8xf32>
    %539 = vector.broadcast %536 : vector<16x1xf32> to vector<16x8xf32>
    %540 = arith.addf %538, %539 : vector<16x8xf32>
    %cst_172 = arith.constant 0.000000e+00 : f32
    %541 = vector.broadcast %cst_172 : f32 to vector<16x8xf32>
    %542 = arith.maximumf %540, %541 : vector<16x8xf32>
    %c0_173 = arith.constant 0 : index
    %c0_174 = arith.constant 0 : index
    %c0_175 = arith.constant 0 : index
    %543 = vector.load %arg18[%c0_173, %c0_174, %c0_175] : memref<4x8x2xbf16, #tpu.memory_space<vmem>>, vector<1x8x2xbf16>
    %544 = vector.shape_cast %543 : vector<1x8x2xbf16> to vector<8x2xbf16>
    %545 = arith.extf %544 : vector<8x2xbf16> to vector<8x2xf32>
    %cst_176 = arith.constant dense<0.000000e+00> : vector<16x2xf32>
    %546 = tpu.matmul %542, %545, %cst_176 {dimension_numbers = #tpu.dot_dimension_numbers<[1], [0], [0], [1], [0, 0, 1, 1], [], []>} : vector<16x8xf32>, vector<8x2xf32>, vector<16x2xf32> -> vector<16x2xf32>
    %c1_177 = arith.constant 1 : index
    %c0_178 = arith.constant 0 : index
    %c0_179 = arith.constant 0 : index
    %547 = vector.load %arg18[%c1_177, %c0_178, %c0_179] : memref<4x8x2xbf16, #tpu.memory_space<vmem>>, vector<1x8x2xbf16>
    %548 = vector.shape_cast %547 : vector<1x8x2xbf16> to vector<8x2xbf16>
    %549 = arith.extf %548 : vector<8x2xbf16> to vector<8x2xf32>
    %cst_180 = arith.constant dense<0.000000e+00> : vector<16x2xf32>
    %550 = tpu.matmul %542, %549, %cst_180 {dimension_numbers = #tpu.dot_dimension_numbers<[1], [0], [0], [1], [0, 0, 1, 1], [], []>} : vector<16x8xf32>, vector<8x2xf32>, vector<16x2xf32> -> vector<16x2xf32>
    %551 = arith.maximumf %546, %550 : vector<16x2xf32>
    %c2_181 = arith.constant 2 : index
    %c0_182 = arith.constant 0 : index
    %c0_183 = arith.constant 0 : index
    %552 = vector.load %arg18[%c2_181, %c0_182, %c0_183] : memref<4x8x2xbf16, #tpu.memory_space<vmem>>, vector<1x8x2xbf16>
    %553 = vector.shape_cast %552 : vector<1x8x2xbf16> to vector<8x2xbf16>
    %554 = arith.extf %553 : vector<8x2xbf16> to vector<8x2xf32>
    %cst_184 = arith.constant dense<0.000000e+00> : vector<16x2xf32>
    %555 = tpu.matmul %542, %554, %cst_184 {dimension_numbers = #tpu.dot_dimension_numbers<[1], [0], [0], [1], [0, 0, 1, 1], [], []>} : vector<16x8xf32>, vector<8x2xf32>, vector<16x2xf32> -> vector<16x2xf32>
    %556 = arith.maximumf %551, %555 : vector<16x2xf32>
    %c3_185 = arith.constant 3 : index
    %c0_186 = arith.constant 0 : index
    %c0_187 = arith.constant 0 : index
    %557 = vector.load %arg18[%c3_185, %c0_186, %c0_187] : memref<4x8x2xbf16, #tpu.memory_space<vmem>>, vector<1x8x2xbf16>
    %558 = vector.shape_cast %557 : vector<1x8x2xbf16> to vector<8x2xbf16>
    %559 = arith.extf %558 : vector<8x2xbf16> to vector<8x2xf32>
    %cst_188 = arith.constant dense<0.000000e+00> : vector<16x2xf32>
    %560 = tpu.matmul %542, %559, %cst_188 {dimension_numbers = #tpu.dot_dimension_numbers<[1], [0], [0], [1], [0, 0, 1, 1], [], []>} : vector<16x8xf32>, vector<8x2xf32>, vector<16x2xf32> -> vector<16x2xf32>
    %561 = arith.maximumf %556, %560 : vector<16x2xf32>
    %c0_189 = arith.constant 0 : index
    %c0_190 = arith.constant 0 : index
    %562 = vector.load %arg19[%c0_189, %c0_190] : memref<10x16xf32, #tpu.memory_space<vmem>>, vector<10x16xf32>
    %cst_191 = arith.constant dense<0.000000e+00> : vector<10x2xf32>
    %563 = tpu.matmul %562, %561, %cst_191 {dimension_numbers = #tpu.dot_dimension_numbers<[1], [0], [0], [1], [0, 0, 1, 1], [], []>} : vector<10x16xf32>, vector<16x2xf32>, vector<10x2xf32> -> vector<10x2xf32>
    %c0_192 = arith.constant 0 : index
    %c0_193 = arith.constant 0 : index
    %564 = vector.load %arg20[%c0_192, %c0_193] : memref<10x1xf32, #tpu.memory_space<vmem>>, vector<10x1xf32>
    %565 = vector.broadcast %564 : vector<10x1xf32> to vector<10x2xf32>
    %566 = arith.addf %563, %565 : vector<10x2xf32>
    %c0_194 = arith.constant 0 : index
    %c0_195 = arith.constant 0 : index
    %567 = vector.load %arg21[%c0_194, %c0_195] : memref<10x2xf32, #tpu.memory_space<vmem>>, vector<10x2xf32>
    tpu.vector_store %arg21[%c0_194, %c0_195], %566 {strides = array<i32>} : memref<10x2xf32, #tpu.memory_space<vmem>>, vector<10x2xf32>,
    return
  }
}

</mosaic_0001>

<bundles_post_ra>
// kernel: tpu_custom_call.1
= control target key start
LH: loop header
LB: loop body
LE: loop exit
PB: predicated region body
PF: predicated region fallthrough
CT: control target
= control target key end

     0   :  { %s7457_s0 = inlined_call_operand.hbm [shape: f32[1,512], index: 0, kind: input, shape index: {}]   ;;  %s7458_s1 = inlined_call_operand.hbm [shape: f32[2,9], index: 1, kind: input, shape index: {}]   ;;  %s7459_s2 = inlined_call_operand.vmem [shape: f32[2,1], index: 2, kind: input, shape index: {}]   ;;  %s7460_s3 = inlined_call_operand.vmem [shape: f32[2,1], index: 3, kind: input, shape index: {}]   ;;  %s7461_s4 = inlined_call_operand.vmem [shape: bf16[512,128], index: 4, kind: input, shape index: {}]   ;;  %s7462_s5 = inlined_call_operand.hbm [shape: f32[4,18], index: 5, kind: input, shape index: {}]   ;;  %s7463_s6 = inlined_call_operand.vmem [shape: f32[4,1], index: 6, kind: input, shape index: {}]   ;;  %s7464_s7 = inlined_call_operand.vmem [shape: f32[4,1], index: 7, kind: input, shape index: {}]   ;;  %s7465_s8 = inlined_call_operand.vmem [shape: bf16[128,32], index: 8, kind: input, shape index: {}]   ;;  %s7466_s9 = inlined_call_operand.hbm [shape: f32[8,36], index: 9, kind: input, shape index: {}]   ;;  %s7467_s10 = inlined_call_operand.vmem [shape: f32[8,1], index: 10, kind: input, shape index: {}]   ;;  %s7468_s11 = inlined_call_operand.vmem [shape: f32[8,1], index: 11, kind: input, shape index: {}]   ;;  %s7469_s12 = inlined_call_operand.hbm [shape: bf16[9,32,32], index: 12, kind: input, shape index: {}]   ;;  %s7470_s13 = inlined_call_operand.vmem [shape: bf16[4,32,8], index: 13, kind: input, shape index: {}]   ;;  %s7471_s14 = inlined_call_operand.vmem [shape: f32[16,72], index: 14, kind: input, shape index: {}]   ;;  %s7472_s15 = inlined_call_operand.vmem [shape: f32[16,1], index: 15, kind: input, shape index: {}]   ;;  %s7473_s16 = inlined_call_operand.vmem [shape: f32[16,1], index: 16, kind: input, shape index: {}]   ;;  %s7474_s17 = inlined_call_operand.vmem [shape: bf16[9,8,8], index: 17, kind: input, shape index: {}]   ;;  %s7475_s18 = inlined_call_operand.vmem [shape: bf16[4,8,2], index: 18, kind: input, shape index: {}]   ;;  %s7476_s19 = inlined_call_operand.vmem [shape: f32[10,16], index: 19, kind: input, shape index: {}]   ;;  %s7477_s20 = inlined_call_operand.vmem [shape: f32[10,1], index: 20, kind: input, shape index: {}]   ;;  %s7478_s21 = inlined_call_operand.vmem [shape: f32[10,2], index: 21, kind: output, shape index: {}]  }
   0x1   :  { %7485 = sst [smem:[#allocation13_spill]] %s7457_s0 }
   0x2   :  { %7486 = sst [smem:[#allocation14_spill]] %s7458_s1 }
   0x3   :  { %7487 = sst [smem:[#allocation15_spill]] %s7459_s2 }
   0x4   :  { %7488 = sst [smem:[#allocation16_spill]] %s7460_s3 }
   0x5   :  { %7489 = sst [smem:[#allocation17_spill]] %s7461_s4 }
   0x6   :  { %7490 = sst [smem:[#allocation18_spill]] %s7462_s5 }
   0x7   :  { %26 = vsyncpa [#allocation3], 0 }
   0x8   :  { %27 = vsyncpa [#allocation5], 0 }
   0x9   :  { %28 = vsyncpa [#allocation8], 0  ;;  %s6227_s2 = smov [#allocation4]   ;;  %s6228_s26 = smov [#allocation7]  }
   0xa   :  { %s45_s25 = sshll.u32 %s6227_s2, 4  ;;  %s77_s27 = sshll.u32 %s6228_s26, 4  ;;  %s46_s25 = int_to_ptr.vmem [resolvable:$true] %s45_s25  ;;  %s78_s27 = int_to_ptr.vmem [resolvable:$true] %s77_s27 }
   0xb   :  { %s6129_s3 = scalar_lea.vmem %s46_s25, 32  ;;  %p6134_p1 = scmp.lt.s32.totalorder %s46_s25, %s46_s25 }
   0xc   :  { %p6130_p0 = scmp.ne.s32.totalorder %s46_s25, %s6129_s3  ;;  %p6135_p2 = scmp.lt.s32.totalorder %s6129_s3, %s6129_s3 }
   0xe   :  { %p6136_p3 = por %p6135_p2, %p6134_p1 }
  0x10   :  { %p6137_p4 = pnand %p6136_p3, %p6130_p0 }
  0x12   :  { %6140 = shalt.err (!%p6137_p4)
}
  0x13   :  { %s7491_s0 = sld [smem:[#allocation14_spill]]  ;;  %s6149_s4 = scalar_lea.vmem %s78_s27, 128 }
  0x14   :  { %p6150_p5 = scmp.ne.s32.totalorder %s78_s27, %s6149_s4  ;;  %p6154_p6 = scmp.lt.s32.totalorder %s78_s27, %s78_s27 }
  0x15   :  { %p6155_p7 = scmp.lt.s32.totalorder %s6149_s4, %s6149_s4 }
  0x17   :  { %p6156_p8 = por %p6155_p7, %p6154_p6 }
  0x19   :  { %48 = dma.hbm_to_vmem [thread:$0]  %s7491_s0, 32, %s46_s25, [#allocation5]  }
  0x1a   :  { %p6157_p9 = pnand %p6156_p8, %p6150_p5 }
  0x1c   :  { %6160 = shalt.err (!%p6157_p9)
}
  0x1d   :  { %80 = dma.hbm_to_vmem [thread:$0]  %s7466_s9, 128, %s78_s27, [#allocation8]  }
  0x1e   :  { %s6229_s22 = smov [#allocation2]   ;;  %s6230_s1 = smov [#allocation6]  }
  0x1f   :  { %s35_s23 = sshll.u32 %s6229_s22, 4  ;;  %s61_s24 = sshll.u32 %s6230_s1, 4  ;;  %s36_s23 = int_to_ptr.vmem [resolvable:$true] %s35_s23  ;;  %s62_s24 = int_to_ptr.vmem [resolvable:$true] %s61_s24 }
  0x20   :  { %s6169_s2 = scalar_lea.vmem %s36_s23, 64  ;;  %p6174_p11 = scmp.lt.s32.totalorder %s36_s23, %s36_s23 }
  0x21   :  { %p6170_p10 = scmp.ne.s32.totalorder %s36_s23, %s6169_s2  ;;  %p6175_p12 = scmp.lt.s32.totalorder %s6169_s2, %s6169_s2 }
  0x23   :  { %p6176_p13 = por %p6175_p12, %p6174_p11 }
  0x25   :  { %p6177_p0 = pnand %p6176_p13, %p6170_p10 }
  0x27   :  { %6180 = shalt.err (!%p6177_p0)
}
  0x28   :  { %s7492_s3 = sld [smem:[#allocation13_spill]]  ;;  %s6189_s28 = scalar_lea.vmem %s62_s24, 64 }
  0x29   :  { %p6190_p1 = scmp.ne.s32.totalorder %s62_s24, %s6189_s28  ;;  %p6194_p2 = scmp.lt.s32.totalorder %s62_s24, %s62_s24 }
  0x2a   :  { %p6195_p3 = scmp.lt.s32.totalorder %s6189_s28, %s6189_s28 }
  0x2c   :  { %p6196_p4 = por %p6195_p3, %p6194_p2 }
  0x2e   :  { %38 = dma.hbm_to_vmem [thread:$0]  %s7492_s3, 64, %s36_s23, [#allocation3]  }
  0x2f   :  { %p6197_p5 = pnand %p6196_p4, %p6190_p1 }
  0x31   :  { %6200 = shalt.err (!%p6197_p5)
}
  0x32   :  { %s7493_s29 = sld [smem:[#allocation18_spill]]  ;;  %s6231_s0 = smov [#allocation9]  }
  0x33   :  { %s90_s4 = sshll.u32 %s6231_s0, 4  ;;  %s91_s4 = int_to_ptr.vmem [resolvable:$true] %s90_s4 }
  0x34   :  { %s6209_s30 = scalar_lea.vmem %s91_s4, 2304  ;;  %p6214_p7 = scmp.lt.s32.totalorder %s91_s4, %s91_s4 }
  0x35   :  { %p6210_p6 = scmp.ne.s32.totalorder %s91_s4, %s6209_s30  ;;  %p6215_p8 = scmp.lt.s32.totalorder %s6209_s30, %s6209_s30 }
  0x37   :  { %p6216_p9 = por %p6215_p8, %p6214_p7 }
  0x38   :  { %64 = dma.hbm_to_vmem [thread:$0]  %s7493_s29, 64, %s62_s24, [#allocation5]  }
  0x39   :  { %p6217_p10 = pnand %p6216_p9, %p6210_p6 }
  0x3b   :  { %6220 = shalt.err (!%p6217_p10)
}
  0x3c   :  { %s6232_s5 = smov 64   ;;  %s6233_s22 = smov 4  }
  0x3d   :  { %96 = dma.hbm_to_vmem [thread:$0]  %s7469_s12, 2304, %s91_s4, [#allocation8], %s6232_s5, %s6232_s5, %s6233_s22  }
  0x3e   :  { %6221 = dma.done.wait [#allocation3], 64  }
  0x3f   :  { %6222 = vsyncadd [#allocation3], 4294967232 }
  0x40   :  { %6223 = dma.done.wait [#allocation5], 96  }
  0x41   :  { %6224 = vsyncadd [#allocation5], 4294967200 }
  0x42   :  { %6225 = dma.done.wait [#allocation8], 2432  }
  0x43   :  { %6226 = vsyncadd [#allocation8], 4294964864  ;;  %v130_v0 = vlaneseq  ;;  %v7480_v1 = vmov 0   ;;  %v6235_v3 = vmov 2   ;;  %v129_v6 = vld [vmem:[#allocation4] sm:$0x3] }
  0x44   :  { %6061 = vset.pattern.permute.xlu0 %v7480_v1  ;;  %6063 = vset.pattern.permute.xlu1 %v6235_v3  ;;  %v128_v7 = vld [vmem:[#allocation2] sm:$0xf]  ;;  %s6236_s12 = smov 17   ;;  %v6237_v11 = vmov 1   ;;  %s6238_s24 = smov 16   ;;  %v6239_v14 = vmov 4  }
  0x45   :  { %v161_v2 = vshrl.u32 %v130_v0, 7  ;;  %204 = vperm.xlu0 %6061, %v129_v6   ;;  %s6240_s2 = smov 15   ;;  %v7484_v16 = vmov 3   ;;  %s6242_s25 = smov 1   ;;  %v7483_v17 = vmov 5   ;;  %v7482_v18 = vmov 7  }
  0x46   :  { %s6244_s26 = smov 127   ;;  %v6246_v19 = vmov 6   ;;  %s6247_s3 = smov 113   ;;  %v6249_v20 = vmov 8   ;;  %v6495_v40 = vand.u32 127, %v130_v0  ;;  %vm185_vm2 = vcmask 138240  }
  0x47   :  { %v162_v4 = vsub.s32 3, %v161_v2  ;;  %v6407_v5 = vsub.s32 0, %v161_v2  ;;  %v6411_v9 = vsub.s32 1, %v161_v2  ;;  %v177_v13 = vsub.s32 2, %v161_v2  ;;  %s6248_s28 = smov 112   ;;  %s6250_s9 = smov 111  }
  0x48   :  { %v6500_v42 = vadd.s32 128, %v6495_v40  ;;  %v133_v43 = vadd.s32 256, %v6495_v40  ;;  %v6504_v44 = vadd.s32 384, %v6495_v40  ;;  %v135_v46 = vand.u32 15, %v6495_v40  ;;  %s7522_s0 = sld [smem:[#allocation15_spill]]  ;;  %s6262_s27 = smov 121  }
  0x49   :  { %v6409_v8 = vrot.slane %v128_v7, %v162_v4  ;;  %v6415_v10 = vrot.slane %v128_v7, %v6407_v5  ;;  %6062 = vset.pattern.permute.xlu0 %v6237_v11  ;;  %v6420_v12 = vrot.slane %v128_v7, %v6411_v9  ;;  %v6426_v15 = vrot.slane %v128_v7, %v177_v13  ;;  %s7523_s22 = sld [smem:[#allocation16_spill]]  ;;  %s6264_s29 = smov 120  }
  0x4a   :  { %254 = vperm.xlu0 %6062, %v129_v6   ;;  %v139_v47 = vand.u32 255, %v6495_v40  ;;  %v136_v49 = vand.u32 15, %v6500_v42  ;;  %v137_v50 = vand.u32 15, %v133_v43  ;;  %v138_v51 = vand.u32 15, %v6504_v44  ;;  %s6269_s23 = smov 116   ;;  %s6270_s1 = smov 108  }
  0x4b   :  { %164 = vrot.lane.b32.xlu1 %v6409_v8, %s6236_s12  ;;  %v141_v52 = vand.u32 255, %v133_v43  ;;  %vm6516_vm0 = vcmp.ge.s32.totalorder %v135_v46, 1  ;;  %vm240_vm3 = vcmask 130048   ;;  %vm6552_vm9 = vcmp.le.s32.totalorder %v135_v46, 14 }
  0x4c   :  { %vm6520_vm1 = vcmp.ge.s32.totalorder %v139_v47, 16  ;;  %vm6526_vm4 = vcmp.ge.s32.totalorder %v136_v49, 1  ;;  %vm6535_vm6 = vcmp.ge.s32.totalorder %v137_v50, 1  ;;  %vm6539_vm7 = vcmp.ge.s32.totalorder %v138_v51, 1 }
  0x4d   :  { %vm194_vm5 = vmand %vm6520_vm1, %vm6516_vm0  ;;  %vm6543_vm8 = vcmp.ge.s32.totalorder %v141_v52, 16  ;;  %vm290_vm10 = vcmask 121856   ;;  %vm6558_vm11 = vcmp.le.s32.totalorder %v136_v49, 14  ;;  %vm6562_vm12 = vcmp.le.s32.totalorder %v137_v50, 14 }
  0x4e   :  { %231 = vrot.lane.b32.xlu0 %v6409_v8, %s6238_s24  ;;  %vm6566_vm13 = vcmp.le.s32.totalorder %v138_v51, 14  ;;  %vm196_vm15 = vmand %vm6543_vm8, %vm6535_vm6  ;;  %v140_v47 = vand.u32 255, %v6500_v42  ;;  %vm409_vm14 = vcmask 1039360  }
  0x4f   :  { %179 = vrot.lane.b32.xlu1 %v6415_v10, %s6236_s12  ;;  %6065 = vset.pattern.permute.xlu0 %v6239_v14 }
  0x52   :  { %236 = vrot.lane.b32.xlu0 %v6420_v12, %s6238_s24 }
  0x53   :  { %181 = vrot.lane.b32.xlu1 %v6420_v12, %s6236_s12 }
  0x56   :  { %183 = vrot.lane.b32.xlu0 %v6426_v15, %s6236_s12  ;;  %s7524_s12 = sld [smem:[#allocation17_spill]] }
  0x57   :  { %234 = vrot.lane.b32.xlu1 %v6415_v10, %s6238_s24 }
  0x5a   :  { %281 = vrot.lane.b32.xlu0 %v6409_v8, %s6240_s2 }
  0x5b   :  { %308 = vperm.xlu1 %6063, %v129_v6  }
  0x5e   :  { %286 = vrot.lane.b32.xlu0 %v6420_v12, %s6240_s2 }
  0x5f   :  { %238 = vrot.lane.b32.xlu1 %v6426_v15, %s6238_s24  ;;  %s6271_s24 = smov 104  }
  0x60   :  { %6064 = vset.pattern.permute.xlu1 %v7484_v16 }
  0x62   :  { %288 = vrot.lane.b32.xlu0 %v6426_v15, %s6240_s2 }
  0x63   :  { %284 = vrot.lane.b32.xlu1 %v6415_v10, %s6240_s2  ;;  %s6272_s2 = smov 100  }
  0x66   :  { %338 = vrot.lane.b32.xlu0 %v6415_v10, %s6242_s25 }
  0x67   :  { %358 = vperm.xlu1 %6064, %v129_v6  }
  0x6a   :  { %386 = vperm.xlu0 %6065, %v129_v6  }
  0x6b   :  { %335 = vrot.lane.b32.xlu1 %v6409_v8, %s6242_s25 }
  0x6c   :  { %6066 = vset.pattern.permute.xlu1 %v7483_v17 }
  0x6e   :  { %401 = vrot.lane.b32.xlu0 %v6415_v10, %s6244_s26 }
  0x6f   :  { %340 = vrot.lane.b32.xlu1 %v6420_v12, %s6242_s25  ;;  %6068 = vset.pattern.permute.xlu0 %v7482_v18 }
  0x72   :  { %405 = vrot.lane.b32.xlu0 %v6426_v15, %s6244_s26 }
  0x73   :  { %342 = vrot.lane.b32.xlu1 %v6426_v15, %s6242_s25 }
  0x76   :  { %407 = vrot.lane.b32.xlu0 %v6409_v8, %s6244_s26 }
  0x77   :  { %424 = vperm.xlu1 %6066, %v129_v6  }
  0x7a   :  { %453 = vrot.lane.b32.xlu0 %v6420_v12, %s6247_s3 }
  0x7b   :  { %403 = vrot.lane.b32.xlu1 %v6420_v12, %s6244_s26 }
  0x7c   :  { %6067 = vset.pattern.permute.xlu1 %v6246_v19 }
  0x7e   :  { %528 = vperm.xlu0 %6068, %v129_v6  }
  0x7f   :  { %478 = vperm.xlu1 %6067, %v129_v6  }
  0x82   :  { %509 = vrot.lane.b32.xlu0 %v6426_v15, %s6248_s28 }
  0x83   :  { %451 = vrot.lane.b32.xlu1 %v6415_v10, %s6247_s3  ;;  %6069 = vset.pattern.permute.xlu0 %v6249_v20 }
  0x84   :  { %6071 = vset.pattern.permute.xlu1 %v7480_v1 }
  0x86   :  { %582 = vperm.xlu0 %6069, %v129_v6  }
  0x87   :  { %455 = vrot.lane.b32.xlu1 %v6426_v15, %s6247_s3 }
  0x8a   :  { %559 = vrot.lane.b32.xlu0 %v6426_v15, %s6250_s9 }
  0x8b   :  { %457 = vrot.lane.b32.xlu1 %v6409_v8, %s6247_s3  ;;  %6070 = vset.pattern.permute.xlu0 %v7480_v1  ;;  %s6259_s3 = smov 8  }
  0x8e   :  { %561 = vrot.lane.b32.xlu0 %v6409_v8, %s6250_s9 }
  0x8f   :  { %507 = vrot.lane.b32.xlu1 %v6420_v12, %s6248_s28 }
  0x93   :  { %505 = vrot.lane.b32.xlu1 %v6415_v10, %s6248_s28 }
  0x97   :  { %555 = vrot.lane.b32.xlu1 %v6415_v10, %s6250_s9 }
  0x9b   :  { %557 = vrot.lane.b32.xlu1 %v6420_v12, %s6250_s9  ;;  %s6260_s9 = smov 7  }
  0x9f   :  { %511 = vrot.lane.b32.xlu1 %v6409_v8, %s6248_s28 }
  0xbd   :  { %v165_v21 = vpop.permute.xlu1 %164 }
  0xc0   :  { %v6474_v22 = vpop.permute.xlu0 %204 }
  0xc1   :  { %v180_v23 = vpop.permute.xlu1 %179 }
  0xc2   :  { %v193_v58 = vsel %vm185_vm2, %v165_v21, %v180_v23 }
  0xc5   :  { %v6476_v24 = vpop.permute.xlu0 %254  ;;  %v182_v25 = vpop.permute.xlu1 %181 }
  0xc6   :  { %v186_v63 = vsel %vm185_vm2, %v180_v23, %v182_v25  ;;  %v198_v23 = vsel %vm194_vm5, %v193_v58, 0.0  ;;  %vm299_vm5 = vmand %vm6520_vm1, %vm6552_vm9 }
  0xc7   :  { %v199_v49 = vsel %vm6526_vm4, %v186_v63, 0.0 }
  0xc9   :  { %v6478_v26 = vpop.permute.xlu0 %231  ;;  %v235_v28 = vpop.permute.xlu1 %234 }
  0xca   :  { %v248_v0 = vsel %vm240_vm3, %v6478_v26, %v235_v28 }
  0xcb   :  { %v249_v50 = vsel %vm6520_vm1, %v248_v0, 0.0  ;;  %v210_v0 = vrot.slane %v198_v23, %v6407_v5 }
  0xcd   :  { %v237_v27 = vpop.permute.xlu0 %236 }
  0xd1   :  { %v184_v29 = vpop.permute.xlu0 %183 }
  0xd2   :  { %v187_v43 = vsel %vm185_vm2, %v182_v25, %v184_v29  ;;  %v188_v46 = vsel %vm185_vm2, %v184_v29, %v165_v21  ;;  %v142_v21 = vand.u32 255, %v6504_v44  ;;  %v241_v25 = vsel %vm240_vm3, %v235_v28, %v237_v27  ;;  %vm301_vm2 = vmand %vm6543_vm8, %vm6562_vm12 }
  0xd3   :  { %v201_v28 = vsel %vm6539_vm7, %v188_v46, 0.0  ;;  %v214_v44 = vrot.slane %v199_v49, %v6407_v5 }
  0xd5   :  { %v6482_v31 = vpop.permute.xlu0 %281 }
  0xd6   :  { %v6480_v30 = vpop.permute.xlu1 %308 }
  0xd9   :  { %v287_v33 = vpop.permute.xlu0 %286 }
  0xda   :  { %v6484_v32 = vpop.permute.xlu1 %238 }
  0xdb   :  { %v242_v51 = vsel %vm240_vm3, %v237_v27, %v6484_v32  ;;  %v200_v27 = vsel %vm196_vm15, %v187_v43, 0.0  ;;  %v243_v23 = vsel %vm240_vm3, %v6484_v32, %v6478_v26  ;;  %v264_v43 = vrot.slane %v241_v25, %v6407_v5 }
  0xdc   :  { %v251_v1 = vsel %vm6543_vm8, %v242_v51, 0.0  ;;  %v218_v26 = vrot.slane %v200_v27, %v6407_v5  ;;  %v222_v32 = vrot.slane %v201_v28, %v6407_v5  ;;  %vm7514_vm8 = vcmask 7168  }
  0xdd   :  { %v289_v35 = vpop.permute.xlu0 %288  ;;  %v268_v51 = vrot.slane %v251_v1, %v6407_v5  ;;  %v272_v25 = vrot.slane %v243_v23, %v6407_v5  ;;  %vm7515_vm1 = vmmov %vm7514_vm8  ;;  %vm459_vm15 = vcmask 924672   ;;  %v223_v27 = vmul.f32 %v210_v0, %v6474_v22 }
  0xde   :  { %v285_v34 = vpop.permute.xlu1 %284  ;;  %v292_v58 = vsel %vm290_vm10, %v287_v33, %v289_v35  ;;  %v224_v23 = vmul.f32 %v214_v44, %v6474_v22  ;;  %v274_v17 = vmul.f32 %v264_v43, %v6476_v24 }
  0xdf   :  { %v291_v29 = vsel %vm290_vm10, %v285_v34, %v287_v33  ;;  %v298_v42 = vsel %vm290_vm10, %v6482_v31, %v285_v34  ;;  %v293_v34 = vsel %vm290_vm10, %v289_v35, %v6482_v31  ;;  %v260_v33 = vrot.slane %v249_v50, %v6407_v5  ;;  %vm7516_vm10 = vmmov %vm7515_vm1 }
  0xe0   :  { %v303_v31 = vsel %vm299_vm5, %v298_v42, 0.0  ;;  %v304_v35 = vsel %vm6558_vm11, %v291_v29, 0.0  ;;  %v305_v46 = vsel %vm301_vm2, %v292_v58, 0.0  ;;  %v306_v61 = vsel %vm6566_vm13, %v293_v34, 0.0  ;;  %vm7519_vm2 = vmmov %vm7515_vm1 }
  0xe1   :  { %v6488_v37 = vpop.permute.xlu0 %338  ;;  %vm6645_vm5 = vcmp.le.s32.totalorder %v140_v47, 239  ;;  %v314_v28 = vrot.slane %v303_v31, %v6407_v5  ;;  %v318_v1 = vrot.slane %v304_v35, %v6407_v5  ;;  %v322_v34 = vrot.slane %v305_v46, %v6407_v5 }
  0xe2   :  { %v6486_v36 = vpop.permute.xlu1 %358  ;;  %v326_v18 = vrot.slane %v306_v61, %v6407_v5  ;;  %v225_v35 = vmul.f32 %v218_v26, %v6474_v22  ;;  %v226_v46 = vmul.f32 %v222_v32, %v6474_v22  ;;  %v275_v61 = vmul.f32 %v268_v51, %v6476_v24 }
  0xe3   :  { %v327_v43 = vmul.f32 %v314_v28, %v6480_v30  ;;  %v329_v16 = vmul.f32 %v322_v34, %v6480_v30  ;;  %v278_v51 = vadd.f32 %v274_v17, %v224_v23 }
  0xe5   :  { %v6492_v39 = vpop.permute.xlu0 %386 }
  0xe6   :  { %v6490_v38 = vpop.permute.xlu1 %335 }
  0xe7   :  { %v352_v55 = vsel %vm7514_vm8, %v6490_v38, %v6488_v37  ;;  %vm6683_vm8 = vcmp.le.s32.totalorder %v142_v21, 239 }
  0xe9   :  { %v6506_v45 = vpop.permute.xlu0 %401 }
  0xea   :  { %v6497_v41 = vpop.permute.xlu1 %340 }
  0xeb   :  { %v345_v29 = vsel %vm7515_vm1, %v6488_v37, %v6497_v41  ;;  %v273_v37 = vmul.f32 %v260_v33, %v6476_v24  ;;  %vm513_vm1 = vcmask 916480  }
  0xec   :  { %v354_v0 = vsel %vm6526_vm4, %v345_v29, 0.0  ;;  %v328_v29 = vmul.f32 %v318_v1, %v6480_v30  ;;  %v279_v1 = vadd.f32 %v275_v61, %v225_v35  ;;  %v393_v61 = vmul.f32 %v6492_v39, %v6415_v10 }
  0xed   :  { %v6514_v53 = vpop.permute.xlu0 %405 }
  0xee   :  { %v6510_v48 = vpop.permute.xlu1 %342 }
  0xef   :  { %v346_v42 = vsel %vm7516_vm10, %v6497_v41, %v6510_v48  ;;  %v353_v41 = vsel %vm6516_vm0, %v352_v55, 0.0  ;;  %v347_v31 = vsel %vm7519_vm2, %v6510_v48, %v6490_v38  ;;  %v276_v55 = vmul.f32 %v272_v25, %v6476_v24  ;;  %vm470_vm2 = vmand %vm6645_vm5, %vm6526_vm4 }
  0xf0   :  { %v355_v44 = vsel %vm6535_vm6, %v346_v42, 0.0  ;;  %v364_v38 = vrot.slane %v353_v41, %v6407_v5  ;;  %v330_v48 = vmul.f32 %v326_v18, %v6480_v30  ;;  %v368_v42 = vrot.slane %v354_v0, %v6407_v5  ;;  %vm472_vm4 = vmand %vm6683_vm8, %vm6539_vm7 }
  0xf1   :  { %v6547_v62 = vpop.permute.xlu0 %407  ;;  %v356_v26 = vsel %vm6539_vm7, %v347_v31, 0.0  ;;  %v372_v22 = vrot.slane %v355_v44, %v6407_v5  ;;  %v277_v24 = vadd.f32 %v273_v37, %v223_v27  ;;  %v280_v34 = vadd.f32 %v276_v55, %v226_v46  ;;  %vm576_vm7 = vmand %vm6683_vm8, %vm6566_vm13 }
  0xf2   :  { %v6524_v56 = vpop.permute.xlu1 %424  ;;  %v332_v0 = vadd.f32 %v328_v29, %v278_v51  ;;  %v377_v17 = vmul.f32 %v364_v38, %v6486_v36  ;;  %v376_v21 = vrot.slane %v356_v26, %v6407_v5  ;;  %v333_v27 = vadd.f32 %v329_v16, %v279_v1 }
  0xf3   :  { %v331_v41 = vadd.f32 %v327_v43, %v277_v24  ;;  %v334_v23 = vadd.f32 %v330_v48, %v280_v34  ;;  %v378_v37 = vmul.f32 %v368_v42, %v6486_v36  ;;  %v379_v31 = vmul.f32 %v372_v22, %v6486_v36 }
  0xf4   :  { %vm563_vm10 = vcmask 908288   ;;  %v394_v55 = vmul.f32 %v6492_v39, %v6420_v12  ;;  %v412_v43 = vsel %vm409_vm14, %v6514_v53, %v6547_v62  ;;  %v418_v57 = vsel %vm409_vm14, %v6547_v62, %v6506_v45 }
  0xf5   :  { %v6587_v52 = vpop.permute.xlu0 %453  ;;  %v381_v38 = vadd.f32 %v377_v17, %v331_v41  ;;  %v380_v48 = vmul.f32 %v376_v21, %v6486_v36  ;;  %v382_v22 = vadd.f32 %v378_v37, %v332_v0  ;;  %v421_v62 = vsel %vm6562_vm12, %v412_v43, 0.0 }
  0xf6   :  { %v6556_v4 = vpop.permute.xlu1 %403  ;;  %v396_v34 = vmul.f32 %v6492_v39, %v6409_v8  ;;  %v438_v41 = vrot.slane %v421_v62, %v6407_v5 }
  0xf7   :  { %v410_v18 = vsel %vm409_vm14, %v6506_v45, %v6556_v4  ;;  %v411_v30 = vsel %vm409_vm14, %v6556_v4, %v6514_v53  ;;  %v383_v45 = vadd.f32 %v379_v31, %v333_v27  ;;  %v398_v31 = vadd.f32 %v394_v55, %v382_v22 }
  0xf8   :  { %v419_v44 = vsel %vm6552_vm9, %v410_v18, 0.0  ;;  %v420_v35 = vsel %vm6558_vm11, %v411_v30, 0.0  ;;  %v384_v18 = vadd.f32 %v380_v48, %v334_v23  ;;  %v397_v23 = vadd.f32 %v393_v61, %v381_v38 }
  0xf9   :  { %v6626_v49 = vpop.permute.xlu0 %528  ;;  %v430_v12 = vrot.slane %v419_v44, %v6407_v5  ;;  %v434_v42 = vrot.slane %v420_v35, %v6407_v5 }
  0xfa   :  { %v6599_v63 = vpop.permute.xlu1 %478  ;;  %v400_v44 = vadd.f32 %v396_v34, %v384_v18 }
  0xfb   :  { %v443_v0 = vmul.f32 %v430_v12, %v6524_v56 }
  0xfd   :  { %v6658_v47 = vpop.permute.xlu0 %509  ;;  %v447_v61 = vadd.f32 %v443_v0, %v397_v23 }
  0xfe   :  { %v6635_v50 = vpop.permute.xlu1 %451 }
  0xff   :  { %v460_v4 = vsel %vm459_vm15, %v6635_v50, %v6587_v52 }
 0x100   :  { %v473_v53 = vsel %vm6516_vm0, %v460_v4, 0.0  ;;  %vm574_vm0 = vmand %vm6645_vm5, %vm6558_vm11 }
 0x101   :  { %v6681_v32 = vpop.permute.xlu0 %582  ;;  %v484_v30 = vrot.slane %v473_v53, %v6407_v5 }
 0x102   :  { %v456_v33 = vpop.permute.xlu1 %455 }
 0x103   :  { %v461_v16 = vsel %vm459_vm15, %v6587_v52, %v456_v33  ;;  %v395_v52 = vmul.f32 %v6492_v39, %v6426_v15  ;;  %v422_v15 = vsel %vm6566_vm13, %v418_v57, 0.0  ;;  %v497_v35 = vmul.f32 %v484_v30, %v6599_v63 }
 0x104   :  { %v474_v26 = vsel %vm470_vm2, %v461_v16, 0.0  ;;  %vm1362_vm2 = vcmask 261120  }
 0x105   :  { %v560_v29 = vpop.permute.xlu0 %559  ;;  %v488_v60 = vrot.slane %v474_v26, %v6407_v5  ;;  %v399_v37 = vadd.f32 %v395_v52, %v383_v45  ;;  %v501_v12 = vadd.f32 %v497_v35, %v447_v61 }
 0x106   :  { %v458_v28 = vpop.permute.xlu1 %457 }
 0x107   :  { %v462_v24 = vsel %vm459_vm15, %v456_v33, %v458_v28  ;;  %v468_v54 = vsel %vm459_vm15, %v458_v28, %v6635_v50  ;;  %v442_v33 = vrot.slane %v422_v15, %v6407_v5  ;;  %v444_v50 = vmul.f32 %v434_v42, %v6524_v56 }
 0x108   :  { %v475_v17 = vsel %vm6535_vm6, %v462_v24, 0.0  ;;  %v476_v21 = vsel %vm472_vm4, %v468_v54, 0.0  ;;  %v498_v4 = vmul.f32 %v488_v60, %v6599_v63  ;;  %vm609_vm6 = vcmask 1041408  }
 0x109   :  { %v562_v28 = vpop.permute.xlu0 %561  ;;  %v446_v59 = vmul.f32 %v442_v33, %v6524_v56  ;;  %v492_v43 = vrot.slane %v475_v17, %v6407_v5  ;;  %v496_v57 = vrot.slane %v476_v21, %v6407_v5  ;;  %v448_v55 = vadd.f32 %v444_v50, %v398_v31 }
 0x10a   :  { %v508_v46 = vpop.permute.xlu1 %507  ;;  %v566_v16 = vsel %vm563_vm10, %v560_v29, %v562_v28  ;;  %vm1518_vm4 = vcmask 31744  }
 0x10b   :  { %v515_v10 = vsel %vm513_vm1, %v508_v46, %v6658_v47  ;;  %v502_v42 = vadd.f32 %v498_v4, %v448_v55  ;;  %v499_v7 = vmul.f32 %v492_v43, %v6599_v63  ;;  %v500_v22 = vmul.f32 %v496_v57, %v6599_v63 }
 0x10c   :  { %v524_v51 = vsel %vm6645_vm5, %v515_v10, 0.0  ;;  %v450_v18 = vadd.f32 %v446_v59, %v400_v44 }
 0x10d   :  { %v538_v8 = vrot.slane %v524_v51, %v6407_v5 }
 0x10e   :  { %v506_v36 = vpop.permute.xlu1 %505  ;;  %v504_v21 = vadd.f32 %v500_v22, %v450_v18 }
 0x10f   :  { %v514_v1 = vsel %vm513_vm1, %v506_v36, %v508_v46  ;;  %v445_v46 = vmul.f32 %v438_v41, %v6524_v56  ;;  %v548_v38 = vmul.f32 %v538_v8, %v6626_v49  ;;  %v579_v56 = vsel %vm6562_vm12, %v566_v16, 0.0 }
 0x110   :  { %v534_v39 = vrot.slane %v514_v1, %v6407_v5  ;;  %v596_v24 = vrot.slane %v579_v56, %v6407_v5 }
 0x111   :  { %v552_v62 = vadd.f32 %v548_v38, %v502_v42  ;;  %v449_v63 = vadd.f32 %v445_v46, %v399_v37 }
 0x112   :  { %v556_v27 = vpop.permute.xlu1 %555  ;;  %v547_v52 = vmul.f32 %v534_v39, %v6626_v49 }
 0x113   :  { %v572_v6 = vsel %vm563_vm10, %v562_v28, %v556_v27  ;;  %v503_v28 = vadd.f32 %v499_v7, %v449_v63  ;;  %v636_v7 = vld [vmem:[%s7522_s0] sm:$0x3]  ;;  %s6265_s0 = smov 119  }
 0x114   :  { %v551_v15 = vadd.f32 %v547_v52, %v501_v12  ;;  %v580_v54 = vsel %vm576_vm7, %v572_v6, 0.0  ;;  %vm5020_vm7 = vcmask 15360  }
 0x115   :  { %v600_v41 = vrot.slane %v580_v54, %v6407_v5 }
 0x116   :  { %v558_v48 = vpop.permute.xlu1 %557 }
 0x117   :  { %v564_v58 = vsel %vm563_vm10, %v556_v27, %v558_v48  ;;  %v565_v10 = vsel %vm563_vm10, %v558_v48, %v560_v29  ;;  %v604_v37 = vmul.f32 %v600_v41, %v6681_v32  ;;  %vm6267_vm10 = vmmov 0  }
 0x118   :  { %v577_v53 = vsel %vm6552_vm9, %v564_v58, 0.0  ;;  %v578_v26 = vsel %vm574_vm0, %v565_v10, 0.0  ;;  %vm1020_vm0 = vcmask 64512  }
 0x119   :  { %v588_v13 = vrot.slane %v577_v53, %v6407_v5  ;;  %v592_v45 = vrot.slane %v578_v26, %v6407_v5 }
 0x11a   :  { %v512_v29 = vpop.permute.xlu1 %511 }
 0x11b   :  { %v601_v51 = vmul.f32 %v588_v13, %v6681_v32  ;;  %v602_v2 = vmul.f32 %v592_v45, %v6681_v32  ;;  %v516_v1 = vsel %vm513_vm1, %v6658_v47, %v512_v29  ;;  %v522_v34 = vsel %vm513_vm1, %v512_v29, %v506_v36  ;;  %v640_v45 = vld [vmem:[%s7523_s22] sm:$0x3] }
 0x11c   :  { %v526_v30 = vsel %vm6683_vm8, %v522_v34, 0.0  ;;  %v542_v60 = vrot.slane %v516_v1, %v6407_v5  ;;  %v603_v47 = vmul.f32 %v596_v24, %v6681_v32 }
 0x11d   :  { %v605_v33 = vadd.f32 %v601_v51, %v551_v15  ;;  %v606_v0 = vadd.f32 %v602_v2, %v552_v62  ;;  %v546_v50 = vrot.slane %v526_v30, %v6407_v5 }
 0x11e   :  { %v549_v17 = vmul.f32 %v542_v60, %v6626_v49 }
 0x11f   :  { %v550_v36 = vmul.f32 %v546_v50, %v6626_v49  ;;  %v620_v8 = vmul.f32 %v605_v33, %v605_v33  ;;  %v610_v25 = vsel %vm609_vm6, %v605_v33, 0.0  ;;  %v611_v27 = vsel %vm609_vm6, %v606_v0, 0.0 }
 0x120   :  { %v553_v39 = vadd.f32 %v549_v17, %v503_v28  ;;  %v621_v23 = vmul.f32 %v606_v0, %v606_v0  ;;  %v612_v46 = vadd.f32 %v611_v27, %v610_v25  ;;  %v6834_v28 = vld [vmem:[#allocation6] sm:$0xf]  ;;  %v5400_v17 = vld [vmem:[%s7524_s12 + $0x78] sm:$0xff]  }
 0x121   :  { %v554_v31 = vadd.f32 %v550_v36, %v504_v21  ;;  %v624_v35 = vsel %vm609_vm6, %v620_v8, 0.0  ;;  %v5416_v21 = vld [vmem:[%s7524_s12 + $0xf8] sm:$0xff]   ;;  %v5184_v36 = vunpack.c.l.bf16 %v5400_v17  ;;  %v5185_v8 = vunpack.c.h.bf16 %v5400_v17 }
 0x122   :  { %v607_v44 = vadd.f32 %v603_v47, %v553_v39  ;;  %v625_v4 = vsel %vm609_vm6, %v621_v23, 0.0  ;;  %v5392_v47 = vld [vmem:[%s7524_s12 + $0x38] sm:$0xff]   ;;  %v5248_v39 = vunpack.c.l.bf16 %v5416_v21  ;;  %v5249_v25 = vunpack.c.h.bf16 %v5416_v21  ;;  %v5399_v23 = vld [vmem:[%s7524_s12 + $0x70] sm:$0xff]  }
 0x123   :  { %v608_v16 = vadd.f32 %v604_v37, %v554_v31  ;;  %v626_v55 = vadd.f32 %v625_v4, %v624_v35  ;;  %v5408_v27 = vld [vmem:[%s7524_s12 + $0xb8] sm:$0xff]   ;;  %v5415_v37 = vld [vmem:[%s7524_s12 + $0xf0] sm:$0xff]   ;;  %v5152_v31 = vunpack.c.l.bf16 %v5392_v47  ;;  %5440 = vmatprep.subr.mxu0 %v5185_v8 }
 0x124   :  { %v613_v59 = vsel %vm609_vm6, %v607_v44, 0.0  ;;  %v622_v49 = vmul.f32 %v607_v44, %v607_v44  ;;  %v5216_v35 = vunpack.c.l.bf16 %v5408_v27  ;;  %v5217_v4 = vunpack.c.h.bf16 %v5408_v27  ;;  %5475 = vmatprep.subr.mxu1 %v5249_v25  ;;  %v5404_v17 = vld [vmem:[%s7524_s12 + $0x98] sm:$0xff]   ;;  %v5395_v27 = vld [vmem:[%s7524_s12 + $0x50] sm:$0xff]  }
 0x125   :  { %v614_v43 = vadd.f32 %v613_v59, %v612_v46  ;;  %v615_v57 = vsel %vm609_vm6, %v608_v16, 0.0  ;;  %v623_v61 = vmul.f32 %v608_v16, %v608_v16  ;;  %v5407_v46 = vld [vmem:[%s7524_s12 + $0xb0] sm:$0xff]   ;;  %v5181_v59 = vunpack.c.h.bf16 %v5399_v23 }
 0x126   :  { %v627_v38 = vsel %vm609_vm6, %v622_v49, 0.0  ;;  %v5245_v49 = vunpack.c.h.bf16 %v5415_v37  ;;  %5476 = vmatpush3.msra.mxu1 %v5217_v4  ;;  %v5201_v25 = vunpack.c.h.bf16 %v5404_v17 }
 0x127   :  { %v616_v52 = vadd.f32 %v615_v57, %v614_v43  ;;  %v628_v32 = vadd.f32 %v627_v38, %v626_v55  ;;  %v629_v48 = vsel %vm609_vm6, %v623_v61, 0.0  ;;  %v5213_v43 = vunpack.c.h.bf16 %v5407_v46  ;;  %v5398_v57 = vld [vmem:[%s7524_s12 + $0x68] sm:$0xff]   ;;  %5477 = vmatprep.subr.mxu1 %v5248_v39 }
 0x128   :  { %v5414_v61 = vld [vmem:[%s7524_s12 + $0xe8] sm:$0xff]   ;;  %v5180_v55 = vunpack.c.l.bf16 %v5399_v23  ;;  %v5244_v38 = vunpack.c.l.bf16 %v5415_v37  ;;  %5478 = vmatpush3.msra.mxu1 %v5216_v35  ;;  %v5411_v23 = vld [vmem:[%s7524_s12 + $0xd0] sm:$0xff]   ;;  %vm5022_vm6 = vcmask 9216  }
 0x129   :  { %617 = vadd.xlane.f32.xlu1 %v616_v52  ;;  %v630_v56 = vadd.f32 %v629_v48, %v628_v32  ;;  %v5390_v52 = vld [vmem:[%s7524_s12 + $0x28] sm:$0xff]   ;;  %5479 = vmatprep.subr.mxu1 %v5245_v49  ;;  %v5403_v35 = vld [vmem:[%s7524_s12 + $0x90] sm:$0xff]  }
 0x12a   :  { %v5406_v32 = vld [vmem:[%s7524_s12 + $0xa8] sm:$0xff]   ;;  %5480 = vmatpush3.msra.mxu1 %v5213_v43  ;;  %v5164_v43 = vunpack.c.l.bf16 %v5395_v27 }
 0x12b   :  { %631 = vadd.xlane.f32.xlu0 %v630_v56  ;;  %v5212_v56 = vunpack.c.l.bf16 %v5407_v46  ;;  %5481 = vmatprep.subr.mxu1 %v5244_v38  ;;  %v5165_v46 = vunpack.c.h.bf16 %v5395_v27  ;;  %v5394_v38 = vld [vmem:[%s7524_s12 + $0x48] sm:$0xff]  }
 0x12d   :  { %5482 = vmatpush3.msra.mxu1 %v5212_v56 }
 0x1b2   :  { %v618_v6 = vpop.xlane.xlu1 %617 }
 0x1b3   :  { %v619_v58 = vmul.f32 0.001953125, %v618_v6  ;;  %v5177_v6 = vunpack.c.h.bf16 %v5398_v57 }
 0x1b4   :  { %v632_v10 = vpop.xlane.xlu0 %631 }
 0x1b5   :  { %v634_v12 = vmul.f32 %v619_v58, %v619_v58  ;;  %v633_v42 = vmul.f32 0.001953125, %v632_v10  ;;  %v5145_v10 = vunpack.c.h.bf16 %v5390_v52 }
 0x1b7   :  { %v635_v53 = vsub.f32 %v633_v42, %v634_v12  ;;  %v5209_v12 = vunpack.c.h.bf16 %v5406_v32  ;;  %v5397_v42 = vld [vmem:[%s7524_s12 + $0x60] sm:$0xff]  }
 0x1b9   :  { %v637_v26 = vadd.f32 1e-05, %v635_v53  ;;  %v5413_v53 = vld [vmem:[%s7524_s12 + $0xe0] sm:$0xff]  }
 0x1bb   :  { %6111 = vrsqrt.f32 %v637_v26  ;;  %v5176_v26 = vunpack.c.l.bf16 %v5398_v57  ;;  %v5228_v57 = vunpack.c.l.bf16 %v5411_v23 }
 0x1c8   :  { %v6112_v22 = vpop.eup %6111 }
 0x1c9   :  { %v639_v13 = vmul.f32 %v6112_v22, %v636_v7  ;;  %v5240_v7 = vunpack.c.l.bf16 %v5414_v61  ;;  %v5389_v22 = vld [vmem:[%s7524_s12 + $0x20] sm:$0xff]  }
 0x1ca   :  { %v5140_v21 = vunpack.c.l.bf16 %v5389_v22 }
 0x1cb   :  { %645 = vperm.xlu0 %6070, %v639_v13   ;;  %v641_v62 = vmul.f32 %v639_v13, %v619_v58  ;;  %v5241_v58 = vunpack.c.h.bf16 %v5414_v61  ;;  %v5405_v13 = vld [vmem:[%s7524_s12 + $0xa0] sm:$0xff]  }
 0x1cd   :  { %v642_v15 = vsub.f32 %v640_v45, %v641_v62  ;;  %v5144_v45 = vunpack.c.l.bf16 %v5390_v52  ;;  %v5208_v62 = vunpack.c.l.bf16 %v5406_v32  ;;  %5483 = vmatprep.subr.mxu1 %v5241_v58  ;;  %v5410_v52 = vld [vmem:[%s7524_s12 + $0xc8] sm:$0xff]  }
 0x1ce   :  { %5484 = vmatpush3.msra.mxu1 %v5209_v12 }
 0x1cf   :  { %654 = vperm.xlu1 %6071, %v642_v15   ;;  %6093 = vset.pattern.permute.xlu0 %v6235_v3  ;;  %v5173_v15 = vunpack.c.h.bf16 %v5397_v42 }
 0x1d0   :  { %1023 = vperm.xlu0 %6093, %v6834_v28   ;;  %5485 = vmatprep.subr.mxu1 %v5240_v7 }
 0x1d1   :  { %5486 = vmatpush3.msra.mxu1 %v5208_v62 }
 0x1d4   :  { %6095 = vset.pattern.permute.xlu0 %v6239_v14 }
 0x1d5   :  { %1048 = vperm.xlu0 %6095, %v6834_v28  }
 0x1d9   :  { %6097 = vset.pattern.permute.xlu0 %v6246_v19  ;;  %v5386_v19 = vld [vmem:[%s7524_s12 + $0x8] sm:$0xff]  }
 0x1da   :  { %1072 = vperm.xlu0 %6097, %v6834_v28   ;;  %v5129_v56 = vunpack.c.h.bf16 %v5386_v19 }
 0x1de   :  { %6099 = vset.pattern.permute.xlu0 %v6249_v20  ;;  %v5161_v20 = vunpack.c.h.bf16 %v5394_v38 }
 0x1df   :  { %1092 = vperm.xlu0 %6099, %v6834_v28  }
 0x246   :  { %v646_v24 = vpop.permute.xlu0 %645 }
 0x247   :  { %v648_v54 = vmul.f32 %v646_v24, %v605_v33  ;;  %v649_v29 = vmul.f32 %v646_v24, %v606_v0  ;;  %v650_v51 = vmul.f32 %v646_v24, %v607_v44  ;;  %v651_v2 = vmul.f32 %v646_v24, %v608_v16  ;;  %v5391_v16 = vld [vmem:[%s7524_s12 + $0x30] sm:$0xff]  }
 0x248   :  { %v5153_v44 = vunpack.c.h.bf16 %v5392_v47  ;;  %v5149_v14 = vunpack.c.h.bf16 %v5391_v16  ;;  %v5148_v48 = vunpack.c.l.bf16 %v5391_v16  ;;  %v5237_v24 = vunpack.c.h.bf16 %v5413_v53 }
 0x249   :  { %v5204_v47 = vunpack.c.l.bf16 %v5405_v13  ;;  %v5200_v16 = vunpack.c.l.bf16 %v5404_v17 }
 0x24a   :  { %v655_v1 = vpop.permute.xlu1 %654  ;;  %5441 = vmatpush3.msra.mxu0 %v5153_v44  ;;  %5487 = vmatprep.subr.mxu1 %v5237_v24  ;;  %v5387_v44 = vld [vmem:[%s7524_s12 + $0x10] sm:$0xff]  }
 0x24b   :  { %v6813_v34 = vadd.f32 %v655_v1, %v648_v54  ;;  %v6815_v63 = vadd.f32 %v655_v1, %v649_v29  ;;  %v6817_v18 = vadd.f32 %v655_v1, %v650_v51  ;;  %v6819_v30 = vadd.f32 %v655_v1, %v651_v2  ;;  %5442 = vmatprep.subr.mxu0 %v5184_v36  ;;  %v5396_v51 = vld [vmem:[%s7524_s12 + $0x58] sm:$0xff]  }
 0x24c   :  { %5443 = vmatpush3.msra.mxu0 %v5152_v31  ;;  %v5141_v54 = vunpack.c.h.bf16 %v5389_v22  ;;  %v5205_v29 = vunpack.c.h.bf16 %v5405_v13  ;;  %v5412_v2 = vld [vmem:[%s7524_s12 + $0xd8] sm:$0xff]   ;;  %v5172_v1 = vunpack.c.l.bf16 %v5397_v42  ;;  %v5169_v36 = vunpack.c.h.bf16 %v5396_v51  ;;  %v5393_v22 = vld [vmem:[%s7524_s12 + $0x40] sm:$0xff]  }
 0x24d   :  { %v661_v60 = vmax.f32 %v6813_v34, 0.0  ;;  %v662_v41 = vmax.f32 %v6815_v63, 0.0  ;;  %v663_v33 = vmax.f32 %v6817_v18, 0.0  ;;  %v664_v0 = vmax.f32 %v6819_v30, 0.0  ;;  %5444 = vmatprep.subr.mxu0 %v5181_v59  ;;  %v5409_v13 = vld [vmem:[%s7524_s12 + $0xc0] sm:$0xff]  }
 0x24e   :  { %5445 = vmatpush3.msra.mxu0 %v5149_v14  ;;  %v5233_v8 = vunpack.c.h.bf16 %v5412_v2  ;;  %5488 = vmatpush3.msra.mxu1 %v5205_v29  ;;  %v5168_v37 = vunpack.c.l.bf16 %v5396_v51  ;;  %v5232_v31 = vunpack.c.l.bf16 %v5412_v2  ;;  %v5229_v59 = vunpack.c.h.bf16 %v5411_v23  ;;  %v5401_v51 = vld [vmem:[%s7524_s12 + $0x80] sm:$0xff]  }
 0x24f   :  { %v6072_v3 = vpack.i.bf16 %v662_v41, %v661_v60  ;;  %v6077_v50 = vpack.i.bf16 %v664_v0, %v663_v33  ;;  %5446 = vmatprep.subr.mxu0 %v5180_v55  ;;  %v5133_v49 = vunpack.c.h.bf16 %v5387_v44  ;;  %v5197_v14 = vunpack.c.h.bf16 %v5403_v35 }
 0x250   :  { %5447 = vmatpush3.msra.mxu0 %v5148_v48  ;;  %v5132_v61 = vunpack.c.l.bf16 %v5387_v44  ;;  %v5196_v55 = vunpack.c.l.bf16 %v5403_v35  ;;  %v5225_v48 = vunpack.c.h.bf16 %v5410_v52  ;;  %v5160_v42 = vunpack.c.l.bf16 %v5394_v38 }
 0x251   :  { %6073 = vrot.lane.b32.xlu1 %v6072_v3, %s6244_s26  ;;  %5448 = vmatprep.subr.mxu0 %v5177_v6  ;;  %v5236_v3 = vunpack.c.l.bf16 %v5413_v53  ;;  %v5402_v6 = vld [vmem:[%s7524_s12 + $0x88] sm:$0xff]   ;;  %v5224_v53 = vunpack.c.l.bf16 %v5410_v52  ;;  %v5157_v24 = vunpack.c.h.bf16 %v5393_v22  ;;  %v5220_v17 = vunpack.c.l.bf16 %v5409_v13 }
 0x252   :  { %5449 = vmatpush3.msra.mxu0 %v5145_v10  ;;  %v5193_v12 = vunpack.c.h.bf16 %v5402_v6  ;;  %v5192_v7 = vunpack.c.l.bf16 %v5402_v6  ;;  %v6251_v34 = vmov 12   ;;  %v7525_v63 = vmov 3  }
 0x253   :  { %5450 = vmatprep.subr.mxu0 %v5176_v26  ;;  %5489 = vmatprep.subr.mxu1 %v5236_v3  ;;  %v5128_v26 = vunpack.c.l.bf16 %v5386_v19  ;;  %v5189_v3 = vunpack.c.h.bf16 %v5401_v51  ;;  %v7526_v18 = vmov 5   ;;  %v7527_v30 = vmov 7  }
 0x254   :  { %5451 = vmatpush3.msra.mxu0 %v5144_v45  ;;  %5490 = vmatpush3.msra.mxu1 %v5204_v47  ;;  %v5123_v45 = vld [vmem:[%s7524_s12] sm:$0xff]   ;;  %v6256_v19 = vmov 15  }
 0x255   :  { %6078 = vrot.lane.b32.xlu1 %v6077_v50, %s6244_s26  ;;  %v5388_v50 = vld [vmem:[%s7524_s12 + $0x18] sm:$0xff]   ;;  %5452 = vmatprep.subr.mxu0 %v5173_v15  ;;  %v5125_v29 = vunpack.c.h.bf16 %v5123_v45  ;;  %s6258_s12 = smov 9  }
 0x256   :  { %5453 = vmatpush3.msra.mxu0 %v5141_v54  ;;  %v5137_v39 = vunpack.c.h.bf16 %v5388_v50  ;;  %v5136_v4 = vunpack.c.l.bf16 %v5388_v50  ;;  %5491 = vmatprep.subr.mxu1 %v5233_v8  ;;  %v5221_v54 = vunpack.c.h.bf16 %v5409_v13  ;;  %v5156_v50 = vunpack.c.l.bf16 %v5393_v22 }
 0x257   :  { %5454 = vmatprep.subr.mxu0 %v5172_v1  ;;  %5492 = vmatpush3.msra.mxu1 %v5201_v25 }
 0x258   :  { %5455 = vmatpush3.msra.mxu0 %v5140_v21  ;;  %5493 = vmatprep.subr.mxu1 %v5232_v31  ;;  %v5124_v21 = vunpack.c.l.bf16 %v5123_v45 }
 0x259   :  { %5456 = vmatprep.subr.mxu0 %v5169_v36  ;;  %5494 = vmatpush3.msra.mxu1 %v5200_v16 }
 0x25a   :  { %5457 = vmatpush3.msra.mxu0 %v5137_v39  ;;  %5495 = vmatprep.subr.mxu1 %v5229_v59  ;;  %v5188_v39 = vunpack.c.l.bf16 %v5401_v51  ;;  %v984_v51 = vand.u32 7, %v6495_v40 }
 0x25b   :  { %5458 = vmatprep.subr.mxu0 %v5168_v37  ;;  %5496 = vmatpush3.msra.mxu1 %v5197_v14 }
 0x25c   :  { %5459 = vmatpush3.msra.mxu0 %v5136_v4  ;;  %5497 = vmatprep.subr.mxu1 %v5228_v57  ;;  %vm6995_vm9 = vcmp.ge.s32.totalorder %v984_v51, 1  ;;  %vm7009_vm13 = vcmp.le.s32.totalorder %v984_v51, 6 }
 0x25d   :  { %5460 = vmatprep.subr.mxu0 %v5165_v46  ;;  %5498 = vmatpush3.msra.mxu1 %v5196_v55 }
 0x25e   :  { %5461 = vmatpush3.msra.mxu0 %v5133_v49  ;;  %5499 = vmatprep.subr.mxu1 %v5225_v48 }
 0x25f   :  { %5462 = vmatprep.subr.mxu0 %v5164_v43  ;;  %5500 = vmatpush3.msra.mxu1 %v5193_v12 }
 0x260   :  { %5463 = vmatpush3.msra.mxu0 %v5132_v61  ;;  %5501 = vmatprep.subr.mxu1 %v5224_v53  ;;  %v7528_v53 = vmov 0  }
 0x261   :  { %5464 = vmatprep.subr.mxu0 %v5161_v20  ;;  %5502 = vmatpush3.msra.mxu1 %v5192_v7 }
 0x262   :  { %5465 = vmatpush3.msra.mxu0 %v5129_v56  ;;  %5503 = vmatprep.subr.mxu1 %v5221_v54 }
 0x263   :  { %5466 = vmatprep.subr.mxu0 %v5160_v42  ;;  %5504 = vmatpush3.msra.mxu1 %v5189_v3  ;;  %v6261_v42 = vmov 16  }
 0x264   :  { %5467 = vmatpush3.msra.mxu0 %v5128_v26  ;;  %5505 = vmatprep.subr.mxu1 %v5220_v17  ;;  %v6263_v26 = vmov 17  }
 0x265   :  { %5468 = vmatprep.subr.mxu0 %v5157_v24  ;;  %5506 = vmatpush3.msra.mxu1 %v5188_v39 }
 0x266   :  { %5469 = vmatpush3.msra.mxu0 %v5125_v29  ;;  %6103 = vset.pattern.permute.xlu0 %v6251_v34  ;;  %v1024_v29 = vpop.permute.xlu0 %1023 }
 0x267   :  { %5470 = vmatprep.subr.mxu0 %v5156_v50  ;;  %1141 = vperm.xlu0 %6103, %v6834_v28  }
 0x268   :  { %5471 = vmatpush3.msra.mxu0 %v5124_v21 }
 0x26a   :  { %v1049_v3 = vpop.permute.xlu0 %1048 }
 0x26e   :  { %v1073_v21 = vpop.permute.xlu0 %1072 }
 0x2c3   :  { %v6074_v32 = vpop.permute.xlu1 %6073 }
 0x2c4   :  { %v6076_v58 = vunpack.i.h.bf16 %v6074_v32  ;;  %v6075_v10 = vunpack.i.l.bf16 %v6074_v32  ;;  %v6257_v32 = vmov 14  }
 0x2c5   :  { %6105 = vset.pattern.permute.xlu0 %v6257_v32 }
 0x2c6   :  { %v677_v62 = vsel %vm409_vm14, %v6075_v10, %v6076_v58 }
 0x2c7   :  { %v6079_v15 = vpop.permute.xlu1 %6078  ;;  %v686_v25 = vmax.f32 %v661_v60, %v677_v62  ;;  %v6252_v60 = vmov 9  }
 0x2c8   :  { %v6081_v2 = vunpack.i.h.bf16 %v6079_v15  ;;  %v6080_v1 = vunpack.i.l.bf16 %v6079_v15 }
 0x2ca   :  { %v678_v47 = vsel %vm409_vm14, %v6076_v58, %v6080_v1  ;;  %v679_v36 = vsel %vm409_vm14, %v6080_v1, %v6081_v2  ;;  %v685_v8 = vsel %vm409_vm14, %v6081_v2, %v6075_v10  ;;  %v985_v2 = vand.u32 63, %v6495_v40 }
 0x2cb   :  { %v687_v27 = vmax.f32 %v662_v41, %v678_v47  ;;  %v688_v37 = vmax.f32 %v663_v33, %v679_v36  ;;  %v689_v31 = vmax.f32 %v664_v0, %v685_v8  ;;  %v6253_v41 = vmov 10  }
 0x2cc   :  { %v6255_v33 = vmov 13   ;;  %vm6999_vm11 = vcmp.ge.s32.totalorder %v985_v2, 8  ;;  %vm7034_vm15 = vcmp.le.s32.totalorder %v985_v2, 55 }
 0x2cd   :  { %v6082_v23 = vpack.i.bf16 %v687_v27, %v686_v25  ;;  %v6087_v44 = vpack.i.bf16 %v689_v31, %v688_v37  ;;  %vm994_vm12 = vmand %vm6999_vm11, %vm6995_vm9 }
 0x2ce   :  { %vm1045_vm14 = vmand %vm6999_vm11, %vm7009_vm13 }
 0x2cf   :  { %6083 = vrot.lane.b32.xlu1 %v6082_v23, %s6248_s28  ;;  %vm1138_vm5 = vmand %vm7034_vm15, %vm6995_vm9 }
 0x2d0   :  { %vm1187_vm8 = vmand %vm7034_vm15, %vm7009_vm13 }
 0x2d3   :  { %6088 = vrot.lane.b32.xlu1 %v6087_v44, %s6248_s28  ;;  %v1093_v44 = vpop.permute.xlu0 %1092 }
 0x2d7   :  { %998 = vperm.xlu1 %6071, %v6834_v28  }
 0x2db   :  { %6092 = vset.pattern.permute.xlu1 %v6237_v11  ;;  %v6254_v11 = vmov 11  }
 0x2dc   :  { %1008 = vperm.xlu1 %6092, %v6834_v28  }
 0x2e0   :  { %6094 = vset.pattern.permute.xlu1 %v7525_v63 }
 0x2e1   :  { %1033 = vperm.xlu1 %6094, %v6834_v28  }
 0x2e5   :  { %6096 = vset.pattern.permute.xlu1 %v7526_v18 }
 0x2e6   :  { %1058 = vperm.xlu1 %6096, %v6834_v28  }
 0x2ea   :  { %6098 = vset.pattern.permute.xlu1 %v7527_v30 }
 0x2eb   :  { %1082 = vperm.xlu1 %6098, %v6834_v28  }
 0x2ef   :  { %6100 = vset.pattern.permute.xlu1 %v6252_v60 }
 0x2f0   :  { %1102 = vperm.xlu1 %6100, %v6834_v28  }
 0x2f4   :  { %6101 = vset.pattern.permute.xlu1 %v6253_v41 }
 0x2f5   :  { %1116 = vperm.xlu1 %6101, %v6834_v28  }
 0x2f9   :  { %6102 = vset.pattern.permute.xlu1 %v6254_v11 }
 0x2fa   :  { %1126 = vperm.xlu1 %6102, %v6834_v28  }
 0x2fe   :  { %6104 = vset.pattern.permute.xlu1 %v6255_v33 }
 0x2ff   :  { %1151 = vperm.xlu1 %6104, %v6834_v28  }
 0x303   :  { %6106 = vset.pattern.permute.xlu1 %v6256_v19 }
 0x341   :  { %v6084_v0 = vpop.permute.xlu1 %6083 }
 0x342   :  { %v6086_v35 = vunpack.i.h.bf16 %v6084_v0  ;;  %v6085_v4 = vunpack.i.l.bf16 %v6084_v0  ;;  %v1142_v0 = vpop.permute.xlu0 %1141 }
 0x344   :  { %v702_v49 = vsel %vm513_vm1, %v6085_v4, %v6086_v35 }
 0x345   :  { %v6089_v16 = vpop.permute.xlu1 %6088  ;;  %v711_v52 = vmax.f32 %v686_v25, %v702_v49 }
 0x346   :  { %v6091_v46 = vunpack.i.h.bf16 %v6089_v16  ;;  %v6090_v59 = vunpack.i.l.bf16 %v6089_v16 }
 0x348   :  { %v703_v14 = vsel %vm513_vm1, %v6086_v35, %v6090_v59  ;;  %v710_v43 = vsel %vm513_vm1, %v6091_v46, %v6085_v4  ;;  %v704_v57 = vsel %vm513_vm1, %v6090_v59, %v6091_v46  ;;  %vm1209_vm1 = vcmask 1043456  }
 0x349   :  { %v712_v61 = vmax.f32 %v687_v27, %v703_v14  ;;  %v714_v55 = vmax.f32 %v689_v31, %v710_v43  ;;  %v713_v38 = vmax.f32 %v688_v37, %v704_v57 }
 0x34b   :  { %907 = vmatprep.mubr.f32.mxu0 %v712_v61  ;;  %977 = vmatprep.mubr.f32.mxu1 %v714_v55 }
 0x34c   :  { %908 = vmatmul.mubr.f32.vlgmr.msra.gmra.mxu0 %v711_v52  ;;  %978 = vmatmul.mubr.f32.vlgmr.msra.gmra.mxu1 %v713_v38 }
 0x352   :  { %v999_v7 = vpop.permute.xlu1 %998 }
 0x357   :  { %v1009_v22 = vpop.permute.xlu1 %1008 }
 0x35c   :  { %v1034_v13 = vpop.permute.xlu1 %1033 }
 0x361   :  { %v1059_v45 = vpop.permute.xlu1 %1058 }
 0x366   :  { %v1083_v62 = vpop.permute.xlu1 %1082 }
 0x36b   :  { %v1103_v15 = vpop.permute.xlu1 %1102 }
 0x370   :  { %v1117_v24 = vpop.permute.xlu1 %1116 }
 0x375   :  { %v1127_v54 = vpop.permute.xlu1 %1126 }
 0x37a   :  { %v6993_v1 = vpop.permute.xlu1 %1151 }
 0x40c   :  { %v5472_v20 = vpop.f32.mrf.mxu0  ;;  %v5507_v48 = vpop.f32.mrf.mxu1 }
 0x40e   :  { %v5473_v56 = vpop.f32.mrf.mxu0  ;;  %v5508_v6 = vpop.f32.mrf.mxu1 }
 0x40f   :  { %v5474_v58 = vadd.f32 %v5473_v56, %v5472_v20  ;;  %v5509_v10 = vadd.f32 %v5508_v6, %v5507_v48 }
 0x411   :  { %v6972_v12 = vadd.f32 %v5509_v10, %v5474_v58 }
 0x413   :  { %1111 = vrot.lane.b32.xlu0 %v6972_v12, %s6244_s26  ;;  %991 = vrot.lane.b32.xlu1 %v6972_v12, %s6258_s12  ;;  %v1098_v57 = vrot.slane %v6972_v12, %v6407_v5  ;;  %v1108_v32 = vrot.slane %v6972_v12, %v6411_v9 }
 0x415   :  { %v1099_v20 = vmul.f32 %v1098_v57, %v1093_v44  ;;  %v1109_v58 = vmul.f32 %v1108_v32, %v1103_v15  ;;  %v5423_v57 = vld [vmem:[%s7465_s8 + $0x38] sm:$0xff]  }
 0x417   :  { %1017 = vrot.lane.b32.xlu1 %v6972_v12, %s6259_s3  ;;  %1165 = vperm.xlu0 %6105, %v6834_v28  }
 0x41b   :  { %1042 = vrot.lane.b32.xlu1 %v6972_v12, %s6260_s9  ;;  %6107 = vset.pattern.permute.xlu0 %v6261_v42  ;;  %v5420_v42 = vld [vmem:[%s7465_s8 + $0x20] sm:$0xff]  }
 0x41c   :  { %1190 = vperm.xlu0 %6107, %v6834_v28  }
 0x41f   :  { %1067 = vrot.lane.b32.xlu1 %v6972_v12, %s6242_s25 }
 0x420   :  { %6109 = vset.pattern.permute.xlu0 %v7528_v53 }
 0x423   :  { %1175 = vperm.xlu1 %6106, %v6834_v28  }
 0x427   :  { %1135 = vrot.lane.b32.xlu1 %v6972_v12, %s6262_s27 }
 0x428   :  { %6108 = vset.pattern.permute.xlu1 %v6263_v26 }
 0x42b   :  { %1160 = vrot.lane.b32.xlu1 %v6972_v12, %s6264_s29 }
 0x42f   :  { %1184 = vrot.lane.b32.xlu1 %v6972_v12, %s6265_s0 }
 0x433   :  { %1200 = vperm.xlu1 %6108, %v6834_v28  }
 0x437   :  { %6110 = vset.pattern.permute.xlu1 %v7528_v53 }
 0x485   :  { %v992_v17 = vpop.permute.xlu1 %991  ;;  %v1112_v38 = vpop.permute.xlu0 %1111 }
 0x486   :  { %v995_v47 = vsel %vm994_vm12, %v992_v17, 0.0  ;;  %v1114_v48 = vsel %vm7009_vm13, %v1112_v38, 0.0  ;;  %v5281_v38 = vunpack.c.h.bf16 %v5423_v57 }
 0x487   :  { %v1004_v40 = vrot.slane %v995_v47, %v6407_v5  ;;  %v1014_v36 = vrot.slane %v995_v47, %v6411_v9  ;;  %v1122_v10 = vrot.slane %v1114_v48, %v6407_v5 }
 0x489   :  { %v1005_v8 = vmul.f32 %v1004_v40, %v999_v7  ;;  %v1015_v39 = vmul.f32 %v1014_v36, %v1009_v22  ;;  %v1018_v25 = vpop.permute.xlu1 %1017  ;;  %v1123_v7 = vmul.f32 %v1122_v10, %v1117_v24  ;;  %v1132_v22 = vrot.slane %v1114_v48, %v6411_v9 }
 0x48a   :  { %v1021_v23 = vsel %vm6999_vm11, %v1018_v25, 0.0 }
 0x48b   :  { %v1029_v37 = vrot.slane %v1021_v23, %v6407_v5  ;;  %v1039_v31 = vrot.slane %v1021_v23, %v6411_v9  ;;  %v1016_v34 = vadd.f32 %v1015_v39, %v1005_v8 }
 0x48d   :  { %v1030_v63 = vmul.f32 %v1029_v37, %v1024_v29  ;;  %v1043_v18 = vpop.permute.xlu1 %1042  ;;  %v1040_v41 = vmul.f32 %v1039_v31, %v1034_v13 }
 0x48e   :  { %v1046_v30 = vsel %vm1045_vm14, %v1043_v18, 0.0 }
 0x48f   :  { %v1031_v60 = vadd.f32 %v1030_v63, %v1016_v34  ;;  %v1054_v11 = vrot.slane %v1046_v30, %v6407_v5  ;;  %v1064_v33 = vrot.slane %v1046_v30, %v6411_v9 }
 0x491   :  { %v1041_v35 = vadd.f32 %v1040_v41, %v1031_v60  ;;  %v1055_v4 = vmul.f32 %v1054_v11, %v1049_v3  ;;  %v1068_v16 = vpop.permute.xlu1 %1067  ;;  %v1065_v49 = vmul.f32 %v1064_v33, %v1059_v45 }
 0x492   :  { %v1070_v46 = vsel %vm6995_vm9, %v1068_v16, 0.0  ;;  %v1166_v51 = vpop.permute.xlu0 %1165  ;;  %v1221_v16 = vld [vmem:[%s7463_s6] sm:$0xf]  ;;  %s6273_s6 = smov 96  }
 0x493   :  { %v1056_v59 = vadd.f32 %v1055_v4, %v1041_v35  ;;  %v1078_v14 = vrot.slane %v1070_v46, %v6407_v5  ;;  %v1088_v43 = vrot.slane %v1070_v46, %v6411_v9 }
 0x495   :  { %v1066_v61 = vadd.f32 %v1065_v49, %v1056_v59  ;;  %v1079_v55 = vmul.f32 %v1078_v14, %v1073_v21  ;;  %v1089_v19 = vmul.f32 %v1088_v43, %v1083_v62  ;;  %v1133_v62 = vmul.f32 %v1132_v22, %v1127_v54  ;;  %v1225_v49 = vld [vmem:[%s7464_s7] sm:$0xf]  ;;  %v5419_v22 = vld [vmem:[%s7465_s8 + $0x18] sm:$0xff]  }
 0x497   :  { %v1080_v52 = vadd.f32 %v1079_v55, %v1066_v61  ;;  %v1191_v39 = vpop.permute.xlu0 %1190  ;;  %v5422_v61 = vld [vmem:[%s7465_s8 + $0x30] sm:$0xff]   ;;  %v6266_v55 = vmov 0.0  }
 0x498   :  { %5671 = vmatprep.subr.mxu0 %v6266_v55  ;;  %5706 = vmatprep.subr.mxu1 %v6266_v55  ;;  %v5277_v32 = vunpack.c.h.bf16 %v5422_v61 }
 0x499   :  { %v1090_v56 = vadd.f32 %v1089_v19, %v1080_v52  ;;  %v5280_v52 = vunpack.c.l.bf16 %v5423_v57  ;;  %5672 = vmatpush3.msra.mxu0 %v5281_v38  ;;  %5703 = vmatprep.mubr.msk.f32.mxu0 %vm6267_vm10, %v6266_v55 }
 0x49a   :  { %5673 = vmatprep.subr.mxu0 %v6266_v55  ;;  %5714 = vmatprep.mubr.msk.f32.mxu1 %vm6267_vm10, %v6266_v55 }
 0x49b   :  { %v1100_v6 = vadd.f32 %v1099_v20, %v1090_v56  ;;  %v5421_v20 = vld [vmem:[%s7465_s8 + $0x28] sm:$0xff]   ;;  %5674 = vmatpush3.msra.mxu0 %v5280_v52  ;;  %v5276_v56 = vunpack.c.l.bf16 %v5422_v61 }
 0x49c   :  { %5675 = vmatprep.subr.mxu0 %v6266_v55  ;;  %v5273_v10 = vunpack.c.h.bf16 %v5421_v20 }
 0x49d   :  { %v1110_v53 = vadd.f32 %v1109_v58, %v1100_v6  ;;  %5676 = vmatpush3.msra.mxu0 %v5277_v32 }
 0x49e   :  { %v1176_v26 = vpop.permute.xlu1 %1175  ;;  %5677 = vmatprep.subr.mxu0 %v6266_v55 }
 0x49f   :  { %v1124_v13 = vadd.f32 %v1123_v7, %v1110_v53  ;;  %5678 = vmatpush3.msra.mxu0 %v5276_v56  ;;  %v5269_v7 = vunpack.c.h.bf16 %v5420_v42 }
 0x4a0   :  { %5679 = vmatprep.subr.mxu0 %v6266_v55 }
 0x4a1   :  { %v1134_v2 = vadd.f32 %v1133_v62, %v1124_v13  ;;  %5680 = vmatpush3.msra.mxu0 %v5273_v10  ;;  %v5265_v13 = vunpack.c.h.bf16 %v5419_v22  ;;  %v5264_v62 = vunpack.c.l.bf16 %v5419_v22 }
 0x4a2   :  { %v1136_v12 = vpop.permute.xlu1 %1135  ;;  %5681 = vmatprep.subr.mxu0 %v6266_v55 }
 0x4a3   :  { %v1139_v45 = vsel %vm1138_vm5, %v1136_v12, 0.0  ;;  %v5268_v12 = vunpack.c.l.bf16 %v5420_v42 }
 0x4a4   :  { %v1147_v15 = vrot.slane %v1139_v45, %v6407_v5  ;;  %v1157_v29 = vrot.slane %v1139_v45, %v6411_v9  ;;  %v5418_v45 = vld [vmem:[%s7465_s8 + $0x10] sm:$0xff]  }
 0x4a6   :  { %v1148_v3 = vmul.f32 %v1147_v15, %v1142_v0  ;;  %v1161_v50 = vpop.permute.xlu1 %1160  ;;  %v1158_v28 = vmul.f32 %v1157_v29, %v6993_v1  ;;  %v5261_v15 = vunpack.c.h.bf16 %v5418_v45  ;;  %v5417_v29 = vld [vmem:[%s7465_s8 + $0x8] sm:$0xff]  }
 0x4a7   :  { %v1163_v24 = vsel %vm7034_vm15, %v1161_v50, 0.0  ;;  %v5256_v50 = vunpack.c.l.bf16 %v5417_v29 }
 0x4a8   :  { %v1149_v17 = vadd.f32 %v1148_v3, %v1134_v2  ;;  %v1171_v21 = vrot.slane %v1163_v24, %v6407_v5  ;;  %v1181_v47 = vrot.slane %v1163_v24, %v6411_v9  ;;  %v5257_v2 = vunpack.c.h.bf16 %v5417_v29  ;;  %v5251_v3 = vld [vmem:[%s7465_s8] sm:$0xff]   ;;  %s6268_s8 = smov 124  }
 0x4a9   :  { %v5253_v24 = vunpack.c.h.bf16 %v5251_v3 }
 0x4aa   :  { %v1159_v54 = vadd.f32 %v1158_v28, %v1149_v17  ;;  %v1172_v40 = vmul.f32 %v1171_v21, %v1166_v51  ;;  %v1185_v36 = vpop.permute.xlu1 %1184  ;;  %v1182_v25 = vmul.f32 %v1181_v47, %v1176_v26  ;;  %v5272_v26 = vunpack.c.l.bf16 %v5421_v20  ;;  %v5424_v28 = vld [vmem:[#allocation9 + $0x8] sm:$0xff]   ;;  %v5283_v21 = vld [vmem:[#allocation9] sm:$0xff]  }
 0x4ab   :  { %v1188_v8 = vsel %vm1187_vm8, %v1185_v36, 0.0  ;;  %v5260_v51 = vunpack.c.l.bf16 %v5418_v45  ;;  %v5252_v17 = vunpack.c.l.bf16 %v5251_v3  ;;  %v5289_v47 = vunpack.c.h.bf16 %v5424_v28  ;;  %v5429_v3 = vld [vmem:[#allocation9 + $0x58] sm:$0xff]  }
 0x4ac   :  { %v1173_v23 = vadd.f32 %v1172_v40, %v1159_v54  ;;  %v1196_v37 = vrot.slane %v1188_v8, %v6407_v5  ;;  %v1206_v1 = vrot.slane %v1188_v8, %v6411_v9  ;;  %5682 = vmatpush3.msra.mxu0 %v5272_v26  ;;  %v5288_v54 = vunpack.c.l.bf16 %v5424_v28  ;;  %v5315_v26 = vld [vmem:[#allocation9 + $0x40] sm:$0xff]   ;;  %v5323_v28 = vld [vmem:[#allocation9 + $0x50] sm:$0xff]  }
 0x4ad   :  { %5683 = vmatprep.subr.mxu0 %v6266_v55  ;;  %5707 = vmatpush3.msra.mxu1 %v5289_v47  ;;  %v5285_v40 = vunpack.c.h.bf16 %v5283_v21  ;;  %v5284_v36 = vunpack.c.l.bf16 %v5283_v21  ;;  %v5328_v21 = vunpack.c.l.bf16 %v5429_v3 }
 0x4ae   :  { %v1183_v31 = vadd.f32 %v1182_v25, %v1173_v23  ;;  %v1197_v44 = vmul.f32 %v1196_v37, %v1191_v39  ;;  %v1201_v34 = vpop.permute.xlu1 %1200  ;;  %5684 = vmatpush3.msra.mxu0 %v5269_v7  ;;  %5708 = vmatprep.subr.mxu1 %v6266_v55  ;;  %v7121_v37 = vld [vmem:[#allocation7] sm:$0xff] }
 0x4af   :  { %v1207_v63 = vmul.f32 %v1206_v1, %v1201_v34  ;;  %5685 = vmatprep.subr.mxu0 %v6266_v55  ;;  %5709 = vmatpush3.msra.mxu1 %v5288_v54  ;;  %v5425_v1 = vld [vmem:[#allocation9 + $0x18] sm:$0xff]   ;;  %v5325_v54 = vunpack.c.h.bf16 %v5323_v28 }
 0x4b0   :  { %v1198_v18 = vadd.f32 %v1197_v44, %v1183_v31  ;;  %5686 = vmatpush3.msra.mxu0 %v5268_v12  ;;  %5710 = vmatprep.subr.mxu1 %v6266_v55  ;;  %v5297_v31 = vunpack.c.h.bf16 %v5425_v1  ;;  %v5291_v44 = vld [vmem:[#allocation9 + $0x10] sm:$0xff]   ;;  %v5317_v12 = vunpack.c.h.bf16 %v5315_v26 }
 0x4b1   :  { %5687 = vmatprep.subr.mxu0 %v6266_v55  ;;  %5711 = vmatpush3.msra.mxu1 %v5285_v40  ;;  %v5324_v40 = vunpack.c.l.bf16 %v5323_v28 }
 0x4b2   :  { %v1208_v27 = vadd.f32 %v1207_v63, %v1198_v18  ;;  %5688 = vmatpush3.msra.mxu0 %v5265_v13  ;;  %5712 = vmatprep.subr.mxu1 %v6266_v55  ;;  %v5296_v63 = vunpack.c.l.bf16 %v5425_v1  ;;  %v5316_v13 = vunpack.c.l.bf16 %v5315_v26 }
 0x4b3   :  { %5689 = vmatprep.subr.mxu0 %v6266_v55  ;;  %5713 = vmatpush3.msra.mxu1 %v5284_v36 }
 0x4b4   :  { %v1210_v30 = vsel %vm1209_vm1, %v1208_v27, 0.0  ;;  %v1214_v60 = vmul.f32 %v1208_v27, %v1208_v27  ;;  %5690 = vmatpush3.msra.mxu0 %v5264_v62  ;;  %5717 = vmatprep.subr.mxu1 %v6266_v55 }
 0x4b5   :  { %1211 = vadd.xlane.f32.xlu0 %v1210_v30  ;;  %5691 = vmatprep.subr.mxu0 %v6266_v55  ;;  %v5292_v30 = vunpack.c.l.bf16 %v5291_v44 }
 0x4b6   :  { %v1215_v41 = vsel %vm1209_vm1, %v1214_v60, 0.0  ;;  %5692 = vmatpush3.msra.mxu0 %v5261_v15 }
 0x4b7   :  { %1216 = vadd.xlane.f32.xlu1 %v1215_v41  ;;  %5693 = vmatprep.subr.mxu0 %v6266_v55 }
 0x4b8   :  { %5694 = vmatpush3.msra.mxu0 %v5260_v51 }
 0x4b9   :  { %5695 = vmatprep.subr.mxu0 %v6266_v55 }
 0x4ba   :  { %5696 = vmatpush3.msra.mxu0 %v5257_v2 }
 0x4bb   :  { %5697 = vmatprep.subr.mxu0 %v6266_v55 }
 0x4bc   :  { %5698 = vmatpush3.msra.mxu0 %v5256_v50 }
 0x4bd   :  { %5699 = vmatprep.subr.mxu0 %v6266_v55 }
 0x4be   :  { %5700 = vmatpush3.msra.mxu0 %v5253_v24  ;;  %v5329_v24 = vunpack.c.h.bf16 %v5429_v3 }
 0x4bf   :  { %5701 = vmatprep.subr.mxu0 %v6266_v55 }
 0x4c0   :  { %5702 = vmatpush3.msra.mxu0 %v5252_v17 }
 0x4c1   :  { %5749 = vmatprep.subr.mxu0 %v6266_v55 }
 0x53e   :  { %v1212_v11 = vpop.xlane.xlu0 %1211 }
 0x53f   :  { %v1213_v33 = vmul.f32 0.0078125, %v1212_v11 }
 0x540   :  { %v1217_v0 = vpop.xlane.xlu1 %1216 }
 0x541   :  { %v1219_v5 = vmul.f32 %v1213_v33, %v1213_v33  ;;  %v1218_v35 = vmul.f32 0.0078125, %v1217_v0  ;;  %v5426_v0 = vld [vmem:[#allocation9 + $0x28] sm:$0xff]  }
 0x543   :  { %v1220_v9 = vsub.f32 %v1218_v35, %v1219_v5  ;;  %v5305_v35 = vunpack.c.h.bf16 %v5426_v0 }
 0x545   :  { %v1222_v4 = vadd.f32 1e-05, %v1220_v9  ;;  %v5299_v9 = vld [vmem:[#allocation9 + $0x20] sm:$0xff]  }
 0x547   :  { %6113 = vrsqrt.f32 %v1222_v4  ;;  %v5304_v4 = vunpack.c.l.bf16 %v5426_v0 }
 0x554   :  { %v6114_v46 = vpop.eup %6113 }
 0x555   :  { %v1224_v59 = vmul.f32 %v6114_v46, %v1221_v16  ;;  %v5301_v16 = vunpack.c.h.bf16 %v5299_v9  ;;  %v5427_v46 = vld [vmem:[#allocation9 + $0x38] sm:$0xff]  }
 0x557   :  { %1230 = vperm.xlu0 %6109, %v1224_v59   ;;  %v1226_v14 = vmul.f32 %v1224_v59, %v1213_v33  ;;  %v5300_v59 = vunpack.c.l.bf16 %v5299_v9  ;;  %v5339_v9 = vld [vmem:[#allocation9 + $0x70] sm:$0xff]  }
 0x559   :  { %v1227_v43 = vsub.f32 %v1225_v49, %v1226_v14  ;;  %v5313_v49 = vunpack.c.h.bf16 %v5427_v46  ;;  %v5307_v14 = vld [vmem:[#allocation9 + $0x30] sm:$0xff]  }
 0x55a   :  { %v5309_v57 = vunpack.c.h.bf16 %v5307_v14  ;;  %v5308_v61 = vunpack.c.l.bf16 %v5307_v14 }
 0x55b   :  { %1236 = vperm.xlu1 %6110, %v1227_v43   ;;  %2062 = vrot.lane.b32.xlu0 %v7121_v37, %s6248_s28  ;;  %v5312_v43 = vunpack.c.l.bf16 %v5427_v46  ;;  %v5341_v46 = vunpack.c.h.bf16 %v5339_v9 }
 0x55f   :  { %2376 = vrot.lane.b32.xlu0 %v7121_v37, %s6271_s24 }
 0x563   :  { %2690 = vrot.lane.b32.xlu0 %v7121_v37, %s6273_s6 }
 0x5d2   :  { %v1231_v19 = vpop.permute.xlu0 %1230 }
 0x5d3   :  { %v1233_v48 = vmul.f32 %v1231_v19, %v1208_v27  ;;  %v5293_v27 = vunpack.c.h.bf16 %v5291_v44  ;;  %v5331_v44 = vld [vmem:[#allocation9 + $0x60] sm:$0xff]  }
 0x5d6   :  { %v1237_v6 = vpop.permute.xlu1 %1236  ;;  %v2063_v50 = vpop.permute.xlu0 %2062 }
 0x5d7   :  { %v7077_v58 = vadd.f32 %v1237_v6, %v1233_v48 }
 0x5d9   :  { %v1240_v53 = vmax.f32 %v7077_v58, 0.0  ;;  %v5428_v58 = vld [vmem:[#allocation9 + $0x48] sm:$0xff]  }
 0x5da   :  { %v5321_v42 = vunpack.c.h.bf16 %v5428_v58  ;;  %v5320_v7 = vunpack.c.l.bf16 %v5428_v58  ;;  %v2377_v0 = vpop.permute.xlu0 %2376 }
 0x5db   :  { %1242 = vrot.lane.b32.xlu1 %v1240_v53, %s6244_s26 }
 0x64d   :  { %v1243_v8 = vpop.permute.xlu1 %1242 }
 0x64e   :  { %v1245_v39 = vmax.f32 %v1240_v53, %v1243_v8 }
 0x650   :  { %1247 = vrot.lane.b32.xlu1 %v1245_v39, %s6264_s29 }
 0x654   :  { %1516 = vrot.lane.b32.xlu1 %v7121_v37, %s6268_s8 }
 0x658   :  { %1748 = vrot.lane.b32.xlu1 %v7121_v37, %s6264_s29 }
 0x65c   :  { %1905 = vrot.lane.b32.xlu1 %v7121_v37, %s6269_s23 }
 0x660   :  { %2219 = vrot.lane.b32.xlu1 %v7121_v37, %s6270_s1 }
 0x664   :  { %2533 = vrot.lane.b32.xlu1 %v7121_v37, %s6272_s2 }
 0x6c2   :  { %v1248_v25 = vpop.permute.xlu1 %1247 }
 0x6c3   :  { %v1250_v23 = vmax.f32 %v1245_v39, %v1248_v25  ;;  %v5430_v25 = vld [vmem:[#allocation9 + $0x68] sm:$0xff]  }
 0x6c4   :  { %v5337_v1 = vunpack.c.h.bf16 %v5430_v25 }
 0x6c5   :  { %5704 = vmatmul.mubr.f32.vlgmr.msra.gmra.mxu0 %v1250_v23 }
 0x6c6   :  { %5751 = vmatprep.mubr.msk.f32.mxu0 %vm6267_vm10, %v6266_v55  ;;  %v1517_v11 = vpop.permute.xlu1 %1516 }
 0x6ca   :  { %v1749_v48 = vpop.permute.xlu1 %1748 }
 0x6ce   :  { %v1906_v10 = vpop.permute.xlu1 %1905 }
 0x6d2   :  { %v2220_v23 = vpop.permute.xlu1 %2219 }
 0x785   :  { %v7128_v34 = vpop.f32.mrf.mxu0 }
 0x786   :  { %5715 = vmatmul.mubr.msk.f32.vlgmr.msra.gmra.mxu1 %vm1362_vm2, %v7128_v34 }
 0x787   :  { %5718 = vmatpush3.msra.mxu1 %v5297_v31  ;;  %v5705_v18 = vpop.f32.mrf.mxu0  ;;  %5725 = vmatprep.mubr.msk.f32.mxu1 %vm6267_vm10, %v6266_v55 }
 0x788   :  { %5719 = vmatprep.subr.mxu1 %v6266_v55 }
 0x789   :  { %5720 = vmatpush3.msra.mxu1 %v5296_v63  ;;  %v5336_v63 = vunpack.c.l.bf16 %v5430_v25 }
 0x78a   :  { %5721 = vmatprep.subr.mxu1 %v6266_v55 }
 0x78b   :  { %5722 = vmatpush3.msra.mxu1 %v5293_v27  ;;  %v5333_v27 = vunpack.c.h.bf16 %v5331_v44 }
 0x78c   :  { %5723 = vmatprep.subr.mxu1 %v6266_v55 }
 0x78d   :  { %5724 = vmatpush3.msra.mxu1 %v5292_v30  ;;  %v5332_v30 = vunpack.c.l.bf16 %v5331_v44 }
 0x78e   :  { %5726 = vmatmul.mubr.msk.f32.vlgmr.msra.gmra.mxu1 %vm1362_vm2, %v7128_v34  ;;  %5728 = vmatprep.subr.mxu1 %v6266_v55 }
 0x78f   :  { %5730 = vmatprep.mubr.msk.f32.mxu1 %vm6267_vm10, %v6266_v55 }
 0x846   :  { %v1432_v60 = vpop.f32.mrf.mxu1 }
 0x848   :  { %v5716_v41 = vpop.f32.mrf.mxu1 }
 0x84e   :  { %v1511_v33 = vpop.f32.mrf.mxu1 }
 0x84f   :  { %5729 = vmatpush3.msk.msra.mxu1 %vm1209_vm1, %v1511_v33  ;;  %v5431_v33 = vld [vmem:[#allocation9 + $0x78] sm:$0xff]  }
 0x850   :  { %v5727_v5 = vpop.f32.mrf.mxu1  ;;  %5731 = vmatmul.mubr.msk.f32.vlgmr.msra.gmra.mxu1 %vm1518_vm4, %v1517_v11  ;;  %5733 = vmatprep.subr.mxu1 %v6266_v55 }
 0x851   :  { %5734 = vmatpush3.msk.msra.mxu1 %vm1209_vm1, %v1432_v60  ;;  %5735 = vmatprep.mubr.msk.f32.mxu1 %vm6267_vm10, %v6266_v55  ;;  %v5345_v5 = vunpack.c.h.bf16 %v5431_v33 }
 0x852   :  { %5738 = vmatprep.subr.mxu1 %v6266_v55 }
 0x854   :  { %5736 = vmatmul.mubr.msk.f32.vlgmr.msra.gmra.mxu1 %vm1518_vm4, %v7121_v37 }
 0x855   :  { %5739 = vmatpush3.msra.mxu1 %v5305_v35  ;;  %5746 = vmatprep.mubr.msk.f32.mxu1 %vm6267_vm10, %v6266_v55 }
 0x856   :  { %5740 = vmatprep.subr.mxu1 %v6266_v55 }
 0x857   :  { %5741 = vmatpush3.msra.mxu1 %v5304_v4  ;;  %v5344_v4 = vunpack.c.l.bf16 %v5431_v33 }
 0x858   :  { %5742 = vmatprep.subr.mxu1 %v6266_v55 }
 0x859   :  { %5743 = vmatpush3.msra.mxu1 %v5301_v16 }
 0x85a   :  { %5744 = vmatprep.subr.mxu1 %v6266_v55 }
 0x85b   :  { %5745 = vmatpush3.msra.mxu1 %v5300_v59  ;;  %v5340_v59 = vunpack.c.l.bf16 %v5339_v9  ;;  %v5436_v9 = vld [vmem:[%s7470_s13 + $0x20] sm:$0xff]  }
 0x85c   :  { %5747 = vmatmul.mubr.msk.f32.vlgmr.msra.gmra.mxu1 %vm1362_vm2, %v7128_v34  ;;  %5754 = vmatprep.subr.mxu1 %v6266_v55 }
 0x85d   :  { %5755 = vmatpush3.msra.mxu1 %v5313_v49  ;;  %5762 = vmatprep.mubr.msk.f32.mxu1 %vm6267_vm10, %v6266_v55 }
 0x85e   :  { %5756 = vmatprep.subr.mxu1 %v6266_v55 }
 0x85f   :  { %5757 = vmatpush3.msra.mxu1 %v5312_v43 }
 0x860   :  { %5758 = vmatprep.subr.mxu1 %v6266_v55 }
 0x861   :  { %5759 = vmatpush3.msra.mxu1 %v5309_v57  ;;  %v5432_v57 = vld [vmem:[#allocation9 + $0x88] sm:$0xff]  }
 0x862   :  { %5760 = vmatprep.subr.mxu1 %v6266_v55 }
 0x863   :  { %5761 = vmatpush3.msra.mxu1 %v5308_v61  ;;  %v2534_v61 = vpop.permute.xlu1 %2533 }
 0x864   :  { %5763 = vmatmul.mubr.msk.f32.vlgmr.msra.gmra.mxu1 %vm1362_vm2, %v7128_v34  ;;  %5781 = vmatprep.subr.mxu1 %v6266_v55 }
 0x865   :  { %5783 = vmatprep.mubr.msk.f32.mxu1 %vm6267_vm10, %v6266_v55 }
 0x910   :  { %v1590_v38 = vpop.f32.mrf.mxu1 }
 0x912   :  { %v5732_v52 = vpop.f32.mrf.mxu1 }
 0x914   :  { %v1665_v19 = vpop.f32.mrf.mxu1 }
 0x915   :  { %v1666_v32 = vadd.f32 %v1665_v19, %v1590_v38  ;;  %v5353_v38 = vunpack.c.h.bf16 %v5432_v57  ;;  %v5347_v19 = vld [vmem:[#allocation9 + $0x80] sm:$0xff]  }
 0x916   :  { %v5737_v20 = vpop.f32.mrf.mxu1  ;;  %v5348_v37 = vunpack.c.l.bf16 %v5347_v19 }
 0x91c   :  { %v1744_v56 = vpop.f32.mrf.mxu1 }
 0x91d   :  { %5750 = vmatpush3.msk.msra.mxu0 %vm1209_vm1, %v1744_v56 }
 0x91e   :  { %v5748_v6 = vpop.f32.mrf.mxu1  ;;  %5752 = vmatmul.mubr.msk.f32.vlgmr.msra.gmra.mxu0 %vm1518_vm4, %v1749_v48  ;;  %5765 = vmatprep.subr.mxu0 %v6266_v55  ;;  %v5349_v48 = vunpack.c.h.bf16 %v5347_v19  ;;  %v3121_v19 = vld [vmem:[%s7471_s14 + $0x8] sm:$0xff] }
 0x91f   :  { %5767 = vmatprep.mubr.msk.f32.mxu0 %vm6267_vm10, %v6266_v55 }
 0x924   :  { %v1901_v53 = vpop.f32.mrf.mxu1 }
 0x925   :  { %5766 = vmatpush3.msk.msra.mxu0 %vm1209_vm1, %v1901_v53 }
 0x926   :  { %v5764_v22 = vpop.f32.mrf.mxu1  ;;  %5768 = vmatmul.mubr.msk.f32.vlgmr.msra.gmra.mxu0 %vm1518_vm4, %v1906_v10  ;;  %5770 = vmatprep.subr.mxu0 %v6266_v55  ;;  %v2691_v10 = vpop.permute.xlu0 %2690 }
 0x927   :  { %5771 = vmatpush3.msra.mxu0 %v5321_v42  ;;  %5778 = vmatprep.mubr.msk.f32.mxu0 %vm6267_vm10, %v6266_v55 }
 0x928   :  { %5772 = vmatprep.subr.mxu0 %v6266_v55 }
 0x929   :  { %5773 = vmatpush3.msra.mxu0 %v5320_v7 }
 0x92a   :  { %5774 = vmatprep.subr.mxu0 %v6266_v55 }
 0x92b   :  { %5775 = vmatpush3.msra.mxu0 %v5317_v12 }
 0x92c   :  { %5776 = vmatprep.subr.mxu0 %v6266_v55 }
 0x92d   :  { %5777 = vmatpush3.msra.mxu0 %v5316_v13 }
 0x92e   :  { %5779 = vmatmul.mubr.msk.f32.vlgmr.msra.gmra.mxu0 %vm1362_vm2, %v7128_v34  ;;  %5797 = vmatprep.subr.mxu0 %v6266_v55 }
 0x92f   :  { %5799 = vmatprep.mubr.msk.f32.mxu0 %vm6267_vm10, %v6266_v55 }
 0x9de   :  { %v1821_v45 = vpop.f32.mrf.mxu0 }
 0x9df   :  { %v1825_v62 = vadd.f32 %v1821_v45, %v1666_v32  ;;  %v5352_v32 = vunpack.c.l.bf16 %v5432_v57  ;;  %v3122_v57 = vld [vmem:[%s7474_s17] sm:$0xff]  }
 0x9e0   :  { %v5753_v15 = vpop.f32.mrf.mxu0 }
 0x9e6   :  { %v1978_v29 = vpop.f32.mrf.mxu0 }
 0x9e7   :  { %v1982_v51 = vadd.f32 %v1978_v29, %v1825_v62 }
 0x9e8   :  { %v5769_v2 = vpop.f32.mrf.mxu0 }
 0x9ee   :  { %v2058_v17 = vpop.f32.mrf.mxu0 }
 0x9ef   :  { %5782 = vmatpush3.msk.msra.mxu1 %vm1209_vm1, %v2058_v17 }
 0x9f0   :  { %v5780_v47 = vpop.f32.mrf.mxu0  ;;  %5784 = vmatmul.mubr.msk.f32.vlgmr.msra.gmra.mxu1 %vm1518_vm4, %v2063_v50  ;;  %5786 = vmatprep.subr.mxu1 %v6266_v55  ;;  %v5433_v50 = vld [vmem:[%s7470_s13 + $0x8] sm:$0xff]  }
 0x9f1   :  { %5787 = vmatpush3.msra.mxu1 %v5329_v24  ;;  %5794 = vmatprep.mubr.msk.f32.mxu1 %vm6267_vm10, %v6266_v55  ;;  %v5435_v24 = vld [vmem:[%s7470_s13 + $0x18] sm:$0xff]   ;;  %v5361_v17 = vunpack.c.h.bf16 %v5433_v50  ;;  %v5360_v47 = vunpack.c.l.bf16 %v5433_v50 }
 0x9f2   :  { %5788 = vmatprep.subr.mxu1 %v6266_v55  ;;  %v5369_v28 = vunpack.c.h.bf16 %v5435_v24  ;;  %v5097_v50 = vld [vmem:[%s7474_s17 + $0x18] sm:$0xff]  }
 0x9f3   :  { %5789 = vmatpush3.msra.mxu1 %v5328_v21  ;;  %v2779_v21 = vld [vmem:[%s7467_s10] sm:$0xff] }
 0x9f4   :  { %5790 = vmatprep.subr.mxu1 %v6266_v55 }
 0x9f5   :  { %5791 = vmatpush3.msra.mxu1 %v5325_v54  ;;  %v5368_v54 = vunpack.c.l.bf16 %v5435_v24  ;;  %v4068_v24 = vunpack.c.l.bf16 %v5097_v50 }
 0x9f6   :  { %5792 = vmatprep.subr.mxu1 %v6266_v55 }
 0x9f7   :  { %5793 = vmatpush3.msra.mxu1 %v5324_v40 }
 0x9f8   :  { %5795 = vmatmul.mubr.msk.f32.vlgmr.msra.gmra.mxu1 %vm1362_vm2, %v7128_v34  ;;  %5813 = vmatprep.subr.mxu1 %v6266_v55 }
 0x9f9   :  { %5815 = vmatprep.mubr.msk.f32.mxu1 %vm6267_vm10, %v6266_v55 }
 0xab0   :  { %v2135_v36 = vpop.f32.mrf.mxu1 }
 0xab1   :  { %v2139_v8 = vadd.f32 %v2135_v36, %v1982_v51  ;;  %v5355_v36 = vld [vmem:[%s7470_s13] sm:$0xff]  }
 0xab2   :  { %v5785_v39 = vpop.f32.mrf.mxu1  ;;  %v5357_v25 = vunpack.c.h.bf16 %v5355_v36  ;;  %v5356_v44 = vunpack.c.l.bf16 %v5355_v36 }
 0xab8   :  { %v2215_v31 = vpop.f32.mrf.mxu1 }
 0xab9   :  { %5798 = vmatpush3.msk.msra.mxu0 %vm1209_vm1, %v2215_v31 }
 0xaba   :  { %v5796_v18 = vpop.f32.mrf.mxu1  ;;  %5800 = vmatmul.mubr.msk.f32.vlgmr.msra.gmra.mxu0 %vm1518_vm4, %v2220_v23  ;;  %5802 = vmatprep.subr.mxu0 %v6266_v55 }
 0xabb   :  { %5803 = vmatpush3.msra.mxu0 %v5337_v1  ;;  %5810 = vmatprep.mubr.msk.f32.mxu0 %vm6267_vm10, %v6266_v55  ;;  %v2783_v1 = vld [vmem:[%s7468_s11] sm:$0xff] }
 0xabc   :  { %5804 = vmatprep.subr.mxu0 %v6266_v55 }
 0xabd   :  { %5805 = vmatpush3.msra.mxu0 %v5336_v63 }
 0xabe   :  { %5806 = vmatprep.subr.mxu0 %v6266_v55 }
 0xabf   :  { %5807 = vmatpush3.msra.mxu0 %v5333_v27 }
 0xac0   :  { %5808 = vmatprep.subr.mxu0 %v6266_v55 }
 0xac1   :  { %5809 = vmatpush3.msra.mxu0 %v5332_v30 }
 0xac2   :  { %5811 = vmatmul.mubr.msk.f32.vlgmr.msra.gmra.mxu0 %vm1362_vm2, %v7128_v34  ;;  %5829 = vmatprep.subr.mxu0 %v6266_v55 }
 0xac3   :  { %5831 = vmatprep.mubr.msk.f32.mxu0 %vm6267_vm10, %v6266_v55 }
 0xb7a   :  { %v2292_v60 = vpop.f32.mrf.mxu0 }
 0xb7b   :  { %v2296_v41 = vadd.f32 %v2292_v60, %v2139_v8  ;;  %v5434_v8 = vld [vmem:[%s7470_s13 + $0x10] sm:$0xff]   ;;  %v5437_v60 = vld [vmem:[%s7470_s13 + $0x28] sm:$0xff]  }
 0xb7c   :  { %v5801_v11 = vpop.f32.mrf.mxu0  ;;  %v5365_v23 = vunpack.c.h.bf16 %v5434_v8  ;;  %v5364_v63 = vunpack.c.l.bf16 %v5434_v8 }
 0xb82   :  { %v2372_v35 = vpop.f32.mrf.mxu0 }
 0xb83   :  { %5814 = vmatpush3.msk.msra.mxu1 %vm1209_vm1, %v2372_v35 }
 0xb84   :  { %v5812_v16 = vpop.f32.mrf.mxu0  ;;  %5816 = vmatmul.mubr.msk.f32.vlgmr.msra.gmra.mxu1 %vm1518_vm4, %v2377_v0  ;;  %5818 = vmatprep.subr.mxu1 %v6266_v55  ;;  %v5377_v0 = vunpack.c.h.bf16 %v5437_v60 }
 0xb85   :  { %5819 = vmatpush3.msra.mxu1 %v5345_v5  ;;  %5826 = vmatprep.mubr.msk.f32.mxu1 %vm6267_vm10, %v6266_v55  ;;  %v5376_v16 = vunpack.c.l.bf16 %v5437_v60 }
 0xb86   :  { %5820 = vmatprep.subr.mxu1 %v6266_v55 }
 0xb87   :  { %5821 = vmatpush3.msra.mxu1 %v5344_v4  ;;  %v5438_v4 = vld [vmem:[%s7470_s13 + $0x30] sm:$0xff]  }
 0xb88   :  { %5822 = vmatprep.subr.mxu1 %v6266_v55 }
 0xb89   :  { %5823 = vmatpush3.msra.mxu1 %v5341_v46 }
 0xb8a   :  { %5824 = vmatprep.subr.mxu1 %v6266_v55 }
 0xb8b   :  { %5825 = vmatpush3.msra.mxu1 %v5340_v59  ;;  %v5373_v59 = vunpack.c.h.bf16 %v5436_v9 }
 0xb8c   :  { %5827 = vmatmul.mubr.msk.f32.vlgmr.msra.gmra.mxu1 %vm1362_vm2, %v7128_v34  ;;  %5845 = vmatprep.subr.mxu1 %v6266_v55 }
 0xb8d   :  { %5847 = vmatprep.mubr.msk.f32.mxu1 %vm6267_vm10, %v6266_v55 }
 0xc44   :  { %v2449_v49 = vpop.f32.mrf.mxu1 }
 0xc45   :  { %v2453_v14 = vadd.f32 %v2449_v49, %v2296_v41  ;;  %v5439_v41 = vld [vmem:[%s7470_s13 + $0x38] sm:$0xff]   ;;  %v5381_v49 = vunpack.c.h.bf16 %v5438_v4 }
 0xc46   :  { %v5817_v43 = vpop.f32.mrf.mxu1  ;;  %v5385_v5 = vunpack.c.h.bf16 %v5439_v41  ;;  %v5384_v46 = vunpack.c.l.bf16 %v5439_v41 }
 0xc47   :  { %v5380_v43 = vunpack.c.l.bf16 %v5438_v4 }
 0xc4c   :  { %v2529_v52 = vpop.f32.mrf.mxu1 }
 0xc4d   :  { %5830 = vmatpush3.msk.msra.mxu0 %vm1209_vm1, %v2529_v52  ;;  %v3120_v52 = vld [vmem:[%s7471_s14] sm:$0xff]  ;;  %s6274_s14 = smov 88  }
 0xc4e   :  { %v5828_v20 = vpop.f32.mrf.mxu1  ;;  %5832 = vmatmul.mubr.msk.f32.vlgmr.msra.gmra.mxu0 %vm1518_vm4, %v2534_v61  ;;  %5834 = vmatprep.subr.mxu0 %v6266_v55  ;;  %v3123_v61 = vunpack.c.l.bf16 %v3122_v57 }
 0xc4f   :  { %5835 = vmatpush3.msra.mxu0 %v5353_v38  ;;  %5842 = vmatprep.mubr.msk.f32.mxu0 %vm6267_vm10, %v6266_v55  ;;  %v3199_v38 = vunpack.c.h.bf16 %v3122_v57 }
 0xc50   :  { %5836 = vmatprep.subr.mxu0 %v6266_v55 }
 0xc51   :  { %5837 = vmatpush3.msra.mxu0 %v5352_v32 }
 0xc52   :  { %5838 = vmatprep.subr.mxu0 %v6266_v55 }
 0xc53   :  { %5839 = vmatpush3.msra.mxu0 %v5349_v48 }
 0xc54   :  { %5840 = vmatprep.subr.mxu0 %v6266_v55 }
 0xc55   :  { %5841 = vmatpush3.msra.mxu0 %v5348_v37 }
 0xc56   :  { %5843 = vmatmul.mubr.msk.f32.vlgmr.msra.gmra.mxu0 %vm1362_vm2, %v7128_v34  ;;  %5861 = vmatprep.subr.mxu0 %v6266_v55 }
 0xc57   :  { %5869 = vmatprep.mubr.msk.f32.mxu0 %vm6267_vm10, %v6266_v55  ;;  %5862 = vmatpush3.msra.mxu0 %v5369_v28  ;;  %v5105_v28 = vld [vmem:[%s7474_s17 + $0x20] sm:$0xf] }
 0xc58   :  { %5863 = vmatprep.subr.mxu0 %v6266_v55 }
 0xc59   :  { %5864 = vmatpush3.msra.mxu0 %v5368_v54 }
 0xc5a   :  { %5865 = vmatprep.subr.mxu0 %v6266_v55 }
 0xc5b   :  { %5866 = vmatpush3.msra.mxu0 %v5365_v23 }
 0xc5c   :  { %5867 = vmatprep.subr.mxu0 %v6266_v55 }
 0xc5d   :  { %5868 = vmatpush3.msra.mxu0 %v5364_v63 }
 0xc5e   :  { %5883 = vmatprep.subr.mxu0 %v6266_v55 }
 0xd0e   :  { %v2606_v56 = vpop.f32.mrf.mxu0 }
 0xd0f   :  { %v2610_v6 = vadd.f32 %v2606_v56, %v2453_v14  ;;  %v5372_v14 = vunpack.c.l.bf16 %v5436_v9 }
 0xd10   :  { %v5833_v58 = vpop.f32.mrf.mxu0 }
 0xd16   :  { %v2686_v42 = vpop.f32.mrf.mxu0 }
 0xd17   :  { %5846 = vmatpush3.msk.msra.mxu1 %vm1209_vm1, %v2686_v42 }
 0xd18   :  { %v5844_v53 = vpop.f32.mrf.mxu0  ;;  %5848 = vmatmul.mubr.msk.f32.vlgmr.msra.gmra.mxu1 %vm1518_vm4, %v2691_v10  ;;  %5850 = vmatprep.subr.mxu1 %v6266_v55 }
 0xd19   :  { %5858 = vmatprep.mubr.msk.f32.mxu1 %vm6267_vm10, %v6266_v55  ;;  %5851 = vmatpush3.msra.mxu1 %v5361_v17  ;;  %v4226_v17 = vunpack.c.h.bf16 %v5097_v50 }
 0xd1a   :  { %5852 = vmatprep.subr.mxu1 %v6266_v55 }
 0xd1b   :  { %5853 = vmatpush3.msra.mxu1 %v5360_v47 }
 0xd1c   :  { %5854 = vmatprep.subr.mxu1 %v6266_v55 }
 0xd1d   :  { %5855 = vmatpush3.msra.mxu1 %v5357_v25 }
 0xd1e   :  { %5856 = vmatprep.subr.mxu1 %v6266_v55 }
 0xd1f   :  { %5857 = vmatpush3.msra.mxu1 %v5356_v44 }
 0xd20   :  { %5872 = vmatprep.subr.mxu1 %v6266_v55 }
 0xdd8   :  { %v2763_v34 = vpop.f32.mrf.mxu1 }
 0xdd9   :  { %v2767_v26 = vadd.f32 %v2763_v34, %v2610_v6 }
 0xdda   :  { %v5849_v7 = vpop.f32.mrf.mxu1 }
 0xddb   :  { %v2768_v22 = vsel %vm1362_vm2, %v2767_v26, 0.0  ;;  %v2772_v12 = vmul.f32 %v2767_v26, %v2767_v26  ;;  %v5081_v7 = vld [vmem:[%s7474_s17 + $0x8] sm:$0xff]  }
 0xddc   :  { %2769 = vadd.xlane.f32.xlu1 %v2768_v22 }
 0xddd   :  { %v2773_v13 = vsel %vm1362_vm2, %v2772_v12, 0.0 }
 0xdde   :  { %2774 = vadd.xlane.f32.xlu0 %v2773_v13 }
 0xe65   :  { %v2770_v45 = vpop.xlane.xlu1 %2769 }
 0xe66   :  { %v2771_v62 = vmul.f32 0.03125, %v2770_v45  ;;  %v3436_v45 = vunpack.c.l.bf16 %v5081_v7 }
 0xe67   :  { %v2775_v15 = vpop.xlane.xlu0 %2774 }
 0xe68   :  { %v2777_v29 = vmul.f32 %v2771_v62, %v2771_v62  ;;  %v2776_v51 = vmul.f32 0.03125, %v2775_v15 }
 0xe6a   :  { %v2778_v2 = vsub.f32 %v2776_v51, %v2777_v29  ;;  %v3594_v29 = vunpack.c.h.bf16 %v5081_v7  ;;  %v5089_v51 = vld [vmem:[%s7474_s17 + $0x10] sm:$0xff]  }
 0xe6c   :  { %v2780_v3 = vadd.f32 1e-05, %v2778_v2  ;;  %v3752_v2 = vunpack.c.l.bf16 %v5089_v51 }
 0xe6e   :  { %6115 = vrsqrt.f32 %v2780_v3  ;;  %v3910_v3 = vunpack.c.h.bf16 %v5089_v51 }
 0xe7b   :  { %v6116_v40 = vpop.eup %6115 }
 0xe7c   :  { %v2782_v39 = vmul.f32 %v6116_v40, %v2779_v21  ;;  %v4384_v21 = vunpack.c.l.bf16 %v5105_v28 }
 0xe7e   :  { %2788 = vperm.xlu0 %6109, %v2782_v39   ;;  %v2784_v31 = vmul.f32 %v2782_v39, %v2771_v62 }
 0xe80   :  { %v2785_v18 = vsub.f32 %v2783_v1, %v2784_v31 }
 0xe82   :  { %2794 = vperm.xlu1 %6110, %v2785_v18   ;;  %3274 = vrot.lane.b32.xlu0 %v3121_v19, %s6264_s29 }
 0xe86   :  { %3272 = vrot.lane.b32.xlu1 %v3120_v52, %s6264_s29  ;;  %3509 = vrot.lane.b32.xlu0 %v3121_v19, %s6248_s28  ;;  %s6276_s29 = smov 72  }
 0xe8a   :  { %3507 = vrot.lane.b32.xlu1 %v3120_v52, %s6248_s28  ;;  %3667 = vrot.lane.b32.xlu0 %v3121_v19, %s6271_s24  ;;  %s6275_s28 = smov 80  }
 0xe8e   :  { %3665 = vrot.lane.b32.xlu1 %v3120_v52, %s6271_s24  ;;  %3825 = vrot.lane.b32.xlu0 %v3121_v19, %s6273_s6 }
 0xe92   :  { %3823 = vrot.lane.b32.xlu1 %v3120_v52, %s6273_s6  ;;  %3983 = vrot.lane.b32.xlu0 %v3121_v19, %s6274_s14 }
 0xe96   :  { %3981 = vrot.lane.b32.xlu1 %v3120_v52, %s6274_s14  ;;  %4141 = vrot.lane.b32.xlu0 %v3121_v19, %s6275_s28 }
 0xe9a   :  { %4139 = vrot.lane.b32.xlu1 %v3120_v52, %s6275_s28  ;;  %4299 = vrot.lane.b32.xlu0 %v3121_v19, %s6276_s29 }
 0xe9e   :  { %4297 = vrot.lane.b32.xlu1 %v3120_v52, %s6276_s29  ;;  %4457 = vrot.lane.b32.xlu0 %v3121_v19, %s6232_s5 }
 0xea2   :  { %4455 = vrot.lane.b32.xlu1 %v3120_v52, %s6232_s5 }
 0xef9   :  { %v2789_v27 = vpop.permute.xlu0 %2788 }
 0xefa   :  { %v2791_v30 = vmul.f32 %v2789_v27, %v2767_v26 }
 0xefd   :  { %v2795_v11 = vpop.permute.xlu1 %2794  ;;  %v3275_v22 = vpop.permute.xlu0 %3274 }
 0xefe   :  { %v2797_v33 = vadd.f32 %v2795_v11, %v2791_v30 }
 0xf00   :  { %v2798_v35 = vmax.f32 %v2797_v33, 0.0 }
 0xf01   :  { %v3273_v26 = vpop.permute.xlu1 %3272  ;;  %v3510_v54 = vpop.permute.xlu0 %3509 }
 0xf02   :  { %5859 = vmatmul.mubr.msk.f32.vlgmr.msra.gmra.mxu1 %vm1362_vm2, %v2798_v35  ;;  %5870 = vmatmul.mubr.msk.f32.vlgmr.msra.gmra.mxu0 %vm1362_vm2, %v2798_v35 }
 0xf03   :  { %5873 = vmatpush3.msra.mxu1 %v5377_v0  ;;  %5884 = vmatpush3.msra.mxu0 %v5385_v5 }
 0xf04   :  { %5874 = vmatprep.subr.mxu1 %v6266_v55  ;;  %5885 = vmatprep.subr.mxu0 %v6266_v55 }
 0xf05   :  { %5875 = vmatpush3.msra.mxu1 %v5376_v16  ;;  %5886 = vmatpush3.msra.mxu0 %v5384_v46  ;;  %v3508_v47 = vpop.permute.xlu1 %3507  ;;  %v3668_v36 = vpop.permute.xlu0 %3667 }
 0xf06   :  { %5876 = vmatprep.subr.mxu1 %v6266_v55  ;;  %5887 = vmatprep.subr.mxu0 %v6266_v55 }
 0xf07   :  { %5877 = vmatpush3.msra.mxu1 %v5373_v59  ;;  %5888 = vmatpush3.msra.mxu0 %v5381_v49 }
 0xf08   :  { %5878 = vmatprep.subr.mxu1 %v6266_v55  ;;  %5889 = vmatprep.subr.mxu0 %v6266_v55 }
 0xf09   :  { %5879 = vmatpush3.msra.mxu1 %v5372_v14  ;;  %5880 = vmatprep.mubr.msk.f32.mxu1 %vm6267_vm10, %v6266_v55  ;;  %v3666_v40 = vpop.permute.xlu1 %3665  ;;  %v3826_v1 = vpop.permute.xlu0 %3825 }
 0xf0a   :  { %5890 = vmatpush3.msra.mxu0 %v5380_v43  ;;  %5891 = vmatprep.mubr.msk.f32.mxu0 %vm6267_vm10, %v6266_v55 }
 0xf0b   :  { %5881 = vmatmul.mubr.msk.f32.vlgmr.msra.gmra.mxu1 %vm1362_vm2, %v2798_v35  ;;  %5892 = vmatmul.mubr.msk.f32.vlgmr.msra.gmra.mxu0 %vm1362_vm2, %v2798_v35 }
 0xf0c   :  { %5894 = vmatprep.subr.mxu1 %v6266_v55  ;;  %5899 = vmatprep.subr.mxu0 %v6266_v55 }
 0xf0d   :  { %5896 = vmatprep.mubr.msk.f32.mxu1 %vm6267_vm10, %v6266_v55  ;;  %5901 = vmatprep.mubr.msk.f32.mxu0 %vm6267_vm10, %v6266_v55  ;;  %v3824_v39 = vpop.permute.xlu1 %3823  ;;  %v3984_v18 = vpop.permute.xlu0 %3983 }
 0xf0e   :  { %5895 = vmatpush3.msra.mxu1 %v3123_v61  ;;  %5900 = vmatpush3.msra.mxu0 %v3199_v38 }
 0xf11   :  { %v4142_v11 = vpop.permute.xlu0 %4141 }
 0xf15   :  { %v4300_v9 = vpop.permute.xlu0 %4299 }
 0xf19   :  { %v4458_v49 = vpop.permute.xlu0 %4457 }
 0xfc2   :  { %v2876_v32 = vpop.f32.mrf.mxu1  ;;  %v2955_v20 = vpop.f32.mrf.mxu0 }
 0xfc3   :  { %v2959_v56 = vmax.f32 %v2876_v32, %v2955_v20 }
 0xfc4   :  { %v5860_v48 = vpop.f32.mrf.mxu1  ;;  %v5871_v37 = vpop.f32.mrf.mxu0 }
 0xfcb   :  { %v3035_v6 = vpop.f32.mrf.mxu1  ;;  %v3115_v58 = vpop.f32.mrf.mxu0 }
 0xfcc   :  { %v3039_v10 = vmax.f32 %v2959_v56, %v3035_v6 }
 0xfcd   :  { %v5882_v42 = vpop.f32.mrf.mxu1  ;;  %v5893_v53 = vpop.f32.mrf.mxu0 }
 0xfce   :  { %v7328_v34 = vmax.f32 %v3039_v10, %v3115_v58 }
 0xfd0   :  { %5897 = vmatmul.mubr.msk.f32.vlgmr.msra.gmra.mxu1 %vm1020_vm0, %v7328_v34  ;;  %5902 = vmatmul.mubr.msk.f32.vlgmr.msra.gmra.mxu0 %vm1020_vm0, %v7328_v34 }
 0xfd1   :  { %5911 = vmatprep.mubr.msk.f32.mxu0 %vm1020_vm0, %v3120_v52  ;;  %5906 = vmatprep.mubr.msk.f32.mxu1 %vm1020_vm0, %v3273_v26 }
0x1090   :  { %v3193_v12 = vpop.f32.mrf.mxu1  ;;  %v3266_v13 = vpop.f32.mrf.mxu0 }
0x1091   :  { %5904 = vmatprep.subr.mxu1 %v3266_v13  ;;  %5909 = vmatprep.subr.mxu0 %v3193_v12 }
0x1092   :  { %v5898_v62 = vpop.f32.mrf.mxu1  ;;  %v5903_v15 = vpop.f32.mrf.mxu0  ;;  %5905 = vmatpush3.msra.mxu1 %v3266_v13  ;;  %5910 = vmatpush3.msra.mxu0 %v3193_v12 }
0x1093   :  { %5907 = vmatmul.mubr.msk.f32.vlgmr.msra.gmra.mxu1 %vm1020_vm0, %v3275_v22  ;;  %5912 = vmatmul.mubr.msk.f32.vlgmr.msra.gmra.mxu0 %vm1020_vm0, %v3121_v19 }
0x1094   :  { %5914 = vmatprep.subr.mxu1 %v6266_v55  ;;  %5916 = vmatprep.mubr.msk.f32.mxu1 %vm6267_vm10, %v6266_v55 }
0x1095   :  { %5915 = vmatpush3.msra.mxu1 %v3436_v45  ;;  %5921 = vmatprep.mubr.msk.f32.mxu0 %vm1020_vm0, %v3508_v47 }
0x1096   :  { %5924 = vmatprep.subr.mxu1 %v6266_v55 }
0x1097   :  { %5917 = vmatmul.mubr.msk.f32.vlgmr.msra.gmra.mxu1 %vm1020_vm0, %v7328_v34 }
0x1098   :  { %5925 = vmatpush3.msra.mxu1 %v3594_v29  ;;  %5926 = vmatprep.mubr.msk.f32.mxu1 %vm6267_vm10, %v6266_v55 }
0x1099   :  { %5934 = vmatprep.subr.mxu1 %v6266_v55 }
0x109b   :  { %5927 = vmatmul.mubr.msk.f32.vlgmr.msra.gmra.mxu1 %vm1020_vm0, %v7328_v34 }
0x109c   :  { %5935 = vmatpush3.msra.mxu1 %v3752_v2  ;;  %5936 = vmatprep.mubr.msk.f32.mxu1 %vm6267_vm10, %v6266_v55 }
0x109d   :  { %5944 = vmatprep.subr.mxu1 %v6266_v55 }
0x109f   :  { %5937 = vmatmul.mubr.msk.f32.vlgmr.msra.gmra.mxu1 %vm1020_vm0, %v7328_v34 }
0x10a0   :  { %5945 = vmatpush3.msra.mxu1 %v3910_v3  ;;  %5946 = vmatprep.mubr.msk.f32.mxu1 %vm6267_vm10, %v6266_v55 }
0x10a1   :  { %5954 = vmatprep.subr.mxu1 %v6266_v55 }
0x10a3   :  { %5947 = vmatmul.mubr.msk.f32.vlgmr.msra.gmra.mxu1 %vm1020_vm0, %v7328_v34 }
0x10a4   :  { %5955 = vmatpush3.msra.mxu1 %v4068_v24  ;;  %5956 = vmatprep.mubr.msk.f32.mxu1 %vm6267_vm10, %v6266_v55 }
0x10a5   :  { %5964 = vmatprep.subr.mxu1 %v6266_v55 }
0x10a7   :  { %5957 = vmatmul.mubr.msk.f32.vlgmr.msra.gmra.mxu1 %vm1020_vm0, %v7328_v34 }
0x10a8   :  { %5965 = vmatpush3.msra.mxu1 %v4226_v17  ;;  %5966 = vmatprep.mubr.msk.f32.mxu1 %vm6267_vm10, %v6266_v55 }
0x10a9   :  { %5974 = vmatprep.subr.mxu1 %v6266_v55 }
0x10ab   :  { %5967 = vmatmul.mubr.msk.f32.vlgmr.msra.gmra.mxu1 %vm1020_vm0, %v7328_v34 }
0x10ac   :  { %5975 = vmatpush3.msra.mxu1 %v4384_v21  ;;  %5976 = vmatprep.mubr.msk.f32.mxu1 %vm6267_vm10, %v6266_v55  ;;  %v3982_v55 = vpop.permute.xlu1 %3981 }
0x10af   :  { %5977 = vmatmul.mubr.msk.f32.vlgmr.msra.gmra.mxu1 %vm1020_vm0, %v7328_v34 }
0x10b0   :  { %v4140_v30 = vpop.permute.xlu1 %4139 }
0x10b4   :  { %v4298_v0 = vpop.permute.xlu1 %4297 }
0x10b8   :  { %v4456_v16 = vpop.permute.xlu1 %4455 }
0x1153   :  { %v5908_v8 = vpop.f32.mrf.mxu1  ;;  %v5913_v43 = vpop.f32.mrf.mxu0 }
0x1154   :  { %v3431_v48 = vadd.f32 %v5913_v43, %v5908_v8 }
0x1155   :  { %v3346_v25 = vpop.f32.mrf.mxu1  ;;  %v3425_v57 = vpop.f32.mrf.mxu0 }
0x1156   :  { %v3426_v56 = vadd.f32 %v3425_v57, %v3346_v25 }
0x1157   :  { %v3503_v23 = vpop.f32.mrf.mxu1 }
0x1158   :  { %5919 = vmatprep.subr.mxu0 %v3503_v23 }
0x1159   :  { %v5918_v31 = vpop.f32.mrf.mxu1  ;;  %5920 = vmatpush3.msra.mxu0 %v3503_v23 }
0x115a   :  { %5922 = vmatmul.mubr.msk.f32.vlgmr.msra.gmra.mxu0 %vm1020_vm0, %v3510_v54 }
0x115b   :  { %v3661_v44 = vpop.f32.mrf.mxu1  ;;  %5931 = vmatprep.mubr.msk.f32.mxu0 %vm1020_vm0, %v3666_v40 }
0x115c   :  { %5929 = vmatprep.subr.mxu0 %v3661_v44 }
0x115d   :  { %v5928_v63 = vpop.f32.mrf.mxu1  ;;  %5930 = vmatpush3.msra.mxu0 %v3661_v44 }
0x115e   :  { %5932 = vmatmul.mubr.msk.f32.vlgmr.msra.gmra.mxu0 %vm1020_vm0, %v3668_v36 }
0x115f   :  { %v3819_v27 = vpop.f32.mrf.mxu1  ;;  %5941 = vmatprep.mubr.msk.f32.mxu0 %vm1020_vm0, %v3824_v39 }
0x1160   :  { %5939 = vmatprep.subr.mxu0 %v3819_v27 }
0x1161   :  { %v5938_v60 = vpop.f32.mrf.mxu1  ;;  %5940 = vmatpush3.msra.mxu0 %v3819_v27 }
0x1162   :  { %5942 = vmatmul.mubr.msk.f32.vlgmr.msra.gmra.mxu0 %vm1020_vm0, %v3826_v1 }
0x1163   :  { %v3977_v41 = vpop.f32.mrf.mxu1  ;;  %5951 = vmatprep.mubr.msk.f32.mxu0 %vm1020_vm0, %v3982_v55 }
0x1164   :  { %5949 = vmatprep.subr.mxu0 %v3977_v41 }
0x1165   :  { %v5948_v33 = vpop.f32.mrf.mxu1  ;;  %5950 = vmatpush3.msra.mxu0 %v3977_v41 }
0x1166   :  { %5952 = vmatmul.mubr.msk.f32.vlgmr.msra.gmra.mxu0 %vm1020_vm0, %v3984_v18 }
0x1167   :  { %v4135_v5 = vpop.f32.mrf.mxu1  ;;  %5961 = vmatprep.mubr.msk.f32.mxu0 %vm1020_vm0, %v4140_v30 }
0x1168   :  { %5959 = vmatprep.subr.mxu0 %v4135_v5 }
0x1169   :  { %v5958_v35 = vpop.f32.mrf.mxu1  ;;  %5960 = vmatpush3.msra.mxu0 %v4135_v5 }
0x116a   :  { %5962 = vmatmul.mubr.msk.f32.vlgmr.msra.gmra.mxu0 %vm1020_vm0, %v4142_v11  ;;  %v4562_v11 = vld [vmem:[%s7472_s15] sm:$0xff] }
0x116b   :  { %v4293_v4 = vpop.f32.mrf.mxu1  ;;  %5971 = vmatprep.mubr.msk.f32.mxu0 %vm1020_vm0, %v4298_v0  ;;  %v4563_v0 = vld [vmem:[%s7472_s15 + $0x8] sm:$0xff] }
0x116c   :  { %5969 = vmatprep.subr.mxu0 %v4293_v4 }
0x116d   :  { %v5968_v46 = vpop.f32.mrf.mxu1  ;;  %5970 = vmatpush3.msra.mxu0 %v4293_v4 }
0x116e   :  { %5972 = vmatmul.mubr.msk.f32.vlgmr.msra.gmra.mxu0 %vm1020_vm0, %v4300_v9  ;;  %v4571_v46 = vld [vmem:[%s7473_s16 + $0x8] sm:$0xff] }
0x116f   :  { %v4451_v59 = vpop.f32.mrf.mxu1  ;;  %5981 = vmatprep.mubr.msk.f32.mxu0 %vm1020_vm0, %v4456_v16  ;;  %v4570_v16 = vld [vmem:[%s7473_s16] sm:$0xff] }
0x1170   :  { %5979 = vmatprep.subr.mxu0 %v4451_v59 }
0x1171   :  { %v5978_v14 = vpop.f32.mrf.mxu1  ;;  %5980 = vmatpush3.msra.mxu0 %v4451_v59 }
0x1172   :  { %5982 = vmatmul.mubr.msk.f32.vlgmr.msra.gmra.mxu0 %vm1020_vm0, %v4458_v49  ;;  %v4602_v49 = vld [vmem:[%s7475_s18] sm:$0xff]  }
0x1173   :  { %v4603_v14 = vunpack.c.l.bf16 %v4602_v49  ;;  %v4687_v43 = vunpack.c.h.bf16 %v4602_v49 }
0x1175   :  { %5984 = vmatprep.subr.mxu1 %v4603_v14  ;;  %5989 = vmatprep.subr.mxu0 %v4687_v43 }
0x1176   :  { %5985 = vmatpush3.msra.mxu1 %v4603_v14  ;;  %5990 = vmatpush3.msra.mxu0 %v4687_v43 }
0x121a   :  { %v5923_v61 = vpop.f32.mrf.mxu0 }
0x121b   :  { %v3591_v6 = vadd.f32 %v5923_v61, %v3431_v48 }
0x121c   :  { %v3581_v38 = vpop.f32.mrf.mxu0 }
0x121d   :  { %v3590_v10 = vadd.f32 %v3581_v38, %v3426_v56  ;;  %v5114_v38 = vld [vmem:[%s7475_s18 + $0x8] sm:$0xff]  }
0x121e   :  { %v5933_v52 = vpop.f32.mrf.mxu0 }
0x121f   :  { %v3749_v42 = vadd.f32 %v5933_v52, %v3591_v6  ;;  %v4927_v52 = vld [vmem:[%s7477_s20] sm:$0xff] }
0x1220   :  { %v3739_v19 = vpop.f32.mrf.mxu0 }
0x1221   :  { %v3748_v34 = vadd.f32 %v3739_v19, %v3590_v10  ;;  %v4928_v19 = vld [vmem:[%s7477_s20 + $0x8] sm:$0x3] }
0x1222   :  { %v5943_v32 = vpop.f32.mrf.mxu0 }
0x1223   :  { %v3907_v26 = vadd.f32 %v5943_v32, %v3749_v42  ;;  %v4767_v32 = vunpack.c.l.bf16 %v5114_v38 }
0x1224   :  { %v3897_v20 = vpop.f32.mrf.mxu0 }
0x1225   :  { %v3906_v22 = vadd.f32 %v3897_v20, %v3748_v34  ;;  %v4847_v20 = vunpack.c.h.bf16 %v5114_v38  ;;  %5994 = vmatprep.subr.mxu1 %v4767_v32 }
0x1226   :  { %v5953_v37 = vpop.f32.mrf.mxu0 }
0x1227   :  { %v4065_v12 = vadd.f32 %v5953_v37, %v3907_v26  ;;  %5999 = vmatprep.subr.mxu0 %v4847_v20 }
0x1228   :  { %v4055_v58 = vpop.f32.mrf.mxu0 }
0x1229   :  { %v4064_v45 = vadd.f32 %v4055_v58, %v3906_v22 }
0x122a   :  { %v5963_v53 = vpop.f32.mrf.mxu0 }
0x122b   :  { %v4223_v62 = vadd.f32 %v5963_v53, %v4065_v12 }
0x122c   :  { %v4213_v7 = vpop.f32.mrf.mxu0 }
0x122d   :  { %v4222_v29 = vadd.f32 %v4213_v7, %v4064_v45  ;;  %v4925_v7 = vld [vmem:[%s7476_s19] sm:$0xff] }
0x122e   :  { %v5973_v13 = vpop.f32.mrf.mxu0 }
0x122f   :  { %v4381_v51 = vadd.f32 %v5973_v13, %v4223_v62 }
0x1230   :  { %v4371_v15 = vpop.f32.mrf.mxu0 }
0x1231   :  { %v4380_v3 = vadd.f32 %v4371_v15, %v4222_v29 }
0x1232   :  { %v5983_v2 = vpop.f32.mrf.mxu0 }
0x1233   :  { %v7401_v50 = vadd.f32 %v5983_v2, %v4381_v51 }
0x1234   :  { %v4529_v24 = vpop.f32.mrf.mxu0 }
0x1235   :  { %v4538_v17 = vadd.f32 %v4529_v24, %v4380_v3  ;;  %v4543_v28 = vsel %vm1020_vm0, %v7401_v50, 0.0  ;;  %v4549_v54 = vmul.f32 %v7401_v50, %v7401_v50 }
0x1236   :  { %4544 = vadd.xlane.f32.xlu0 %v4543_v28 }
0x1237   :  { %v4540_v21 = vsel %vm1020_vm0, %v4538_v17, 0.0  ;;  %v4548_v47 = vmul.f32 %v4538_v17, %v4538_v17  ;;  %v4553_v36 = vsel %vm1020_vm0, %v4549_v54, 0.0 }
0x1238   :  { %4541 = vadd.xlane.f32.xlu1 %v4540_v21  ;;  %v4926_v21 = vld [vmem:[%s7476_s19 + $0x8] sm:$0x3] }
0x1239   :  { %v4550_v40 = vsel %vm1020_vm0, %v4548_v47, 0.0 }
0x123a   :  { %4551 = vadd.xlane.f32.xlu0 %v4550_v40 }
0x123c   :  { %4554 = vadd.xlane.f32.xlu1 %v4553_v36 }
0x12bf   :  { %v4545_v8 = vpop.xlane.xlu0 %4544 }
0x12c0   :  { %v4547_v25 = vmul.f32 0.125, %v4545_v8 }
0x12c1   :  { %v4542_v39 = vpop.xlane.xlu1 %4541 }
0x12c2   :  { %v4546_v23 = vmul.f32 0.125, %v4542_v39  ;;  %v4559_v63 = vmul.f32 %v4547_v25, %v4547_v25 }
0x12c3   :  { %v4552_v1 = vpop.xlane.xlu0 %4551 }
0x12c4   :  { %v4558_v31 = vmul.f32 %v4546_v23, %v4546_v23  ;;  %v4556_v55 = vmul.f32 0.125, %v4552_v1 }
0x12c5   :  { %v4555_v44 = vpop.xlane.xlu1 %4554 }
0x12c6   :  { %v4560_v18 = vsub.f32 %v4556_v55, %v4558_v31  ;;  %v4557_v27 = vmul.f32 0.125, %v4555_v44 }
0x12c8   :  { %v4564_v30 = vadd.f32 1e-05, %v4560_v18  ;;  %v4561_v60 = vsub.f32 %v4557_v27, %v4559_v63 }
0x12ca   :  { %6117 = vrsqrt.f32 %v4564_v30  ;;  %v4565_v41 = vadd.f32 1e-05, %v4561_v60 }
0x12cc   :  { %6119 = vrsqrt.f32 %v4565_v41 }
0x12d7   :  { %v6118_v33 = vpop.eup %6117 }
0x12d8   :  { %v4568_v5 = vmul.f32 %v6118_v33, %v4562_v11 }
0x12d9   :  { %v6120_v35 = vpop.eup %6119 }
0x12da   :  { %4578 = vperm.xlu0 %6109, %v4568_v5   ;;  %v4572_v9 = vmul.f32 %v4568_v5, %v4546_v23  ;;  %v4569_v4 = vmul.f32 %v6120_v35, %v4563_v0 }
0x12dc   :  { %4583 = vperm.xlu1 %6110, %v4569_v4   ;;  %v4573_v59 = vmul.f32 %v4569_v4, %v4547_v25  ;;  %v4574_v57 = vsub.f32 %v4570_v16, %v4572_v9 }
0x12de   :  { %v4575_v61 = vsub.f32 %v4571_v46, %v4573_v59 }
0x12e0   :  { %4590 = vperm.xlu1 %6110, %v4574_v57   ;;  %4595 = vperm.xlu0 %6109, %v4575_v61  }
0x12e4   :  { %4931 = vperm.xlu1 %6110, %v4927_v52   ;;  %4936 = vperm.xlu0 %6109, %v4928_v19  }
0x1355   :  { %v4579_v48 = vpop.permute.xlu0 %4578 }
0x1356   :  { %v4586_v56 = vmul.f32 %v4579_v48, %v4538_v17 }
0x1357   :  { %v4584_v37 = vpop.permute.xlu1 %4583 }
0x1358   :  { %v4587_v6 = vmul.f32 %v4584_v37, %v7401_v50 }
0x135b   :  { %v4591_v58 = vpop.permute.xlu1 %4590  ;;  %v4596_v10 = vpop.permute.xlu0 %4595 }
0x135c   :  { %v4598_v42 = vadd.f32 %v4591_v58, %v4586_v56  ;;  %v4599_v53 = vadd.f32 %v4596_v10, %v4587_v6 }
0x135e   :  { %v4600_v34 = vmax.f32 %v4598_v42, 0.0  ;;  %v4601_v26 = vmax.f32 %v4599_v53, 0.0 }
0x135f   :  { %v4937_v47 = vpop.permute.xlu0 %4936  ;;  %v4932_v36 = vpop.permute.xlu1 %4931 }
0x1360   :  { %5986 = vmatprep.mubr.msk.f32.mxu1 %vm1020_vm0, %v4600_v34  ;;  %5991 = vmatprep.mubr.msk.f32.mxu0 %vm1020_vm0, %v4600_v34 }
0x1361   :  { %5987 = vmatmul.mubr.msk.f32.vlgmr.msra.gmra.mxu1 %vm1020_vm0, %v4601_v26  ;;  %5992 = vmatmul.mubr.msk.f32.vlgmr.msra.gmra.mxu0 %vm1020_vm0, %v4601_v26 }
0x1362   :  { %5996 = vmatprep.mubr.msk.f32.mxu1 %vm1020_vm0, %v4600_v34  ;;  %6001 = vmatprep.mubr.msk.f32.mxu0 %vm1020_vm0, %v4600_v34 }
0x1363   :  { %5995 = vmatpush3.msra.mxu1 %v4767_v32  ;;  %6000 = vmatpush3.msra.mxu0 %v4847_v20 }
0x1365   :  { %5997 = vmatmul.mubr.msk.f32.vlgmr.msra.gmra.mxu1 %vm1020_vm0, %v4601_v26  ;;  %6002 = vmatmul.mubr.msk.f32.vlgmr.msra.gmra.mxu0 %vm1020_vm0, %v4601_v26 }
0x1366   :  { %6008 = vmatprep.mubr.msk.f32.mxu1 %vm240_vm3, %v4925_v7 }
0x1421   :  { %v5988_v22 = vpop.f32.mrf.mxu1  ;;  %v5993_v12 = vpop.f32.mrf.mxu0 }
0x1422   :  { %v4764_v62 = vmax.f32 %v5988_v22, %v5993_v12 }
0x1423   :  { %v4676_v13 = vpop.f32.mrf.mxu1  ;;  %v4754_v45 = vpop.f32.mrf.mxu0 }
0x1424   :  { %v4763_v51 = vmax.f32 %v4676_v13, %v4754_v45 }
0x1425   :  { %v5998_v15 = vpop.f32.mrf.mxu1  ;;  %v6003_v29 = vpop.f32.mrf.mxu0 }
0x1426   :  { %v4844_v2 = vmax.f32 %v4764_v62, %v5998_v15 }
0x1427   :  { %v4834_v3 = vpop.f32.mrf.mxu1  ;;  %v4914_v17 = vpop.f32.mrf.mxu0 }
0x1428   :  { %v4924_v50 = vmax.f32 %v4844_v2, %v6003_v29  ;;  %v4843_v24 = vmax.f32 %v4763_v51, %v4834_v3 }
0x142a   :  { %v4923_v28 = vmax.f32 %v4843_v24, %v4914_v17  ;;  %6004 = vmatprep.subr.mxu1 %v4924_v50 }
0x142b   :  { %6005 = vmatpush3.msra.mxu1 %v4924_v50 }
0x142c   :  { %6006 = vmatprep.subr.mxu1 %v4923_v28 }
0x142d   :  { %6007 = vmatpush3.msra.mxu1 %v4923_v28 }
0x142e   :  { %6009 = vmatmul.mubr.msk.f32.vlgmr.msra.gmra.mxu1 %vm240_vm3, %v4926_v21 }
0x14ee   :  { %v6010_v54 = vpop.f32.mrf.mxu1 }
0x14ef   :  { %v5017_v40 = vadd.f32 %v6010_v54, %v4937_v47 }
0x14f0   :  { %v5011_v8 = vpop.f32.mrf.mxu1 }
0x14f1   :  { %5023 = vst.msk [vmem:[%s7478_s21 + $0x8] sm:$0x3] %vm5022_vm6, %v5017_v40  ;;  %v5012_v39 = vadd.f32 %v5011_v8, %v4932_v36 }
0x14f3   :  { %5021 = vst.msk [vmem:[%s7478_s21] sm:$0xff] %vm5020_vm7, %v5012_v39 }
0x14f4   :  { %5028 = vsyncpa [#allocation3], 1 }
0x14f5   :  { %5029 = vsyncpa [#allocation5], 1 }
0x14f6   :  { %5030 = vsyncpa [#allocation8], 1 }

</bundles_post_ra>
